<compile_context>
chip_gen: v6e
topology: v6e:2x2x1
jax: 0.10.0
libtpu: 0.0.40
codegen_flags: <defaults>
</compile_context>

<pallas_src>
import jax
import jax.numpy as jnp
from jax import lax
from jax.experimental import pallas as pl
from jax.experimental.pallas import tpu as pltpu


def _vmem_spec():
    return pl.BlockSpec(memory_space=pltpu.MemorySpace.VMEM)


# ----------------------------------------------------------------------------
# Weight packing.
#
# Packed gate layout (width 8H), gate-grouped, fwd/bwd interleaved per gate:
#   [ i_f i_b | f_f f_b | g_f g_b | o_f o_b ]     (each sub-block H lanes)
# Hidden/cell state layout (width 2H): [ h_f | h_b ].
# "Aligned" row t means: fwd lanes hold source time t, bwd lanes hold T-1-t.
# ----------------------------------------------------------------------------
def _interleave_gates(f, b):
    # (R, 4H), (R, 4H) -> (R, 8H) in the packed gate layout above.
    R = f.shape[0]
    H = f.shape[1] // 4
    return jnp.stack([f.reshape(R, 4, H), b.reshape(R, 4, H)], axis=2).reshape(R, 8 * H)


def _fwd_cols(H):
    return (jnp.arange(8 * H) % (2 * H)) < H          # (8H,) bool, fwd-direction lanes


def _pack_layer1_input(p1):
    # Returns (2C, 8H) bf16 weight consumed by the concatenated [x(t)|x(T-1-t)]
    # input, producing time-ALIGNED gates directly, plus the (1, 8H) f32 bias.
    H = p1["whh_f"].shape[0]
    wih_p = _interleave_gates(p1["wih_f"], p1["wih_b"])          # (C, 8H)
    fc = _fwd_cols(H)[None, :]
    w_top = jnp.where(fc, wih_p, 0.0)                            # rows for x(t)
    w_bot = jnp.where(fc, 0.0, wih_p)                            # rows for x(T-1-t)
    w1cat = jnp.concatenate([w_top, w_bot], axis=0).astype(jnp.bfloat16)
    b1 = _interleave_gates(p1["b_f"], p1["b_b"]).astype(jnp.float32)
    return w1cat, b1


def _pack_whh(p):
    # Block-diagonal (2H, 8H): h_f rows drive only fwd lanes, h_b rows only bwd.
    H = p["whh_f"].shape[0]
    z = jnp.zeros((H, 4 * H), jnp.float32)
    top = _interleave_gates(p["whh_f"], z)
    bot = _interleave_gates(z, p["whh_b"])
    return jnp.concatenate([top, bot], axis=0).astype(jnp.bfloat16)


def _pack_boundary(p1, p2):
    # Fold layer-1 Linear into layer-2's input gate matmul and split into
    # alpha/beta masked weights so that ha/hb (time-aligned hidden histories)
    # directly produce time-ALIGNED layer-2 gates.
    H = p1["whh_f"].shape[0]
    hi = lax.Precision.HIGHEST
    wih2_p = _interleave_gates(p2["wih_f"], p2["wih_b"])                     # (H, 8H)
    wfull = jnp.dot(p1["we"], wih2_p, precision=hi)                          # (2H, 8H)
    bfold = (jnp.dot(p1["be"], wih2_p, precision=hi)
             + _interleave_gates(p2["b_f"], p2["b_b"]))                      # (1, 8H)
    fc = _fwd_cols(H)[None, :]                                               # (1, 8H)
    top_rows = (jnp.arange(2 * H) < H)[:, None]                              # (2H, 1)
    m_alpha = top_rows == fc                                                 # (2H, 8H)
    w_alpha = jnp.where(m_alpha, wfull, 0.0).astype(jnp.bfloat16)            # for ha
    w_beta = jnp.where(m_alpha, 0.0, wfull).astype(jnp.bfloat16)             # for hb
    return w_alpha, w_beta, bfold.astype(jnp.float32)


def _pack_output_embed(p2, out_pad):
    # Zero-padded split embedding weights (kill wrong-time halves of ha/hb) with
    # the class dim padded to a lane-dense width; pad bias = -1e30 so the padded
    # softmax lanes underflow to exactly 0.
    H = p2["whh_f"].shape[0]
    n_out = p2["we"].shape[1]
    we_pad = jnp.zeros((2 * H, out_pad), jnp.float32).at[:, :n_out].set(p2["we"])
    zo = jnp.zeros((H, out_pad), jnp.float32)
    wea = jnp.concatenate([we_pad[:H], zo], axis=0).astype(jnp.bfloat16)
    web = jnp.concatenate([zo, we_pad[H:]], axis=0).astype(jnp.bfloat16)
    be = jnp.full((1, out_pad), -1e30, jnp.float32).at[:, :n_out].set(p2["be"])
    return wea, web, be


# ----------------------------------------------------------------------------
# Fused decoder forward (2 BiLSTM layers + embeddings + softmax in one kernel).
# ----------------------------------------------------------------------------
def crnn_decoder_forward(feature, p1, p2):
    B, C, Hh, W = feature.shape
    assert Hh == 1, "the height of conv must be 1"
    T = W
    H = p1["whh_f"].shape[0]                    # hidden size (== inner_channels)
    assert p1["we"].shape[1] == p2["wih_f"].shape[0]
    n_class = p2["we"].shape[1]
    TB = T * B
    TWO_H = 2 * H
    GW = 8 * H                                  # packed gate width (both dirs)
    OUT_PAD = max(128, ((n_class + 127) // 128) * 128)

    # Wrapper layout plumbing only: NCHW -> time-major, plus the time-reversed
    # copy concatenated on the channel axis for the aligned layer-1 gate matmul.
    x_tbc = jnp.transpose(feature[:, :, 0, :], (2, 0, 1))                # (T, B, C)
    x_cat = jnp.concatenate([x_tbc, x_tbc[::-1]], axis=-1).reshape(TB, 2 * C)

    w1cat, b1 = _pack_layer1_input(p1)
    whh1 = _pack_whh(p1)
    w2a, w2b, b2 = _pack_boundary(p1, p2)
    whh2 = _pack_whh(p2)
    wea2, web2, be2 = _pack_output_embed(p2, OUT_PAD)

    def kernel(xc_ref, w1_ref, b1_ref, whh1_ref, w2a_ref, w2b_ref, b2_ref,
               whh2_ref, wea_ref, web_ref, be_ref, out_ref,
               gx_ref, ha_ref, hb_ref):
        lane = lax.broadcasted_iota(jnp.int32, (B, GW), 1)
        g_mask = (lane >= 4 * H) & (lane < 6 * H)          # g-gate block lanes

        def recur(whh_ref):
            whh = whh_ref[...]                             # (2H, 8H) bf16
            h = jnp.zeros((B, TWO_H), jnp.bfloat16)        # [h_f | h_b]
            c = jnp.zeros((B, TWO_H), jnp.float32)         # [c_f | c_b]
            for t in range(T):                             # fully unrolled (T=16)
                rt = T - 1 - t
                # gx_ref row-block t is already time-aligned: fwd lanes @ t,
                # bwd lanes @ T-1-t -> single load, no select in the loop body.
                gates = gx_ref[pl.ds(t * B, B), :] + jnp.dot(
                    h, whh, preferred_element_type=jnp.float32)
                # One EUP pass: tanh(x) = 2*sigmoid(2x) - 1 on the g block.
                pre = jnp.where(g_mask, gates + gates, gates)
                s = jax.nn.sigmoid(pre)
                act = jnp.where(g_mask, s + s - 1.0, s)
                i_g = act[:, 0 * TWO_H:1 * TWO_H]
                f_g = act[:, 1 * TWO_H:2 * TWO_H]
                g_g = act[:, 2 * TWO_H:3 * TWO_H]
                o_g = act[:, 3 * TWO_H:4 * TWO_H]
                c = f_g * c + i_g * g_g
                h = (o_g * jnp.tanh(c)).astype(jnp.bfloat16)
                # Full (B, 2H) bf16 row stores; the wrong-time halves are killed
                # by the structural zeros in w2a/w2b and wea2/web2.
                ha_ref[pl.ds(t * B, B), :] = h             # fwd half valid @ t
                hb_ref[pl.ds(rt * B, B), :] = h            # bwd half valid @ rt

        # Layer 1: hoisted, time-aligned input gate matmul.
        gx_ref[...] = (
            jnp.dot(xc_ref[...].astype(jnp.bfloat16), w1_ref[...],
                    preferred_element_type=jnp.float32)
            + b1_ref[...]
        )
        recur(whh1_ref)

        # Layer boundary: layer-1 Linear folded into layer-2's input gate
        # matmul; alpha/beta masks make the result time-aligned directly.
        gx_ref[...] = (
            jnp.dot(ha_ref[...], w2a_ref[...], preferred_element_type=jnp.float32)
            + jnp.dot(hb_ref[...], w2b_ref[...], preferred_element_type=jnp.float32)
            + b2_ref[...]
        )
        recur(whh2_ref)

        # Output embedding (lane-dense, n_class padded to OUT_PAD) + softmax.
        logits = (
            jnp.dot(ha_ref[...], wea_ref[...], preferred_element_type=jnp.float32)
            + jnp.dot(hb_ref[...], web_ref[...], preferred_element_type=jnp.float32)
            + be_ref[...]
        )
        m = jnp.max(logits, axis=-1, keepdims=True)
        e = jnp.exp(logits - m)                            # pad lanes -> exactly 0
        out_ref[...] = e / jnp.sum(e, axis=-1, keepdims=True)

    out2d = pl.pallas_call(
        kernel,
        out_shape=jax.ShapeDtypeStruct((TB, OUT_PAD), jnp.float32),
        in_specs=[_vmem_spec()] * 11,
        out_specs=_vmem_spec(),
        scratch_shapes=[
            pltpu.VMEM((TB, GW), jnp.float32),       # time-aligned gate-x
            pltpu.VMEM((TB, TWO_H), jnp.bfloat16),   # hidden hist, fwd-aligned
            pltpu.VMEM((TB, TWO_H), jnp.bfloat16),   # hidden hist, bwd-aligned
        ],
    )(x_cat, w1cat, b1, whh1, w2a, w2b, b2, whh2, wea2, web2, be2)

    # (T*B, OUT_PAD) -> (B, n_class, 1, T)
    return jnp.transpose(
        out2d[:, :n_class].reshape(T, B, n_class), (1, 2, 0))[:, :, None, :]


# ----------------------------------------------------------------------------
# Reference 1: pure-f32 module semantics (mirrors the PyTorch forward exactly).
# ----------------------------------------------------------------------------
def _lstm_dir_f32(x, wih, whh, b):
    H = whh.shape[0]
    hi = lax.Precision.HIGHEST

    def step(carry, x_t):
        h, c = carry
        gates = (jnp.dot(x_t, wih, precision=hi)
                 + jnp.dot(h, whh, precision=hi) + b)
        i = jax.nn.sigmoid(gates[:, 0 * H:1 * H])
        f = jax.nn.sigmoid(gates[:, 1 * H:2 * H])
        g = jnp.tanh(gates[:, 2 * H:3 * H])
        o = jax.nn.sigmoid(gates[:, 3 * H:4 * H])
        c = f * c + i * g
        h = o * jnp.tanh(c)
        return (h, c), h

    z = jnp.zeros((x.shape[1], H), jnp.float32)
    _, hs = lax.scan(step, (z, z), x)
    return hs


def _bilstm_f32(x, p):
    fwd = _lstm_dir_f32(x, p["wih_f"], p["whh_f"], p["b_f"])
    bwd = _lstm_dir_f32(x[::-1], p["wih_b"], p["whh_b"], p["b_b"])[::-1]
    h = jnp.concatenate([fwd, bwd], axis=-1)
    Tn, Bn, HH = h.shape
    out = (jnp.dot(h.reshape(Tn * Bn, HH), p["we"],
                   precision=lax.Precision.HIGHEST) + p["be"])
    return out.reshape(Tn, Bn, -1)


def crnn_decoder_ref_f32(feature, p1, p2):
    x = jnp.transpose(feature[:, :, 0, :], (2, 0, 1))
    pred = _bilstm_f32(_bilstm_f32(x, p1), p2)
    sm = jax.nn.softmax(pred, axis=-1)
    return jnp.transpose(sm, (1, 2, 0))[:, :, None, :]


# ----------------------------------------------------------------------------
# Reference 2: precision mirror (bf16 weights/hidden, f32 gate math, folded
# layer boundary) — structurally independent of the kernel's packed layout.
# ----------------------------------------------------------------------------
def _lstm_dir_mirror(gx, whh):
    H = whh.shape[0]
    whh16 = whh.astype(jnp.bfloat16)

    def step(carry, gx_t):
        h, c = carry
        gates = gx_t + jnp.dot(h, whh16, preferred_element_type=jnp.float32)
        i = jax.nn.sigmoid(gates[:, 0 * H:1 * H])
        f = jax.nn.sigmoid(gates[:, 1 * H:2 * H])
        g = jnp.tanh(gates[:, 2 * H:3 * H])
        o = jax.nn.sigmoid(gates[:, 3 * H:4 * H])
        c = f * c + i * g
        h = (o * jnp.tanh(c)).astype(jnp.bfloat16)
        return (h, c), h

    z16 = jnp.zeros((gx.shape[1], H), jnp.bfloat16)
    zc = jnp.zeros((gx.shape[1], H), jnp.float32)
    _, hs = lax.scan(step, (z16, zc), gx)
    return hs


def crnn_decoder_ref_mirror(feature, p1, p2):
    x = jnp.transpose(feature[:, :, 0, :], (2, 0, 1))         # (T, B, C)
    Tn, Bn, _ = x.shape
    H = p1["whh_f"].shape[0]
    hi = lax.Precision.HIGHEST

    def in_gates(x_seq, wih, b):
        flat = x_seq.reshape(Tn * Bn, -1).astype(jnp.bfloat16)
        g = jnp.dot(flat, wih.astype(jnp.bfloat16),
                    preferred_element_type=jnp.float32) + b
        return g.reshape(Tn, Bn, -1)

    h1f = _lstm_dir_mirror(in_gates(x, p1["wih_f"], p1["b_f"]), p1["whh_f"])
    h1b = _lstm_dir_mirror(in_gates(x[::-1], p1["wih_b"], p1["b_b"]),
                           p1["whh_b"])[::-1]
    h1f_flat = h1f.reshape(Tn * Bn, H)
    h1b_flat = h1b.reshape(Tn * Bn, H)

    def folded_gates(wih2_d, b2_d):
        wf = jnp.dot(p1["we"][:H], wih2_d, precision=hi).astype(jnp.bfloat16)
        wb = jnp.dot(p1["we"][H:], wih2_d, precision=hi).astype(jnp.bfloat16)
        bias = jnp.dot(p1["be"], wih2_d, precision=hi) + b2_d
        g = (jnp.dot(h1f_flat, wf, preferred_element_type=jnp.float32)
             + jnp.dot(h1b_flat, wb, preferred_element_type=jnp.float32) + bias)
        return g.reshape(Tn, Bn, -1)

    h2f = _lstm_dir_mirror(folded_gates(p2["wih_f"], p2["b_f"]), p2["whh_f"])
    h2b = _lstm_dir_mirror(folded_gates(p2["wih_b"], p2["b_b"])[::-1],
                           p2["whh_b"])[::-1]
    logits = (
        jnp.dot(h2f.reshape(Tn * Bn, H), p2["we"][:H].astype(jnp.bfloat16),
                preferred_element_type=jnp.float32)
        + jnp.dot(h2b.reshape(Tn * Bn, H), p2["we"][H:].astype(jnp.bfloat16),
                  preferred_element_type=jnp.float32)
        + p2["be"]
    ).reshape(Tn, Bn, -1)
    sm = jax.nn.softmax(logits, axis=-1)
    return jnp.transpose(sm, (1, 2, 0))[:, :, None, :]


# ----------------------------------------------------------------------------
# Deterministic parameter init (PyTorch LSTM/Linear shapes, uniform(+-1/sqrt H)).
# ----------------------------------------------------------------------------
def init_bilstm(key, n_in, hidden, n_out):
    ks = jax.random.split(key, 10)
    s = 1.0 / jnp.sqrt(jnp.float32(hidden))

    def u(k, shape):
        return jax.random.uniform(k, shape, jnp.float32, -s, s)

    return dict(
        wih_f=u(ks[0], (n_in, 4 * hidden)),
        whh_f=u(ks[1], (hidden, 4 * hidden)),
        b_f=u(ks[2], (1, 4 * hidden)) + u(ks[3], (1, 4 * hidden)),
        wih_b=u(ks[4], (n_in, 4 * hidden)),
        whh_b=u(ks[5], (hidden, 4 * hidden)),
        b_b=u(ks[6], (1, 4 * hidden)) + u(ks[7], (1, 4 * hidden)),
        we=u(ks[8], (2 * hidden, n_out)),
        be=u(ks[9], (1, n_out)),
    )


if __name__ == "__main__":
    key = jax.random.PRNGKey(0)
    k_in, k_p1, k_p2 = jax.random.split(key, 3)

    B, C, Himg, W = 2, 32, 1, 16       # small shapes; h==1 (no reduce branch)
    inner_channels = 32
    n_class = 12                       # len(charset)

    feature = jax.random.normal(k_in, (B, C, Himg, W), jnp.float32)
    params1 = init_bilstm(k_p1, C, inner_channels, inner_channels)
    params2 = init_bilstm(k_p2, inner_channels, inner_channels, n_class)

    out = jax.block_until_ready(jax.jit(crnn_decoder_forward)(feature, params1, params2))
    mirror = jax.block_until_ready(jax.jit(crnn_decoder_ref_mirror)(feature, params1, params2))
    ref32 = jax.block_until_ready(jax.jit(crnn_decoder_ref_f32)(feature, params1, params2))

    assert out.shape == (B, n_class, 1, W), out.shape
    # softmax over the class dim sums to 1 (padded lanes contribute exactly 0)
    assert jnp.allclose(jnp.sum(out, axis=1), 1.0, atol=1e-4)
    # tight check vs the precision-mirroring reference (same bf16/fold structure)
    err_mirror = float(jnp.max(jnp.abs(out - mirror)))
    assert err_mirror < 1e-2, f"mirror max abs err {err_mirror}"
    # coarse semantic sanity vs the pure-f32 PyTorch-equivalent forward
    err_f32 = float(jnp.max(jnp.abs(out - ref32)))
    assert err_f32 < 2e-1, f"f32 reference max abs err {err_f32}"
    print("KERNEL_OK")
</pallas_src>

<mosaic_0001>
module attributes {stable_mosaic.version = 11 : i64} {
  func.func @kernel(%arg0: memref<32x64xf32, #tpu.memory_space<vmem>>, %arg1: memref<64x256xbf16, #tpu.memory_space<vmem>>, %arg2: memref<1x256xf32, #tpu.memory_space<vmem>>, %arg3: memref<64x256xbf16, #tpu.memory_space<vmem>>, %arg4: memref<64x256xbf16, #tpu.memory_space<vmem>>, %arg5: memref<64x256xbf16, #tpu.memory_space<vmem>>, %arg6: memref<1x256xf32, #tpu.memory_space<vmem>>, %arg7: memref<64x256xbf16, #tpu.memory_space<vmem>>, %arg8: memref<64x128xbf16, #tpu.memory_space<vmem>>, %arg9: memref<64x128xbf16, #tpu.memory_space<vmem>>, %arg10: memref<1x128xf32, #tpu.memory_space<vmem>>, %arg11: memref<32x128xf32, #tpu.memory_space<vmem>>, %arg12: memref<32x256xf32, #tpu.memory_space<vmem>>, %arg13: memref<32x64xbf16, #tpu.memory_space<vmem>>, %arg14: memref<32x64xbf16, #tpu.memory_space<vmem>>) attributes {dimension_semantics = [], scalar_prefetch = 0 : i64, scratch_operands = 3 : i64, tpu.core_type = #tpu.core_type<tc>} {
    %0 = tpu.iota {dimensions = array<i32: 1>} : vector<2x256xi32>
    %c128_i32 = arith.constant 128 : i32
    %1 = vector.broadcast %c128_i32 : i32 to vector<2x256xi32>
    %2 = arith.cmpi sge, %0, %1 : vector<2x256xi32>
    %c192_i32 = arith.constant 192 : i32
    %3 = vector.broadcast %c192_i32 : i32 to vector<2x256xi32>
    %4 = arith.cmpi slt, %0, %3 : vector<2x256xi32>
    %5 = arith.andi %2, %4 : vector<2x256xi1>
    %c0 = arith.constant 0 : index
    %c0_0 = arith.constant 0 : index
    %6 = vector.load %arg0[%c0, %c0_0] : memref<32x64xf32, #tpu.memory_space<vmem>>, vector<32x64xf32>
    %7 = arith.truncf %6 : vector<32x64xf32> to vector<32x64xbf16>
    %c0_1 = arith.constant 0 : index
    %c0_2 = arith.constant 0 : index
    %8 = vector.load %arg1[%c0_1, %c0_2] : memref<64x256xbf16, #tpu.memory_space<vmem>>, vector<64x256xbf16>
    %cst = arith.constant dense<0.000000e+00> : vector<32x256xf32>
    %9 = tpu.matmul %7, %8, %cst {dimension_numbers = #tpu.dot_dimension_numbers<[1], [0], [0], [1], [0, 0, 1, 1], [], []>} : vector<32x64xbf16>, vector<64x256xbf16>, vector<32x256xf32> -> vector<32x256xf32>
    %c0_3 = arith.constant 0 : index
    %c0_4 = arith.constant 0 : index
    %10 = vector.load %arg2[%c0_3, %c0_4] : memref<1x256xf32, #tpu.memory_space<vmem>>, vector<1x256xf32>
    %11 = vector.broadcast %10 : vector<1x256xf32> to vector<32x256xf32>
    %12 = arith.addf %9, %11 : vector<32x256xf32>
    %c0_5 = arith.constant 0 : index
    %c0_6 = arith.constant 0 : index
    %13 = vector.load %arg12[%c0_5, %c0_6] : memref<32x256xf32, #tpu.memory_space<vmem>>, vector<32x256xf32>
    tpu.vector_store %arg12[%c0_5, %c0_6], %12 {strides = array<i32>} : memref<32x256xf32, #tpu.memory_space<vmem>>, vector<32x256xf32>,
    %c0_7 = arith.constant 0 : index
    %c0_8 = arith.constant 0 : index
    %14 = vector.load %arg3[%c0_7, %c0_8] : memref<64x256xbf16, #tpu.memory_space<vmem>>, vector<64x256xbf16>
    %cst_9 = arith.constant 0.000000e+00 : bf16
    %15 = vector.broadcast %cst_9 : bf16 to vector<2x64xbf16>
    %cst_10 = arith.constant 0.000000e+00 : f32
    %16 = vector.broadcast %cst_10 : f32 to vector<2x64xf32>
    %c0_11 = arith.constant 0 : index
    %c0_12 = arith.constant 0 : index
    %17 = vector.load %arg12[%c0_11, %c0_12] : memref<32x256xf32, #tpu.memory_space<vmem>>, vector<2x256xf32>
    %cst_13 = arith.constant dense<0.000000e+00> : vector<2x256xf32>
    %18 = tpu.matmul %15, %14, %cst_13 {dimension_numbers = #tpu.dot_dimension_numbers<[1], [0], [0], [1], [0, 0, 1, 1], [], []>} : vector<2x64xbf16>, vector<64x256xbf16>, vector<2x256xf32> -> vector<2x256xf32>
    %19 = arith.addf %17, %18 : vector<2x256xf32>
    %20 = arith.addf %19, %19 : vector<2x256xf32>
    %21 = arith.select %5, %20, %19 : vector<2x256xi1>, vector<2x256xf32>
    %22 = arith.negf %21 : vector<2x256xf32>
    %23 = math.exp %22 : vector<2x256xf32>
    %cst_14 = arith.constant 1.000000e+00 : f32
    %24 = vector.broadcast %cst_14 : f32 to vector<2x256xf32>
    %25 = arith.addf %24, %23 : vector<2x256xf32>
    %26 = arith.divf %24, %25 : vector<2x256xf32>
    %27 = arith.addf %26, %26 : vector<2x256xf32>
    %cst_15 = arith.constant 1.000000e+00 : f32
    %28 = vector.broadcast %cst_15 : f32 to vector<2x256xf32>
    %29 = arith.subf %27, %28 : vector<2x256xf32>
    %30 = arith.select %5, %29, %26 : vector<2x256xi1>, vector<2x256xf32>
    %31 = vector.extract_strided_slice %30 {offsets = [0, 0], sizes = [2, 64], strides = [1, 1]} : vector<2x256xf32> to vector<2x64xf32>
    %32 = vector.extract_strided_slice %30 {offsets = [0, 64], sizes = [2, 64], strides = [1, 1]} : vector<2x256xf32> to vector<2x64xf32>
    %33 = vector.extract_strided_slice %30 {offsets = [0, 128], sizes = [2, 64], strides = [1, 1]} : vector<2x256xf32> to vector<2x64xf32>
    %34 = vector.extract_strided_slice %30 {offsets = [0, 192], sizes = [2, 64], strides = [1, 1]} : vector<2x256xf32> to vector<2x64xf32>
    %35 = arith.mulf %32, %16 : vector<2x64xf32>
    %36 = arith.mulf %31, %33 : vector<2x64xf32>
    %37 = arith.addf %35, %36 : vector<2x64xf32>
    %38 = math.tanh %37 : vector<2x64xf32>
    %39 = arith.mulf %34, %38 : vector<2x64xf32>
    %40 = arith.truncf %39 : vector<2x64xf32> to vector<2x64xbf16>
    %c0_16 = arith.constant 0 : index
    %c0_17 = arith.constant 0 : index
    %41 = vector.load %arg13[%c0_16, %c0_17] : memref<32x64xbf16, #tpu.memory_space<vmem>>, vector<2x64xbf16>
    tpu.vector_store %arg13[%c0_16, %c0_17], %40 {strides = array<i32>} : memref<32x64xbf16, #tpu.memory_space<vmem>>, vector<2x64xbf16>,
    %c30 = arith.constant 30 : index
    %c0_18 = arith.constant 0 : index
    %42 = vector.load %arg14[%c30, %c0_18] : memref<32x64xbf16, #tpu.memory_space<vmem>>, vector<2x64xbf16>
    tpu.vector_store %arg14[%c30, %c0_18], %40 {strides = array<i32>} : memref<32x64xbf16, #tpu.memory_space<vmem>>, vector<2x64xbf16>,
    %c2 = arith.constant 2 : index
    %c0_19 = arith.constant 0 : index
    %43 = vector.load %arg12[%c2, %c0_19] : memref<32x256xf32, #tpu.memory_space<vmem>>, vector<2x256xf32>
    %cst_20 = arith.constant dense<0.000000e+00> : vector<2x256xf32>
    %44 = tpu.matmul %40, %14, %cst_20 {dimension_numbers = #tpu.dot_dimension_numbers<[1], [0], [0], [1], [0, 0, 1, 1], [], []>} : vector<2x64xbf16>, vector<64x256xbf16>, vector<2x256xf32> -> vector<2x256xf32>
    %45 = arith.addf %43, %44 : vector<2x256xf32>
    %46 = arith.addf %45, %45 : vector<2x256xf32>
    %47 = arith.select %5, %46, %45 : vector<2x256xi1>, vector<2x256xf32>
    %48 = arith.negf %47 : vector<2x256xf32>
    %49 = math.exp %48 : vector<2x256xf32>
    %cst_21 = arith.constant 1.000000e+00 : f32
    %50 = vector.broadcast %cst_21 : f32 to vector<2x256xf32>
    %51 = arith.addf %50, %49 : vector<2x256xf32>
    %52 = arith.divf %50, %51 : vector<2x256xf32>
    %53 = arith.addf %52, %52 : vector<2x256xf32>
    %cst_22 = arith.constant 1.000000e+00 : f32
    %54 = vector.broadcast %cst_22 : f32 to vector<2x256xf32>
    %55 = arith.subf %53, %54 : vector<2x256xf32>
    %56 = arith.select %5, %55, %52 : vector<2x256xi1>, vector<2x256xf32>
    %57 = vector.extract_strided_slice %56 {offsets = [0, 0], sizes = [2, 64], strides = [1, 1]} : vector<2x256xf32> to vector<2x64xf32>
    %58 = vector.extract_strided_slice %56 {offsets = [0, 64], sizes = [2, 64], strides = [1, 1]} : vector<2x256xf32> to vector<2x64xf32>
    %59 = vector.extract_strided_slice %56 {offsets = [0, 128], sizes = [2, 64], strides = [1, 1]} : vector<2x256xf32> to vector<2x64xf32>
    %60 = vector.extract_strided_slice %56 {offsets = [0, 192], sizes = [2, 64], strides = [1, 1]} : vector<2x256xf32> to vector<2x64xf32>
    %61 = arith.mulf %58, %37 : vector<2x64xf32>
    %62 = arith.mulf %57, %59 : vector<2x64xf32>
    %63 = arith.addf %61, %62 : vector<2x64xf32>
    %64 = math.tanh %63 : vector<2x64xf32>
    %65 = arith.mulf %60, %64 : vector<2x64xf32>
    %66 = arith.truncf %65 : vector<2x64xf32> to vector<2x64xbf16>
    %c2_23 = arith.constant 2 : index
    %c0_24 = arith.constant 0 : index
    %67 = vector.load %arg13[%c2_23, %c0_24] : memref<32x64xbf16, #tpu.memory_space<vmem>>, vector<2x64xbf16>
    tpu.vector_store %arg13[%c2_23, %c0_24], %66 {strides = array<i32>} : memref<32x64xbf16, #tpu.memory_space<vmem>>, vector<2x64xbf16>,
    %c28 = arith.constant 28 : index
    %c0_25 = arith.constant 0 : index
    %68 = vector.load %arg14[%c28, %c0_25] : memref<32x64xbf16, #tpu.memory_space<vmem>>, vector<2x64xbf16>
    tpu.vector_store %arg14[%c28, %c0_25], %66 {strides = array<i32>} : memref<32x64xbf16, #tpu.memory_space<vmem>>, vector<2x64xbf16>,
    %c4 = arith.constant 4 : index
    %c0_26 = arith.constant 0 : index
    %69 = vector.load %arg12[%c4, %c0_26] : memref<32x256xf32, #tpu.memory_space<vmem>>, vector<2x256xf32>
    %cst_27 = arith.constant dense<0.000000e+00> : vector<2x256xf32>
    %70 = tpu.matmul %66, %14, %cst_27 {dimension_numbers = #tpu.dot_dimension_numbers<[1], [0], [0], [1], [0, 0, 1, 1], [], []>} : vector<2x64xbf16>, vector<64x256xbf16>, vector<2x256xf32> -> vector<2x256xf32>
    %71 = arith.addf %69, %70 : vector<2x256xf32>
    %72 = arith.addf %71, %71 : vector<2x256xf32>
    %73 = arith.select %5, %72, %71 : vector<2x256xi1>, vector<2x256xf32>
    %74 = arith.negf %73 : vector<2x256xf32>
    %75 = math.exp %74 : vector<2x256xf32>
    %cst_28 = arith.constant 1.000000e+00 : f32
    %76 = vector.broadcast %cst_28 : f32 to vector<2x256xf32>
    %77 = arith.addf %76, %75 : vector<2x256xf32>
    %78 = arith.divf %76, %77 : vector<2x256xf32>
    %79 = arith.addf %78, %78 : vector<2x256xf32>
    %cst_29 = arith.constant 1.000000e+00 : f32
    %80 = vector.broadcast %cst_29 : f32 to vector<2x256xf32>
    %81 = arith.subf %79, %80 : vector<2x256xf32>
    %82 = arith.select %5, %81, %78 : vector<2x256xi1>, vector<2x256xf32>
    %83 = vector.extract_strided_slice %82 {offsets = [0, 0], sizes = [2, 64], strides = [1, 1]} : vector<2x256xf32> to vector<2x64xf32>
    %84 = vector.extract_strided_slice %82 {offsets = [0, 64], sizes = [2, 64], strides = [1, 1]} : vector<2x256xf32> to vector<2x64xf32>
    %85 = vector.extract_strided_slice %82 {offsets = [0, 128], sizes = [2, 64], strides = [1, 1]} : vector<2x256xf32> to vector<2x64xf32>
    %86 = vector.extract_strided_slice %82 {offsets = [0, 192], sizes = [2, 64], strides = [1, 1]} : vector<2x256xf32> to vector<2x64xf32>
    %87 = arith.mulf %84, %63 : vector<2x64xf32>
    %88 = arith.mulf %83, %85 : vector<2x64xf32>
    %89 = arith.addf %87, %88 : vector<2x64xf32>
    %90 = math.tanh %89 : vector<2x64xf32>
    %91 = arith.mulf %86, %90 : vector<2x64xf32>
    %92 = arith.truncf %91 : vector<2x64xf32> to vector<2x64xbf16>
    %c4_30 = arith.constant 4 : index
    %c0_31 = arith.constant 0 : index
    %93 = vector.load %arg13[%c4_30, %c0_31] : memref<32x64xbf16, #tpu.memory_space<vmem>>, vector<2x64xbf16>
    tpu.vector_store %arg13[%c4_30, %c0_31], %92 {strides = array<i32>} : memref<32x64xbf16, #tpu.memory_space<vmem>>, vector<2x64xbf16>,
    %c26 = arith.constant 26 : index
    %c0_32 = arith.constant 0 : index
    %94 = vector.load %arg14[%c26, %c0_32] : memref<32x64xbf16, #tpu.memory_space<vmem>>, vector<2x64xbf16>
    tpu.vector_store %arg14[%c26, %c0_32], %92 {strides = array<i32>} : memref<32x64xbf16, #tpu.memory_space<vmem>>, vector<2x64xbf16>,
    %c6 = arith.constant 6 : index
    %c0_33 = arith.constant 0 : index
    %95 = vector.load %arg12[%c6, %c0_33] : memref<32x256xf32, #tpu.memory_space<vmem>>, vector<2x256xf32>
    %cst_34 = arith.constant dense<0.000000e+00> : vector<2x256xf32>
    %96 = tpu.matmul %92, %14, %cst_34 {dimension_numbers = #tpu.dot_dimension_numbers<[1], [0], [0], [1], [0, 0, 1, 1], [], []>} : vector<2x64xbf16>, vector<64x256xbf16>, vector<2x256xf32> -> vector<2x256xf32>
    %97 = arith.addf %95, %96 : vector<2x256xf32>
    %98 = arith.addf %97, %97 : vector<2x256xf32>
    %99 = arith.select %5, %98, %97 : vector<2x256xi1>, vector<2x256xf32>
    %100 = arith.negf %99 : vector<2x256xf32>
    %101 = math.exp %100 : vector<2x256xf32>
    %cst_35 = arith.constant 1.000000e+00 : f32
    %102 = vector.broadcast %cst_35 : f32 to vector<2x256xf32>
    %103 = arith.addf %102, %101 : vector<2x256xf32>
    %104 = arith.divf %102, %103 : vector<2x256xf32>
    %105 = arith.addf %104, %104 : vector<2x256xf32>
    %cst_36 = arith.constant 1.000000e+00 : f32
    %106 = vector.broadcast %cst_36 : f32 to vector<2x256xf32>
    %107 = arith.subf %105, %106 : vector<2x256xf32>
    %108 = arith.select %5, %107, %104 : vector<2x256xi1>, vector<2x256xf32>
    %109 = vector.extract_strided_slice %108 {offsets = [0, 0], sizes = [2, 64], strides = [1, 1]} : vector<2x256xf32> to vector<2x64xf32>
    %110 = vector.extract_strided_slice %108 {offsets = [0, 64], sizes = [2, 64], strides = [1, 1]} : vector<2x256xf32> to vector<2x64xf32>
    %111 = vector.extract_strided_slice %108 {offsets = [0, 128], sizes = [2, 64], strides = [1, 1]} : vector<2x256xf32> to vector<2x64xf32>
    %112 = vector.extract_strided_slice %108 {offsets = [0, 192], sizes = [2, 64], strides = [1, 1]} : vector<2x256xf32> to vector<2x64xf32>
    %113 = arith.mulf %110, %89 : vector<2x64xf32>
    %114 = arith.mulf %109, %111 : vector<2x64xf32>
    %115 = arith.addf %113, %114 : vector<2x64xf32>
    %116 = math.tanh %115 : vector<2x64xf32>
    %117 = arith.mulf %112, %116 : vector<2x64xf32>
    %118 = arith.truncf %117 : vector<2x64xf32> to vector<2x64xbf16>
    %c6_37 = arith.constant 6 : index
    %c0_38 = arith.constant 0 : index
    %119 = vector.load %arg13[%c6_37, %c0_38] : memref<32x64xbf16, #tpu.memory_space<vmem>>, vector<2x64xbf16>
    tpu.vector_store %arg13[%c6_37, %c0_38], %118 {strides = array<i32>} : memref<32x64xbf16, #tpu.memory_space<vmem>>, vector<2x64xbf16>,
    %c24 = arith.constant 24 : index
    %c0_39 = arith.constant 0 : index
    %120 = vector.load %arg14[%c24, %c0_39] : memref<32x64xbf16, #tpu.memory_space<vmem>>, vector<2x64xbf16>
    tpu.vector_store %arg14[%c24, %c0_39], %118 {strides = array<i32>} : memref<32x64xbf16, #tpu.memory_space<vmem>>, vector<2x64xbf16>,
    %c8 = arith.constant 8 : index
    %c0_40 = arith.constant 0 : index
    %121 = vector.load %arg12[%c8, %c0_40] : memref<32x256xf32, #tpu.memory_space<vmem>>, vector<2x256xf32>
    %cst_41 = arith.constant dense<0.000000e+00> : vector<2x256xf32>
    %122 = tpu.matmul %118, %14, %cst_41 {dimension_numbers = #tpu.dot_dimension_numbers<[1], [0], [0], [1], [0, 0, 1, 1], [], []>} : vector<2x64xbf16>, vector<64x256xbf16>, vector<2x256xf32> -> vector<2x256xf32>
    %123 = arith.addf %121, %122 : vector<2x256xf32>
    %124 = arith.addf %123, %123 : vector<2x256xf32>
    %125 = arith.select %5, %124, %123 : vector<2x256xi1>, vector<2x256xf32>
    %126 = arith.negf %125 : vector<2x256xf32>
    %127 = math.exp %126 : vector<2x256xf32>
    %cst_42 = arith.constant 1.000000e+00 : f32
    %128 = vector.broadcast %cst_42 : f32 to vector<2x256xf32>
    %129 = arith.addf %128, %127 : vector<2x256xf32>
    %130 = arith.divf %128, %129 : vector<2x256xf32>
    %131 = arith.addf %130, %130 : vector<2x256xf32>
    %cst_43 = arith.constant 1.000000e+00 : f32
    %132 = vector.broadcast %cst_43 : f32 to vector<2x256xf32>
    %133 = arith.subf %131, %132 : vector<2x256xf32>
    %134 = arith.select %5, %133, %130 : vector<2x256xi1>, vector<2x256xf32>
    %135 = vector.extract_strided_slice %134 {offsets = [0, 0], sizes = [2, 64], strides = [1, 1]} : vector<2x256xf32> to vector<2x64xf32>
    %136 = vector.extract_strided_slice %134 {offsets = [0, 64], sizes = [2, 64], strides = [1, 1]} : vector<2x256xf32> to vector<2x64xf32>
    %137 = vector.extract_strided_slice %134 {offsets = [0, 128], sizes = [2, 64], strides = [1, 1]} : vector<2x256xf32> to vector<2x64xf32>
    %138 = vector.extract_strided_slice %134 {offsets = [0, 192], sizes = [2, 64], strides = [1, 1]} : vector<2x256xf32> to vector<2x64xf32>
    %139 = arith.mulf %136, %115 : vector<2x64xf32>
    %140 = arith.mulf %135, %137 : vector<2x64xf32>
    %141 = arith.addf %139, %140 : vector<2x64xf32>
    %142 = math.tanh %141 : vector<2x64xf32>
    %143 = arith.mulf %138, %142 : vector<2x64xf32>
    %144 = arith.truncf %143 : vector<2x64xf32> to vector<2x64xbf16>
    %c8_44 = arith.constant 8 : index
    %c0_45 = arith.constant 0 : index
    %145 = vector.load %arg13[%c8_44, %c0_45] : memref<32x64xbf16, #tpu.memory_space<vmem>>, vector<2x64xbf16>
    tpu.vector_store %arg13[%c8_44, %c0_45], %144 {strides = array<i32>} : memref<32x64xbf16, #tpu.memory_space<vmem>>, vector<2x64xbf16>,
    %c22 = arith.constant 22 : index
    %c0_46 = arith.constant 0 : index
    %146 = vector.load %arg14[%c22, %c0_46] : memref<32x64xbf16, #tpu.memory_space<vmem>>, vector<2x64xbf16>
    tpu.vector_store %arg14[%c22, %c0_46], %144 {strides = array<i32>} : memref<32x64xbf16, #tpu.memory_space<vmem>>, vector<2x64xbf16>,
    %c10 = arith.constant 10 : index
    %c0_47 = arith.constant 0 : index
    %147 = vector.load %arg12[%c10, %c0_47] : memref<32x256xf32, #tpu.memory_space<vmem>>, vector<2x256xf32>
    %cst_48 = arith.constant dense<0.000000e+00> : vector<2x256xf32>
    %148 = tpu.matmul %144, %14, %cst_48 {dimension_numbers = #tpu.dot_dimension_numbers<[1], [0], [0], [1], [0, 0, 1, 1], [], []>} : vector<2x64xbf16>, vector<64x256xbf16>, vector<2x256xf32> -> vector<2x256xf32>
    %149 = arith.addf %147, %148 : vector<2x256xf32>
    %150 = arith.addf %149, %149 : vector<2x256xf32>
    %151 = arith.select %5, %150, %149 : vector<2x256xi1>, vector<2x256xf32>
    %152 = arith.negf %151 : vector<2x256xf32>
    %153 = math.exp %152 : vector<2x256xf32>
    %cst_49 = arith.constant 1.000000e+00 : f32
    %154 = vector.broadcast %cst_49 : f32 to vector<2x256xf32>
    %155 = arith.addf %154, %153 : vector<2x256xf32>
    %156 = arith.divf %154, %155 : vector<2x256xf32>
    %157 = arith.addf %156, %156 : vector<2x256xf32>
    %cst_50 = arith.constant 1.000000e+00 : f32
    %158 = vector.broadcast %cst_50 : f32 to vector<2x256xf32>
    %159 = arith.subf %157, %158 : vector<2x256xf32>
    %160 = arith.select %5, %159, %156 : vector<2x256xi1>, vector<2x256xf32>
    %161 = vector.extract_strided_slice %160 {offsets = [0, 0], sizes = [2, 64], strides = [1, 1]} : vector<2x256xf32> to vector<2x64xf32>
    %162 = vector.extract_strided_slice %160 {offsets = [0, 64], sizes = [2, 64], strides = [1, 1]} : vector<2x256xf32> to vector<2x64xf32>
    %163 = vector.extract_strided_slice %160 {offsets = [0, 128], sizes = [2, 64], strides = [1, 1]} : vector<2x256xf32> to vector<2x64xf32>
    %164 = vector.extract_strided_slice %160 {offsets = [0, 192], sizes = [2, 64], strides = [1, 1]} : vector<2x256xf32> to vector<2x64xf32>
    %165 = arith.mulf %162, %141 : vector<2x64xf32>
    %166 = arith.mulf %161, %163 : vector<2x64xf32>
    %167 = arith.addf %165, %166 : vector<2x64xf32>
    %168 = math.tanh %167 : vector<2x64xf32>
    %169 = arith.mulf %164, %168 : vector<2x64xf32>
    %170 = arith.truncf %169 : vector<2x64xf32> to vector<2x64xbf16>
    %c10_51 = arith.constant 10 : index
    %c0_52 = arith.constant 0 : index
    %171 = vector.load %arg13[%c10_51, %c0_52] : memref<32x64xbf16, #tpu.memory_space<vmem>>, vector<2x64xbf16>
    tpu.vector_store %arg13[%c10_51, %c0_52], %170 {strides = array<i32>} : memref<32x64xbf16, #tpu.memory_space<vmem>>, vector<2x64xbf16>,
    %c20 = arith.constant 20 : index
    %c0_53 = arith.constant 0 : index
    %172 = vector.load %arg14[%c20, %c0_53] : memref<32x64xbf16, #tpu.memory_space<vmem>>, vector<2x64xbf16>
    tpu.vector_store %arg14[%c20, %c0_53], %170 {strides = array<i32>} : memref<32x64xbf16, #tpu.memory_space<vmem>>, vector<2x64xbf16>,
    %c12 = arith.constant 12 : index
    %c0_54 = arith.constant 0 : index
    %173 = vector.load %arg12[%c12, %c0_54] : memref<32x256xf32, #tpu.memory_space<vmem>>, vector<2x256xf32>
    %cst_55 = arith.constant dense<0.000000e+00> : vector<2x256xf32>
    %174 = tpu.matmul %170, %14, %cst_55 {dimension_numbers = #tpu.dot_dimension_numbers<[1], [0], [0], [1], [0, 0, 1, 1], [], []>} : vector<2x64xbf16>, vector<64x256xbf16>, vector<2x256xf32> -> vector<2x256xf32>
    %175 = arith.addf %173, %174 : vector<2x256xf32>
    %176 = arith.addf %175, %175 : vector<2x256xf32>
    %177 = arith.select %5, %176, %175 : vector<2x256xi1>, vector<2x256xf32>
    %178 = arith.negf %177 : vector<2x256xf32>
    %179 = math.exp %178 : vector<2x256xf32>
    %cst_56 = arith.constant 1.000000e+00 : f32
    %180 = vector.broadcast %cst_56 : f32 to vector<2x256xf32>
    %181 = arith.addf %180, %179 : vector<2x256xf32>
    %182 = arith.divf %180, %181 : vector<2x256xf32>
    %183 = arith.addf %182, %182 : vector<2x256xf32>
    %cst_57 = arith.constant 1.000000e+00 : f32
    %184 = vector.broadcast %cst_57 : f32 to vector<2x256xf32>
    %185 = arith.subf %183, %184 : vector<2x256xf32>
    %186 = arith.select %5, %185, %182 : vector<2x256xi1>, vector<2x256xf32>
    %187 = vector.extract_strided_slice %186 {offsets = [0, 0], sizes = [2, 64], strides = [1, 1]} : vector<2x256xf32> to vector<2x64xf32>
    %188 = vector.extract_strided_slice %186 {offsets = [0, 64], sizes = [2, 64], strides = [1, 1]} : vector<2x256xf32> to vector<2x64xf32>
    %189 = vector.extract_strided_slice %186 {offsets = [0, 128], sizes = [2, 64], strides = [1, 1]} : vector<2x256xf32> to vector<2x64xf32>
    %190 = vector.extract_strided_slice %186 {offsets = [0, 192], sizes = [2, 64], strides = [1, 1]} : vector<2x256xf32> to vector<2x64xf32>
    %191 = arith.mulf %188, %167 : vector<2x64xf32>
    %192 = arith.mulf %187, %189 : vector<2x64xf32>
    %193 = arith.addf %191, %192 : vector<2x64xf32>
    %194 = math.tanh %193 : vector<2x64xf32>
    %195 = arith.mulf %190, %194 : vector<2x64xf32>
    %196 = arith.truncf %195 : vector<2x64xf32> to vector<2x64xbf16>
    %c12_58 = arith.constant 12 : index
    %c0_59 = arith.constant 0 : index
    %197 = vector.load %arg13[%c12_58, %c0_59] : memref<32x64xbf16, #tpu.memory_space<vmem>>, vector<2x64xbf16>
    tpu.vector_store %arg13[%c12_58, %c0_59], %196 {strides = array<i32>} : memref<32x64xbf16, #tpu.memory_space<vmem>>, vector<2x64xbf16>,
    %c18 = arith.constant 18 : index
    %c0_60 = arith.constant 0 : index
    %198 = vector.load %arg14[%c18, %c0_60] : memref<32x64xbf16, #tpu.memory_space<vmem>>, vector<2x64xbf16>
    tpu.vector_store %arg14[%c18, %c0_60], %196 {strides = array<i32>} : memref<32x64xbf16, #tpu.memory_space<vmem>>, vector<2x64xbf16>,
    %c14 = arith.constant 14 : index
    %c0_61 = arith.constant 0 : index
    %199 = vector.load %arg12[%c14, %c0_61] : memref<32x256xf32, #tpu.memory_space<vmem>>, vector<2x256xf32>
    %cst_62 = arith.constant dense<0.000000e+00> : vector<2x256xf32>
    %200 = tpu.matmul %196, %14, %cst_62 {dimension_numbers = #tpu.dot_dimension_numbers<[1], [0], [0], [1], [0, 0, 1, 1], [], []>} : vector<2x64xbf16>, vector<64x256xbf16>, vector<2x256xf32> -> vector<2x256xf32>
    %201 = arith.addf %199, %200 : vector<2x256xf32>
    %202 = arith.addf %201, %201 : vector<2x256xf32>
    %203 = arith.select %5, %202, %201 : vector<2x256xi1>, vector<2x256xf32>
    %204 = arith.negf %203 : vector<2x256xf32>
    %205 = math.exp %204 : vector<2x256xf32>
    %cst_63 = arith.constant 1.000000e+00 : f32
    %206 = vector.broadcast %cst_63 : f32 to vector<2x256xf32>
    %207 = arith.addf %206, %205 : vector<2x256xf32>
    %208 = arith.divf %206, %207 : vector<2x256xf32>
    %209 = arith.addf %208, %208 : vector<2x256xf32>
    %cst_64 = arith.constant 1.000000e+00 : f32
    %210 = vector.broadcast %cst_64 : f32 to vector<2x256xf32>
    %211 = arith.subf %209, %210 : vector<2x256xf32>
    %212 = arith.select %5, %211, %208 : vector<2x256xi1>, vector<2x256xf32>
    %213 = vector.extract_strided_slice %212 {offsets = [0, 0], sizes = [2, 64], strides = [1, 1]} : vector<2x256xf32> to vector<2x64xf32>
    %214 = vector.extract_strided_slice %212 {offsets = [0, 64], sizes = [2, 64], strides = [1, 1]} : vector<2x256xf32> to vector<2x64xf32>
    %215 = vector.extract_strided_slice %212 {offsets = [0, 128], sizes = [2, 64], strides = [1, 1]} : vector<2x256xf32> to vector<2x64xf32>
    %216 = vector.extract_strided_slice %212 {offsets = [0, 192], sizes = [2, 64], strides = [1, 1]} : vector<2x256xf32> to vector<2x64xf32>
    %217 = arith.mulf %214, %193 : vector<2x64xf32>
    %218 = arith.mulf %213, %215 : vector<2x64xf32>
    %219 = arith.addf %217, %218 : vector<2x64xf32>
    %220 = math.tanh %219 : vector<2x64xf32>
    %221 = arith.mulf %216, %220 : vector<2x64xf32>
    %222 = arith.truncf %221 : vector<2x64xf32> to vector<2x64xbf16>
    %c14_65 = arith.constant 14 : index
    %c0_66 = arith.constant 0 : index
    %223 = vector.load %arg13[%c14_65, %c0_66] : memref<32x64xbf16, #tpu.memory_space<vmem>>, vector<2x64xbf16>
    tpu.vector_store %arg13[%c14_65, %c0_66], %222 {strides = array<i32>} : memref<32x64xbf16, #tpu.memory_space<vmem>>, vector<2x64xbf16>,
    %c16 = arith.constant 16 : index
    %c0_67 = arith.constant 0 : index
    %224 = vector.load %arg14[%c16, %c0_67] : memref<32x64xbf16, #tpu.memory_space<vmem>>, vector<2x64xbf16>
    tpu.vector_store %arg14[%c16, %c0_67], %222 {strides = array<i32>} : memref<32x64xbf16, #tpu.memory_space<vmem>>, vector<2x64xbf16>,
    %c16_68 = arith.constant 16 : index
    %c0_69 = arith.constant 0 : index
    %225 = vector.load %arg12[%c16_68, %c0_69] : memref<32x256xf32, #tpu.memory_space<vmem>>, vector<2x256xf32>
    %cst_70 = arith.constant dense<0.000000e+00> : vector<2x256xf32>
    %226 = tpu.matmul %222, %14, %cst_70 {dimension_numbers = #tpu.dot_dimension_numbers<[1], [0], [0], [1], [0, 0, 1, 1], [], []>} : vector<2x64xbf16>, vector<64x256xbf16>, vector<2x256xf32> -> vector<2x256xf32>
    %227 = arith.addf %225, %226 : vector<2x256xf32>
    %228 = arith.addf %227, %227 : vector<2x256xf32>
    %229 = arith.select %5, %228, %227 : vector<2x256xi1>, vector<2x256xf32>
    %230 = arith.negf %229 : vector<2x256xf32>
    %231 = math.exp %230 : vector<2x256xf32>
    %cst_71 = arith.constant 1.000000e+00 : f32
    %232 = vector.broadcast %cst_71 : f32 to vector<2x256xf32>
    %233 = arith.addf %232, %231 : vector<2x256xf32>
    %234 = arith.divf %232, %233 : vector<2x256xf32>
    %235 = arith.addf %234, %234 : vector<2x256xf32>
    %cst_72 = arith.constant 1.000000e+00 : f32
    %236 = vector.broadcast %cst_72 : f32 to vector<2x256xf32>
    %237 = arith.subf %235, %236 : vector<2x256xf32>
    %238 = arith.select %5, %237, %234 : vector<2x256xi1>, vector<2x256xf32>
    %239 = vector.extract_strided_slice %238 {offsets = [0, 0], sizes = [2, 64], strides = [1, 1]} : vector<2x256xf32> to vector<2x64xf32>
    %240 = vector.extract_strided_slice %238 {offsets = [0, 64], sizes = [2, 64], strides = [1, 1]} : vector<2x256xf32> to vector<2x64xf32>
    %241 = vector.extract_strided_slice %238 {offsets = [0, 128], sizes = [2, 64], strides = [1, 1]} : vector<2x256xf32> to vector<2x64xf32>
    %242 = vector.extract_strided_slice %238 {offsets = [0, 192], sizes = [2, 64], strides = [1, 1]} : vector<2x256xf32> to vector<2x64xf32>
    %243 = arith.mulf %240, %219 : vector<2x64xf32>
    %244 = arith.mulf %239, %241 : vector<2x64xf32>
    %245 = arith.addf %243, %244 : vector<2x64xf32>
    %246 = math.tanh %245 : vector<2x64xf32>
    %247 = arith.mulf %242, %246 : vector<2x64xf32>
    %248 = arith.truncf %247 : vector<2x64xf32> to vector<2x64xbf16>
    %c16_73 = arith.constant 16 : index
    %c0_74 = arith.constant 0 : index
    %249 = vector.load %arg13[%c16_73, %c0_74] : memref<32x64xbf16, #tpu.memory_space<vmem>>, vector<2x64xbf16>
    tpu.vector_store %arg13[%c16_73, %c0_74], %248 {strides = array<i32>} : memref<32x64xbf16, #tpu.memory_space<vmem>>, vector<2x64xbf16>,
    %c14_75 = arith.constant 14 : index
    %c0_76 = arith.constant 0 : index
    %250 = vector.load %arg14[%c14_75, %c0_76] : memref<32x64xbf16, #tpu.memory_space<vmem>>, vector<2x64xbf16>
    tpu.vector_store %arg14[%c14_75, %c0_76], %248 {strides = array<i32>} : memref<32x64xbf16, #tpu.memory_space<vmem>>, vector<2x64xbf16>,
    %c18_77 = arith.constant 18 : index
    %c0_78 = arith.constant 0 : index
    %251 = vector.load %arg12[%c18_77, %c0_78] : memref<32x256xf32, #tpu.memory_space<vmem>>, vector<2x256xf32>
    %cst_79 = arith.constant dense<0.000000e+00> : vector<2x256xf32>
    %252 = tpu.matmul %248, %14, %cst_79 {dimension_numbers = #tpu.dot_dimension_numbers<[1], [0], [0], [1], [0, 0, 1, 1], [], []>} : vector<2x64xbf16>, vector<64x256xbf16>, vector<2x256xf32> -> vector<2x256xf32>
    %253 = arith.addf %251, %252 : vector<2x256xf32>
    %254 = arith.addf %253, %253 : vector<2x256xf32>
    %255 = arith.select %5, %254, %253 : vector<2x256xi1>, vector<2x256xf32>
    %256 = arith.negf %255 : vector<2x256xf32>
    %257 = math.exp %256 : vector<2x256xf32>
    %cst_80 = arith.constant 1.000000e+00 : f32
    %258 = vector.broadcast %cst_80 : f32 to vector<2x256xf32>
    %259 = arith.addf %258, %257 : vector<2x256xf32>
    %260 = arith.divf %258, %259 : vector<2x256xf32>
    %261 = arith.addf %260, %260 : vector<2x256xf32>
    %cst_81 = arith.constant 1.000000e+00 : f32
    %262 = vector.broadcast %cst_81 : f32 to vector<2x256xf32>
    %263 = arith.subf %261, %262 : vector<2x256xf32>
    %264 = arith.select %5, %263, %260 : vector<2x256xi1>, vector<2x256xf32>
    %265 = vector.extract_strided_slice %264 {offsets = [0, 0], sizes = [2, 64], strides = [1, 1]} : vector<2x256xf32> to vector<2x64xf32>
    %266 = vector.extract_strided_slice %264 {offsets = [0, 64], sizes = [2, 64], strides = [1, 1]} : vector<2x256xf32> to vector<2x64xf32>
    %267 = vector.extract_strided_slice %264 {offsets = [0, 128], sizes = [2, 64], strides = [1, 1]} : vector<2x256xf32> to vector<2x64xf32>
    %268 = vector.extract_strided_slice %264 {offsets = [0, 192], sizes = [2, 64], strides = [1, 1]} : vector<2x256xf32> to vector<2x64xf32>
    %269 = arith.mulf %266, %245 : vector<2x64xf32>
    %270 = arith.mulf %265, %267 : vector<2x64xf32>
    %271 = arith.addf %269, %270 : vector<2x64xf32>
    %272 = math.tanh %271 : vector<2x64xf32>
    %273 = arith.mulf %268, %272 : vector<2x64xf32>
    %274 = arith.truncf %273 : vector<2x64xf32> to vector<2x64xbf16>
    %c18_82 = arith.constant 18 : index
    %c0_83 = arith.constant 0 : index
    %275 = vector.load %arg13[%c18_82, %c0_83] : memref<32x64xbf16, #tpu.memory_space<vmem>>, vector<2x64xbf16>
    tpu.vector_store %arg13[%c18_82, %c0_83], %274 {strides = array<i32>} : memref<32x64xbf16, #tpu.memory_space<vmem>>, vector<2x64xbf16>,
    %c12_84 = arith.constant 12 : index
    %c0_85 = arith.constant 0 : index
    %276 = vector.load %arg14[%c12_84, %c0_85] : memref<32x64xbf16, #tpu.memory_space<vmem>>, vector<2x64xbf16>
    tpu.vector_store %arg14[%c12_84, %c0_85], %274 {strides = array<i32>} : memref<32x64xbf16, #tpu.memory_space<vmem>>, vector<2x64xbf16>,
    %c20_86 = arith.constant 20 : index
    %c0_87 = arith.constant 0 : index
    %277 = vector.load %arg12[%c20_86, %c0_87] : memref<32x256xf32, #tpu.memory_space<vmem>>, vector<2x256xf32>
    %cst_88 = arith.constant dense<0.000000e+00> : vector<2x256xf32>
    %278 = tpu.matmul %274, %14, %cst_88 {dimension_numbers = #tpu.dot_dimension_numbers<[1], [0], [0], [1], [0, 0, 1, 1], [], []>} : vector<2x64xbf16>, vector<64x256xbf16>, vector<2x256xf32> -> vector<2x256xf32>
    %279 = arith.addf %277, %278 : vector<2x256xf32>
    %280 = arith.addf %279, %279 : vector<2x256xf32>
    %281 = arith.select %5, %280, %279 : vector<2x256xi1>, vector<2x256xf32>
    %282 = arith.negf %281 : vector<2x256xf32>
    %283 = math.exp %282 : vector<2x256xf32>
    %cst_89 = arith.constant 1.000000e+00 : f32
    %284 = vector.broadcast %cst_89 : f32 to vector<2x256xf32>
    %285 = arith.addf %284, %283 : vector<2x256xf32>
    %286 = arith.divf %284, %285 : vector<2x256xf32>
    %287 = arith.addf %286, %286 : vector<2x256xf32>
    %cst_90 = arith.constant 1.000000e+00 : f32
    %288 = vector.broadcast %cst_90 : f32 to vector<2x256xf32>
    %289 = arith.subf %287, %288 : vector<2x256xf32>
    %290 = arith.select %5, %289, %286 : vector<2x256xi1>, vector<2x256xf32>
    %291 = vector.extract_strided_slice %290 {offsets = [0, 0], sizes = [2, 64], strides = [1, 1]} : vector<2x256xf32> to vector<2x64xf32>
    %292 = vector.extract_strided_slice %290 {offsets = [0, 64], sizes = [2, 64], strides = [1, 1]} : vector<2x256xf32> to vector<2x64xf32>
    %293 = vector.extract_strided_slice %290 {offsets = [0, 128], sizes = [2, 64], strides = [1, 1]} : vector<2x256xf32> to vector<2x64xf32>
    %294 = vector.extract_strided_slice %290 {offsets = [0, 192], sizes = [2, 64], strides = [1, 1]} : vector<2x256xf32> to vector<2x64xf32>
    %295 = arith.mulf %292, %271 : vector<2x64xf32>
    %296 = arith.mulf %291, %293 : vector<2x64xf32>
    %297 = arith.addf %295, %296 : vector<2x64xf32>
    %298 = math.tanh %297 : vector<2x64xf32>
    %299 = arith.mulf %294, %298 : vector<2x64xf32>
    %300 = arith.truncf %299 : vector<2x64xf32> to vector<2x64xbf16>
    %c20_91 = arith.constant 20 : index
    %c0_92 = arith.constant 0 : index
    %301 = vector.load %arg13[%c20_91, %c0_92] : memref<32x64xbf16, #tpu.memory_space<vmem>>, vector<2x64xbf16>
    tpu.vector_store %arg13[%c20_91, %c0_92], %300 {strides = array<i32>} : memref<32x64xbf16, #tpu.memory_space<vmem>>, vector<2x64xbf16>,
    %c10_93 = arith.constant 10 : index
    %c0_94 = arith.constant 0 : index
    %302 = vector.load %arg14[%c10_93, %c0_94] : memref<32x64xbf16, #tpu.memory_space<vmem>>, vector<2x64xbf16>
    tpu.vector_store %arg14[%c10_93, %c0_94], %300 {strides = array<i32>} : memref<32x64xbf16, #tpu.memory_space<vmem>>, vector<2x64xbf16>,
    %c22_95 = arith.constant 22 : index
    %c0_96 = arith.constant 0 : index
    %303 = vector.load %arg12[%c22_95, %c0_96] : memref<32x256xf32, #tpu.memory_space<vmem>>, vector<2x256xf32>
    %cst_97 = arith.constant dense<0.000000e+00> : vector<2x256xf32>
    %304 = tpu.matmul %300, %14, %cst_97 {dimension_numbers = #tpu.dot_dimension_numbers<[1], [0], [0], [1], [0, 0, 1, 1], [], []>} : vector<2x64xbf16>, vector<64x256xbf16>, vector<2x256xf32> -> vector<2x256xf32>
    %305 = arith.addf %303, %304 : vector<2x256xf32>
    %306 = arith.addf %305, %305 : vector<2x256xf32>
    %307 = arith.select %5, %306, %305 : vector<2x256xi1>, vector<2x256xf32>
    %308 = arith.negf %307 : vector<2x256xf32>
    %309 = math.exp %308 : vector<2x256xf32>
    %cst_98 = arith.constant 1.000000e+00 : f32
    %310 = vector.broadcast %cst_98 : f32 to vector<2x256xf32>
    %311 = arith.addf %310, %309 : vector<2x256xf32>
    %312 = arith.divf %310, %311 : vector<2x256xf32>
    %313 = arith.addf %312, %312 : vector<2x256xf32>
    %cst_99 = arith.constant 1.000000e+00 : f32
    %314 = vector.broadcast %cst_99 : f32 to vector<2x256xf32>
    %315 = arith.subf %313, %314 : vector<2x256xf32>
    %316 = arith.select %5, %315, %312 : vector<2x256xi1>, vector<2x256xf32>
    %317 = vector.extract_strided_slice %316 {offsets = [0, 0], sizes = [2, 64], strides = [1, 1]} : vector<2x256xf32> to vector<2x64xf32>
    %318 = vector.extract_strided_slice %316 {offsets = [0, 64], sizes = [2, 64], strides = [1, 1]} : vector<2x256xf32> to vector<2x64xf32>
    %319 = vector.extract_strided_slice %316 {offsets = [0, 128], sizes = [2, 64], strides = [1, 1]} : vector<2x256xf32> to vector<2x64xf32>
    %320 = vector.extract_strided_slice %316 {offsets = [0, 192], sizes = [2, 64], strides = [1, 1]} : vector<2x256xf32> to vector<2x64xf32>
    %321 = arith.mulf %318, %297 : vector<2x64xf32>
    %322 = arith.mulf %317, %319 : vector<2x64xf32>
    %323 = arith.addf %321, %322 : vector<2x64xf32>
    %324 = math.tanh %323 : vector<2x64xf32>
    %325 = arith.mulf %320, %324 : vector<2x64xf32>
    %326 = arith.truncf %325 : vector<2x64xf32> to vector<2x64xbf16>
    %c22_100 = arith.constant 22 : index
    %c0_101 = arith.constant 0 : index
    %327 = vector.load %arg13[%c22_100, %c0_101] : memref<32x64xbf16, #tpu.memory_space<vmem>>, vector<2x64xbf16>
    tpu.vector_store %arg13[%c22_100, %c0_101], %326 {strides = array<i32>} : memref<32x64xbf16, #tpu.memory_space<vmem>>, vector<2x64xbf16>,
    %c8_102 = arith.constant 8 : index
    %c0_103 = arith.constant 0 : index
    %328 = vector.load %arg14[%c8_102, %c0_103] : memref<32x64xbf16, #tpu.memory_space<vmem>>, vector<2x64xbf16>
    tpu.vector_store %arg14[%c8_102, %c0_103], %326 {strides = array<i32>} : memref<32x64xbf16, #tpu.memory_space<vmem>>, vector<2x64xbf16>,
    %c24_104 = arith.constant 24 : index
    %c0_105 = arith.constant 0 : index
    %329 = vector.load %arg12[%c24_104, %c0_105] : memref<32x256xf32, #tpu.memory_space<vmem>>, vector<2x256xf32>
    %cst_106 = arith.constant dense<0.000000e+00> : vector<2x256xf32>
    %330 = tpu.matmul %326, %14, %cst_106 {dimension_numbers = #tpu.dot_dimension_numbers<[1], [0], [0], [1], [0, 0, 1, 1], [], []>} : vector<2x64xbf16>, vector<64x256xbf16>, vector<2x256xf32> -> vector<2x256xf32>
    %331 = arith.addf %329, %330 : vector<2x256xf32>
    %332 = arith.addf %331, %331 : vector<2x256xf32>
    %333 = arith.select %5, %332, %331 : vector<2x256xi1>, vector<2x256xf32>
    %334 = arith.negf %333 : vector<2x256xf32>
    %335 = math.exp %334 : vector<2x256xf32>
    %cst_107 = arith.constant 1.000000e+00 : f32
    %336 = vector.broadcast %cst_107 : f32 to vector<2x256xf32>
    %337 = arith.addf %336, %335 : vector<2x256xf32>
    %338 = arith.divf %336, %337 : vector<2x256xf32>
    %339 = arith.addf %338, %338 : vector<2x256xf32>
    %cst_108 = arith.constant 1.000000e+00 : f32
    %340 = vector.broadcast %cst_108 : f32 to vector<2x256xf32>
    %341 = arith.subf %339, %340 : vector<2x256xf32>
    %342 = arith.select %5, %341, %338 : vector<2x256xi1>, vector<2x256xf32>
    %343 = vector.extract_strided_slice %342 {offsets = [0, 0], sizes = [2, 64], strides = [1, 1]} : vector<2x256xf32> to vector<2x64xf32>
    %344 = vector.extract_strided_slice %342 {offsets = [0, 64], sizes = [2, 64], strides = [1, 1]} : vector<2x256xf32> to vector<2x64xf32>
    %345 = vector.extract_strided_slice %342 {offsets = [0, 128], sizes = [2, 64], strides = [1, 1]} : vector<2x256xf32> to vector<2x64xf32>
    %346 = vector.extract_strided_slice %342 {offsets = [0, 192], sizes = [2, 64], strides = [1, 1]} : vector<2x256xf32> to vector<2x64xf32>
    %347 = arith.mulf %344, %323 : vector<2x64xf32>
    %348 = arith.mulf %343, %345 : vector<2x64xf32>
    %349 = arith.addf %347, %348 : vector<2x64xf32>
    %350 = math.tanh %349 : vector<2x64xf32>
    %351 = arith.mulf %346, %350 : vector<2x64xf32>
    %352 = arith.truncf %351 : vector<2x64xf32> to vector<2x64xbf16>
    %c24_109 = arith.constant 24 : index
    %c0_110 = arith.constant 0 : index
    %353 = vector.load %arg13[%c24_109, %c0_110] : memref<32x64xbf16, #tpu.memory_space<vmem>>, vector<2x64xbf16>
    tpu.vector_store %arg13[%c24_109, %c0_110], %352 {strides = array<i32>} : memref<32x64xbf16, #tpu.memory_space<vmem>>, vector<2x64xbf16>,
    %c6_111 = arith.constant 6 : index
    %c0_112 = arith.constant 0 : index
    %354 = vector.load %arg14[%c6_111, %c0_112] : memref<32x64xbf16, #tpu.memory_space<vmem>>, vector<2x64xbf16>
    tpu.vector_store %arg14[%c6_111, %c0_112], %352 {strides = array<i32>} : memref<32x64xbf16, #tpu.memory_space<vmem>>, vector<2x64xbf16>,
    %c26_113 = arith.constant 26 : index
    %c0_114 = arith.constant 0 : index
    %355 = vector.load %arg12[%c26_113, %c0_114] : memref<32x256xf32, #tpu.memory_space<vmem>>, vector<2x256xf32>
    %cst_115 = arith.constant dense<0.000000e+00> : vector<2x256xf32>
    %356 = tpu.matmul %352, %14, %cst_115 {dimension_numbers = #tpu.dot_dimension_numbers<[1], [0], [0], [1], [0, 0, 1, 1], [], []>} : vector<2x64xbf16>, vector<64x256xbf16>, vector<2x256xf32> -> vector<2x256xf32>
    %357 = arith.addf %355, %356 : vector<2x256xf32>
    %358 = arith.addf %357, %357 : vector<2x256xf32>
    %359 = arith.select %5, %358, %357 : vector<2x256xi1>, vector<2x256xf32>
    %360 = arith.negf %359 : vector<2x256xf32>
    %361 = math.exp %360 : vector<2x256xf32>
    %cst_116 = arith.constant 1.000000e+00 : f32
    %362 = vector.broadcast %cst_116 : f32 to vector<2x256xf32>
    %363 = arith.addf %362, %361 : vector<2x256xf32>
    %364 = arith.divf %362, %363 : vector<2x256xf32>
    %365 = arith.addf %364, %364 : vector<2x256xf32>
    %cst_117 = arith.constant 1.000000e+00 : f32
    %366 = vector.broadcast %cst_117 : f32 to vector<2x256xf32>
    %367 = arith.subf %365, %366 : vector<2x256xf32>
    %368 = arith.select %5, %367, %364 : vector<2x256xi1>, vector<2x256xf32>
    %369 = vector.extract_strided_slice %368 {offsets = [0, 0], sizes = [2, 64], strides = [1, 1]} : vector<2x256xf32> to vector<2x64xf32>
    %370 = vector.extract_strided_slice %368 {offsets = [0, 64], sizes = [2, 64], strides = [1, 1]} : vector<2x256xf32> to vector<2x64xf32>
    %371 = vector.extract_strided_slice %368 {offsets = [0, 128], sizes = [2, 64], strides = [1, 1]} : vector<2x256xf32> to vector<2x64xf32>
    %372 = vector.extract_strided_slice %368 {offsets = [0, 192], sizes = [2, 64], strides = [1, 1]} : vector<2x256xf32> to vector<2x64xf32>
    %373 = arith.mulf %370, %349 : vector<2x64xf32>
    %374 = arith.mulf %369, %371 : vector<2x64xf32>
    %375 = arith.addf %373, %374 : vector<2x64xf32>
    %376 = math.tanh %375 : vector<2x64xf32>
    %377 = arith.mulf %372, %376 : vector<2x64xf32>
    %378 = arith.truncf %377 : vector<2x64xf32> to vector<2x64xbf16>
    %c26_118 = arith.constant 26 : index
    %c0_119 = arith.constant 0 : index
    %379 = vector.load %arg13[%c26_118, %c0_119] : memref<32x64xbf16, #tpu.memory_space<vmem>>, vector<2x64xbf16>
    tpu.vector_store %arg13[%c26_118, %c0_119], %378 {strides = array<i32>} : memref<32x64xbf16, #tpu.memory_space<vmem>>, vector<2x64xbf16>,
    %c4_120 = arith.constant 4 : index
    %c0_121 = arith.constant 0 : index
    %380 = vector.load %arg14[%c4_120, %c0_121] : memref<32x64xbf16, #tpu.memory_space<vmem>>, vector<2x64xbf16>
    tpu.vector_store %arg14[%c4_120, %c0_121], %378 {strides = array<i32>} : memref<32x64xbf16, #tpu.memory_space<vmem>>, vector<2x64xbf16>,
    %c28_122 = arith.constant 28 : index
    %c0_123 = arith.constant 0 : index
    %381 = vector.load %arg12[%c28_122, %c0_123] : memref<32x256xf32, #tpu.memory_space<vmem>>, vector<2x256xf32>
    %cst_124 = arith.constant dense<0.000000e+00> : vector<2x256xf32>
    %382 = tpu.matmul %378, %14, %cst_124 {dimension_numbers = #tpu.dot_dimension_numbers<[1], [0], [0], [1], [0, 0, 1, 1], [], []>} : vector<2x64xbf16>, vector<64x256xbf16>, vector<2x256xf32> -> vector<2x256xf32>
    %383 = arith.addf %381, %382 : vector<2x256xf32>
    %384 = arith.addf %383, %383 : vector<2x256xf32>
    %385 = arith.select %5, %384, %383 : vector<2x256xi1>, vector<2x256xf32>
    %386 = arith.negf %385 : vector<2x256xf32>
    %387 = math.exp %386 : vector<2x256xf32>
    %cst_125 = arith.constant 1.000000e+00 : f32
    %388 = vector.broadcast %cst_125 : f32 to vector<2x256xf32>
    %389 = arith.addf %388, %387 : vector<2x256xf32>
    %390 = arith.divf %388, %389 : vector<2x256xf32>
    %391 = arith.addf %390, %390 : vector<2x256xf32>
    %cst_126 = arith.constant 1.000000e+00 : f32
    %392 = vector.broadcast %cst_126 : f32 to vector<2x256xf32>
    %393 = arith.subf %391, %392 : vector<2x256xf32>
    %394 = arith.select %5, %393, %390 : vector<2x256xi1>, vector<2x256xf32>
    %395 = vector.extract_strided_slice %394 {offsets = [0, 0], sizes = [2, 64], strides = [1, 1]} : vector<2x256xf32> to vector<2x64xf32>
    %396 = vector.extract_strided_slice %394 {offsets = [0, 64], sizes = [2, 64], strides = [1, 1]} : vector<2x256xf32> to vector<2x64xf32>
    %397 = vector.extract_strided_slice %394 {offsets = [0, 128], sizes = [2, 64], strides = [1, 1]} : vector<2x256xf32> to vector<2x64xf32>
    %398 = vector.extract_strided_slice %394 {offsets = [0, 192], sizes = [2, 64], strides = [1, 1]} : vector<2x256xf32> to vector<2x64xf32>
    %399 = arith.mulf %396, %375 : vector<2x64xf32>
    %400 = arith.mulf %395, %397 : vector<2x64xf32>
    %401 = arith.addf %399, %400 : vector<2x64xf32>
    %402 = math.tanh %401 : vector<2x64xf32>
    %403 = arith.mulf %398, %402 : vector<2x64xf32>
    %404 = arith.truncf %403 : vector<2x64xf32> to vector<2x64xbf16>
    %c28_127 = arith.constant 28 : index
    %c0_128 = arith.constant 0 : index
    %405 = vector.load %arg13[%c28_127, %c0_128] : memref<32x64xbf16, #tpu.memory_space<vmem>>, vector<2x64xbf16>
    tpu.vector_store %arg13[%c28_127, %c0_128], %404 {strides = array<i32>} : memref<32x64xbf16, #tpu.memory_space<vmem>>, vector<2x64xbf16>,
    %c2_129 = arith.constant 2 : index
    %c0_130 = arith.constant 0 : index
    %406 = vector.load %arg14[%c2_129, %c0_130] : memref<32x64xbf16, #tpu.memory_space<vmem>>, vector<2x64xbf16>
    tpu.vector_store %arg14[%c2_129, %c0_130], %404 {strides = array<i32>} : memref<32x64xbf16, #tpu.memory_space<vmem>>, vector<2x64xbf16>,
    %c30_131 = arith.constant 30 : index
    %c0_132 = arith.constant 0 : index
    %407 = vector.load %arg12[%c30_131, %c0_132] : memref<32x256xf32, #tpu.memory_space<vmem>>, vector<2x256xf32>
    %cst_133 = arith.constant dense<0.000000e+00> : vector<2x256xf32>
    %408 = tpu.matmul %404, %14, %cst_133 {dimension_numbers = #tpu.dot_dimension_numbers<[1], [0], [0], [1], [0, 0, 1, 1], [], []>} : vector<2x64xbf16>, vector<64x256xbf16>, vector<2x256xf32> -> vector<2x256xf32>
    %409 = arith.addf %407, %408 : vector<2x256xf32>
    %410 = arith.addf %409, %409 : vector<2x256xf32>
    %411 = arith.select %5, %410, %409 : vector<2x256xi1>, vector<2x256xf32>
    %412 = arith.negf %411 : vector<2x256xf32>
    %413 = math.exp %412 : vector<2x256xf32>
    %cst_134 = arith.constant 1.000000e+00 : f32
    %414 = vector.broadcast %cst_134 : f32 to vector<2x256xf32>
    %415 = arith.addf %414, %413 : vector<2x256xf32>
    %416 = arith.divf %414, %415 : vector<2x256xf32>
    %417 = arith.addf %416, %416 : vector<2x256xf32>
    %cst_135 = arith.constant 1.000000e+00 : f32
    %418 = vector.broadcast %cst_135 : f32 to vector<2x256xf32>
    %419 = arith.subf %417, %418 : vector<2x256xf32>
    %420 = arith.select %5, %419, %416 : vector<2x256xi1>, vector<2x256xf32>
    %421 = vector.extract_strided_slice %420 {offsets = [0, 0], sizes = [2, 64], strides = [1, 1]} : vector<2x256xf32> to vector<2x64xf32>
    %422 = vector.extract_strided_slice %420 {offsets = [0, 64], sizes = [2, 64], strides = [1, 1]} : vector<2x256xf32> to vector<2x64xf32>
    %423 = vector.extract_strided_slice %420 {offsets = [0, 128], sizes = [2, 64], strides = [1, 1]} : vector<2x256xf32> to vector<2x64xf32>
    %424 = vector.extract_strided_slice %420 {offsets = [0, 192], sizes = [2, 64], strides = [1, 1]} : vector<2x256xf32> to vector<2x64xf32>
    %425 = arith.mulf %422, %401 : vector<2x64xf32>
    %426 = arith.mulf %421, %423 : vector<2x64xf32>
    %427 = arith.addf %425, %426 : vector<2x64xf32>
    %428 = math.tanh %427 : vector<2x64xf32>
    %429 = arith.mulf %424, %428 : vector<2x64xf32>
    %430 = arith.truncf %429 : vector<2x64xf32> to vector<2x64xbf16>
    %c30_136 = arith.constant 30 : index
    %c0_137 = arith.constant 0 : index
    %431 = vector.load %arg13[%c30_136, %c0_137] : memref<32x64xbf16, #tpu.memory_space<vmem>>, vector<2x64xbf16>
    tpu.vector_store %arg13[%c30_136, %c0_137], %430 {strides = array<i32>} : memref<32x64xbf16, #tpu.memory_space<vmem>>, vector<2x64xbf16>,
    %c0_138 = arith.constant 0 : index
    %c0_139 = arith.constant 0 : index
    %432 = vector.load %arg14[%c0_138, %c0_139] : memref<32x64xbf16, #tpu.memory_space<vmem>>, vector<2x64xbf16>
    tpu.vector_store %arg14[%c0_138, %c0_139], %430 {strides = array<i32>} : memref<32x64xbf16, #tpu.memory_space<vmem>>, vector<2x64xbf16>,
    %c0_140 = arith.constant 0 : index
    %c0_141 = arith.constant 0 : index
    %433 = vector.load %arg13[%c0_140, %c0_141] : memref<32x64xbf16, #tpu.memory_space<vmem>>, vector<32x64xbf16>
    %c0_142 = arith.constant 0 : index
    %c0_143 = arith.constant 0 : index
    %434 = vector.load %arg4[%c0_142, %c0_143] : memref<64x256xbf16, #tpu.memory_space<vmem>>, vector<64x256xbf16>
    %cst_144 = arith.constant dense<0.000000e+00> : vector<32x256xf32>
    %435 = tpu.matmul %433, %434, %cst_144 {dimension_numbers = #tpu.dot_dimension_numbers<[1], [0], [0], [1], [0, 0, 1, 1], [], []>} : vector<32x64xbf16>, vector<64x256xbf16>, vector<32x256xf32> -> vector<32x256xf32>
    %c0_145 = arith.constant 0 : index
    %c0_146 = arith.constant 0 : index
    %436 = vector.load %arg14[%c0_145, %c0_146] : memref<32x64xbf16, #tpu.memory_space<vmem>>, vector<32x64xbf16>
    %c0_147 = arith.constant 0 : index
    %c0_148 = arith.constant 0 : index
    %437 = vector.load %arg5[%c0_147, %c0_148] : memref<64x256xbf16, #tpu.memory_space<vmem>>, vector<64x256xbf16>
    %cst_149 = arith.constant dense<0.000000e+00> : vector<32x256xf32>
    %438 = tpu.matmul %436, %437, %cst_149 {dimension_numbers = #tpu.dot_dimension_numbers<[1], [0], [0], [1], [0, 0, 1, 1], [], []>} : vector<32x64xbf16>, vector<64x256xbf16>, vector<32x256xf32> -> vector<32x256xf32>
    %439 = arith.addf %435, %438 : vector<32x256xf32>
    %c0_150 = arith.constant 0 : index
    %c0_151 = arith.constant 0 : index
    %440 = vector.load %arg6[%c0_150, %c0_151] : memref<1x256xf32, #tpu.memory_space<vmem>>, vector<1x256xf32>
    %441 = vector.broadcast %440 : vector<1x256xf32> to vector<32x256xf32>
    %442 = arith.addf %439, %441 : vector<32x256xf32>
    %c0_152 = arith.constant 0 : index
    %c0_153 = arith.constant 0 : index
    %443 = vector.load %arg12[%c0_152, %c0_153] : memref<32x256xf32, #tpu.memory_space<vmem>>, vector<32x256xf32>
    tpu.vector_store %arg12[%c0_152, %c0_153], %442 {strides = array<i32>} : memref<32x256xf32, #tpu.memory_space<vmem>>, vector<32x256xf32>,
    %c0_154 = arith.constant 0 : index
    %c0_155 = arith.constant 0 : index
    %444 = vector.load %arg7[%c0_154, %c0_155] : memref<64x256xbf16, #tpu.memory_space<vmem>>, vector<64x256xbf16>
    %cst_156 = arith.constant 0.000000e+00 : bf16
    %445 = vector.broadcast %cst_156 : bf16 to vector<2x64xbf16>
    %cst_157 = arith.constant 0.000000e+00 : f32
    %446 = vector.broadcast %cst_157 : f32 to vector<2x64xf32>
    %c0_158 = arith.constant 0 : index
    %c0_159 = arith.constant 0 : index
    %447 = vector.load %arg12[%c0_158, %c0_159] : memref<32x256xf32, #tpu.memory_space<vmem>>, vector<2x256xf32>
    %cst_160 = arith.constant dense<0.000000e+00> : vector<2x256xf32>
    %448 = tpu.matmul %445, %444, %cst_160 {dimension_numbers = #tpu.dot_dimension_numbers<[1], [0], [0], [1], [0, 0, 1, 1], [], []>} : vector<2x64xbf16>, vector<64x256xbf16>, vector<2x256xf32> -> vector<2x256xf32>
    %449 = arith.addf %447, %448 : vector<2x256xf32>
    %450 = arith.addf %449, %449 : vector<2x256xf32>
    %451 = arith.select %5, %450, %449 : vector<2x256xi1>, vector<2x256xf32>
    %452 = arith.negf %451 : vector<2x256xf32>
    %453 = math.exp %452 : vector<2x256xf32>
    %cst_161 = arith.constant 1.000000e+00 : f32
    %454 = vector.broadcast %cst_161 : f32 to vector<2x256xf32>
    %455 = arith.addf %454, %453 : vector<2x256xf32>
    %456 = arith.divf %454, %455 : vector<2x256xf32>
    %457 = arith.addf %456, %456 : vector<2x256xf32>
    %cst_162 = arith.constant 1.000000e+00 : f32
    %458 = vector.broadcast %cst_162 : f32 to vector<2x256xf32>
    %459 = arith.subf %457, %458 : vector<2x256xf32>
    %460 = arith.select %5, %459, %456 : vector<2x256xi1>, vector<2x256xf32>
    %461 = vector.extract_strided_slice %460 {offsets = [0, 0], sizes = [2, 64], strides = [1, 1]} : vector<2x256xf32> to vector<2x64xf32>
    %462 = vector.extract_strided_slice %460 {offsets = [0, 64], sizes = [2, 64], strides = [1, 1]} : vector<2x256xf32> to vector<2x64xf32>
    %463 = vector.extract_strided_slice %460 {offsets = [0, 128], sizes = [2, 64], strides = [1, 1]} : vector<2x256xf32> to vector<2x64xf32>
    %464 = vector.extract_strided_slice %460 {offsets = [0, 192], sizes = [2, 64], strides = [1, 1]} : vector<2x256xf32> to vector<2x64xf32>
    %465 = arith.mulf %462, %446 : vector<2x64xf32>
    %466 = arith.mulf %461, %463 : vector<2x64xf32>
    %467 = arith.addf %465, %466 : vector<2x64xf32>
    %468 = math.tanh %467 : vector<2x64xf32>
    %469 = arith.mulf %464, %468 : vector<2x64xf32>
    %470 = arith.truncf %469 : vector<2x64xf32> to vector<2x64xbf16>
    %c0_163 = arith.constant 0 : index
    %c0_164 = arith.constant 0 : index
    %471 = vector.load %arg13[%c0_163, %c0_164] : memref<32x64xbf16, #tpu.memory_space<vmem>>, vector<2x64xbf16>
    tpu.vector_store %arg13[%c0_163, %c0_164], %470 {strides = array<i32>} : memref<32x64xbf16, #tpu.memory_space<vmem>>, vector<2x64xbf16>,
    %c30_165 = arith.constant 30 : index
    %c0_166 = arith.constant 0 : index
    %472 = vector.load %arg14[%c30_165, %c0_166] : memref<32x64xbf16, #tpu.memory_space<vmem>>, vector<2x64xbf16>
    tpu.vector_store %arg14[%c30_165, %c0_166], %470 {strides = array<i32>} : memref<32x64xbf16, #tpu.memory_space<vmem>>, vector<2x64xbf16>,
    %c2_167 = arith.constant 2 : index
    %c0_168 = arith.constant 0 : index
    %473 = vector.load %arg12[%c2_167, %c0_168] : memref<32x256xf32, #tpu.memory_space<vmem>>, vector<2x256xf32>
    %cst_169 = arith.constant dense<0.000000e+00> : vector<2x256xf32>
    %474 = tpu.matmul %470, %444, %cst_169 {dimension_numbers = #tpu.dot_dimension_numbers<[1], [0], [0], [1], [0, 0, 1, 1], [], []>} : vector<2x64xbf16>, vector<64x256xbf16>, vector<2x256xf32> -> vector<2x256xf32>
    %475 = arith.addf %473, %474 : vector<2x256xf32>
    %476 = arith.addf %475, %475 : vector<2x256xf32>
    %477 = arith.select %5, %476, %475 : vector<2x256xi1>, vector<2x256xf32>
    %478 = arith.negf %477 : vector<2x256xf32>
    %479 = math.exp %478 : vector<2x256xf32>
    %cst_170 = arith.constant 1.000000e+00 : f32
    %480 = vector.broadcast %cst_170 : f32 to vector<2x256xf32>
    %481 = arith.addf %480, %479 : vector<2x256xf32>
    %482 = arith.divf %480, %481 : vector<2x256xf32>
    %483 = arith.addf %482, %482 : vector<2x256xf32>
    %cst_171 = arith.constant 1.000000e+00 : f32
    %484 = vector.broadcast %cst_171 : f32 to vector<2x256xf32>
    %485 = arith.subf %483, %484 : vector<2x256xf32>
    %486 = arith.select %5, %485, %482 : vector<2x256xi1>, vector<2x256xf32>
    %487 = vector.extract_strided_slice %486 {offsets = [0, 0], sizes = [2, 64], strides = [1, 1]} : vector<2x256xf32> to vector<2x64xf32>
    %488 = vector.extract_strided_slice %486 {offsets = [0, 64], sizes = [2, 64], strides = [1, 1]} : vector<2x256xf32> to vector<2x64xf32>
    %489 = vector.extract_strided_slice %486 {offsets = [0, 128], sizes = [2, 64], strides = [1, 1]} : vector<2x256xf32> to vector<2x64xf32>
    %490 = vector.extract_strided_slice %486 {offsets = [0, 192], sizes = [2, 64], strides = [1, 1]} : vector<2x256xf32> to vector<2x64xf32>
    %491 = arith.mulf %488, %467 : vector<2x64xf32>
    %492 = arith.mulf %487, %489 : vector<2x64xf32>
    %493 = arith.addf %491, %492 : vector<2x64xf32>
    %494 = math.tanh %493 : vector<2x64xf32>
    %495 = arith.mulf %490, %494 : vector<2x64xf32>
    %496 = arith.truncf %495 : vector<2x64xf32> to vector<2x64xbf16>
    %c2_172 = arith.constant 2 : index
    %c0_173 = arith.constant 0 : index
    %497 = vector.load %arg13[%c2_172, %c0_173] : memref<32x64xbf16, #tpu.memory_space<vmem>>, vector<2x64xbf16>
    tpu.vector_store %arg13[%c2_172, %c0_173], %496 {strides = array<i32>} : memref<32x64xbf16, #tpu.memory_space<vmem>>, vector<2x64xbf16>,
    %c28_174 = arith.constant 28 : index
    %c0_175 = arith.constant 0 : index
    %498 = vector.load %arg14[%c28_174, %c0_175] : memref<32x64xbf16, #tpu.memory_space<vmem>>, vector<2x64xbf16>
    tpu.vector_store %arg14[%c28_174, %c0_175], %496 {strides = array<i32>} : memref<32x64xbf16, #tpu.memory_space<vmem>>, vector<2x64xbf16>,
    %c4_176 = arith.constant 4 : index
    %c0_177 = arith.constant 0 : index
    %499 = vector.load %arg12[%c4_176, %c0_177] : memref<32x256xf32, #tpu.memory_space<vmem>>, vector<2x256xf32>
    %cst_178 = arith.constant dense<0.000000e+00> : vector<2x256xf32>
    %500 = tpu.matmul %496, %444, %cst_178 {dimension_numbers = #tpu.dot_dimension_numbers<[1], [0], [0], [1], [0, 0, 1, 1], [], []>} : vector<2x64xbf16>, vector<64x256xbf16>, vector<2x256xf32> -> vector<2x256xf32>
    %501 = arith.addf %499, %500 : vector<2x256xf32>
    %502 = arith.addf %501, %501 : vector<2x256xf32>
    %503 = arith.select %5, %502, %501 : vector<2x256xi1>, vector<2x256xf32>
    %504 = arith.negf %503 : vector<2x256xf32>
    %505 = math.exp %504 : vector<2x256xf32>
    %cst_179 = arith.constant 1.000000e+00 : f32
    %506 = vector.broadcast %cst_179 : f32 to vector<2x256xf32>
    %507 = arith.addf %506, %505 : vector<2x256xf32>
    %508 = arith.divf %506, %507 : vector<2x256xf32>
    %509 = arith.addf %508, %508 : vector<2x256xf32>
    %cst_180 = arith.constant 1.000000e+00 : f32
    %510 = vector.broadcast %cst_180 : f32 to vector<2x256xf32>
    %511 = arith.subf %509, %510 : vector<2x256xf32>
    %512 = arith.select %5, %511, %508 : vector<2x256xi1>, vector<2x256xf32>
    %513 = vector.extract_strided_slice %512 {offsets = [0, 0], sizes = [2, 64], strides = [1, 1]} : vector<2x256xf32> to vector<2x64xf32>
    %514 = vector.extract_strided_slice %512 {offsets = [0, 64], sizes = [2, 64], strides = [1, 1]} : vector<2x256xf32> to vector<2x64xf32>
    %515 = vector.extract_strided_slice %512 {offsets = [0, 128], sizes = [2, 64], strides = [1, 1]} : vector<2x256xf32> to vector<2x64xf32>
    %516 = vector.extract_strided_slice %512 {offsets = [0, 192], sizes = [2, 64], strides = [1, 1]} : vector<2x256xf32> to vector<2x64xf32>
    %517 = arith.mulf %514, %493 : vector<2x64xf32>
    %518 = arith.mulf %513, %515 : vector<2x64xf32>
    %519 = arith.addf %517, %518 : vector<2x64xf32>
    %520 = math.tanh %519 : vector<2x64xf32>
    %521 = arith.mulf %516, %520 : vector<2x64xf32>
    %522 = arith.truncf %521 : vector<2x64xf32> to vector<2x64xbf16>
    %c4_181 = arith.constant 4 : index
    %c0_182 = arith.constant 0 : index
    %523 = vector.load %arg13[%c4_181, %c0_182] : memref<32x64xbf16, #tpu.memory_space<vmem>>, vector<2x64xbf16>
    tpu.vector_store %arg13[%c4_181, %c0_182], %522 {strides = array<i32>} : memref<32x64xbf16, #tpu.memory_space<vmem>>, vector<2x64xbf16>,
    %c26_183 = arith.constant 26 : index
    %c0_184 = arith.constant 0 : index
    %524 = vector.load %arg14[%c26_183, %c0_184] : memref<32x64xbf16, #tpu.memory_space<vmem>>, vector<2x64xbf16>
    tpu.vector_store %arg14[%c26_183, %c0_184], %522 {strides = array<i32>} : memref<32x64xbf16, #tpu.memory_space<vmem>>, vector<2x64xbf16>,
    %c6_185 = arith.constant 6 : index
    %c0_186 = arith.constant 0 : index
    %525 = vector.load %arg12[%c6_185, %c0_186] : memref<32x256xf32, #tpu.memory_space<vmem>>, vector<2x256xf32>
    %cst_187 = arith.constant dense<0.000000e+00> : vector<2x256xf32>
    %526 = tpu.matmul %522, %444, %cst_187 {dimension_numbers = #tpu.dot_dimension_numbers<[1], [0], [0], [1], [0, 0, 1, 1], [], []>} : vector<2x64xbf16>, vector<64x256xbf16>, vector<2x256xf32> -> vector<2x256xf32>
    %527 = arith.addf %525, %526 : vector<2x256xf32>
    %528 = arith.addf %527, %527 : vector<2x256xf32>
    %529 = arith.select %5, %528, %527 : vector<2x256xi1>, vector<2x256xf32>
    %530 = arith.negf %529 : vector<2x256xf32>
    %531 = math.exp %530 : vector<2x256xf32>
    %cst_188 = arith.constant 1.000000e+00 : f32
    %532 = vector.broadcast %cst_188 : f32 to vector<2x256xf32>
    %533 = arith.addf %532, %531 : vector<2x256xf32>
    %534 = arith.divf %532, %533 : vector<2x256xf32>
    %535 = arith.addf %534, %534 : vector<2x256xf32>
    %cst_189 = arith.constant 1.000000e+00 : f32
    %536 = vector.broadcast %cst_189 : f32 to vector<2x256xf32>
    %537 = arith.subf %535, %536 : vector<2x256xf32>
    %538 = arith.select %5, %537, %534 : vector<2x256xi1>, vector<2x256xf32>
    %539 = vector.extract_strided_slice %538 {offsets = [0, 0], sizes = [2, 64], strides = [1, 1]} : vector<2x256xf32> to vector<2x64xf32>
    %540 = vector.extract_strided_slice %538 {offsets = [0, 64], sizes = [2, 64], strides = [1, 1]} : vector<2x256xf32> to vector<2x64xf32>
    %541 = vector.extract_strided_slice %538 {offsets = [0, 128], sizes = [2, 64], strides = [1, 1]} : vector<2x256xf32> to vector<2x64xf32>
    %542 = vector.extract_strided_slice %538 {offsets = [0, 192], sizes = [2, 64], strides = [1, 1]} : vector<2x256xf32> to vector<2x64xf32>
    %543 = arith.mulf %540, %519 : vector<2x64xf32>
    %544 = arith.mulf %539, %541 : vector<2x64xf32>
    %545 = arith.addf %543, %544 : vector<2x64xf32>
    %546 = math.tanh %545 : vector<2x64xf32>
    %547 = arith.mulf %542, %546 : vector<2x64xf32>
    %548 = arith.truncf %547 : vector<2x64xf32> to vector<2x64xbf16>
    %c6_190 = arith.constant 6 : index
    %c0_191 = arith.constant 0 : index
    %549 = vector.load %arg13[%c6_190, %c0_191] : memref<32x64xbf16, #tpu.memory_space<vmem>>, vector<2x64xbf16>
    tpu.vector_store %arg13[%c6_190, %c0_191], %548 {strides = array<i32>} : memref<32x64xbf16, #tpu.memory_space<vmem>>, vector<2x64xbf16>,
    %c24_192 = arith.constant 24 : index
    %c0_193 = arith.constant 0 : index
    %550 = vector.load %arg14[%c24_192, %c0_193] : memref<32x64xbf16, #tpu.memory_space<vmem>>, vector<2x64xbf16>
    tpu.vector_store %arg14[%c24_192, %c0_193], %548 {strides = array<i32>} : memref<32x64xbf16, #tpu.memory_space<vmem>>, vector<2x64xbf16>,
    %c8_194 = arith.constant 8 : index
    %c0_195 = arith.constant 0 : index
    %551 = vector.load %arg12[%c8_194, %c0_195] : memref<32x256xf32, #tpu.memory_space<vmem>>, vector<2x256xf32>
    %cst_196 = arith.constant dense<0.000000e+00> : vector<2x256xf32>
    %552 = tpu.matmul %548, %444, %cst_196 {dimension_numbers = #tpu.dot_dimension_numbers<[1], [0], [0], [1], [0, 0, 1, 1], [], []>} : vector<2x64xbf16>, vector<64x256xbf16>, vector<2x256xf32> -> vector<2x256xf32>
    %553 = arith.addf %551, %552 : vector<2x256xf32>
    %554 = arith.addf %553, %553 : vector<2x256xf32>
    %555 = arith.select %5, %554, %553 : vector<2x256xi1>, vector<2x256xf32>
    %556 = arith.negf %555 : vector<2x256xf32>
    %557 = math.exp %556 : vector<2x256xf32>
    %cst_197 = arith.constant 1.000000e+00 : f32
    %558 = vector.broadcast %cst_197 : f32 to vector<2x256xf32>
    %559 = arith.addf %558, %557 : vector<2x256xf32>
    %560 = arith.divf %558, %559 : vector<2x256xf32>
    %561 = arith.addf %560, %560 : vector<2x256xf32>
    %cst_198 = arith.constant 1.000000e+00 : f32
    %562 = vector.broadcast %cst_198 : f32 to vector<2x256xf32>
    %563 = arith.subf %561, %562 : vector<2x256xf32>
    %564 = arith.select %5, %563, %560 : vector<2x256xi1>, vector<2x256xf32>
    %565 = vector.extract_strided_slice %564 {offsets = [0, 0], sizes = [2, 64], strides = [1, 1]} : vector<2x256xf32> to vector<2x64xf32>
    %566 = vector.extract_strided_slice %564 {offsets = [0, 64], sizes = [2, 64], strides = [1, 1]} : vector<2x256xf32> to vector<2x64xf32>
    %567 = vector.extract_strided_slice %564 {offsets = [0, 128], sizes = [2, 64], strides = [1, 1]} : vector<2x256xf32> to vector<2x64xf32>
    %568 = vector.extract_strided_slice %564 {offsets = [0, 192], sizes = [2, 64], strides = [1, 1]} : vector<2x256xf32> to vector<2x64xf32>
    %569 = arith.mulf %566, %545 : vector<2x64xf32>
    %570 = arith.mulf %565, %567 : vector<2x64xf32>
    %571 = arith.addf %569, %570 : vector<2x64xf32>
    %572 = math.tanh %571 : vector<2x64xf32>
    %573 = arith.mulf %568, %572 : vector<2x64xf32>
    %574 = arith.truncf %573 : vector<2x64xf32> to vector<2x64xbf16>
    %c8_199 = arith.constant 8 : index
    %c0_200 = arith.constant 0 : index
    %575 = vector.load %arg13[%c8_199, %c0_200] : memref<32x64xbf16, #tpu.memory_space<vmem>>, vector<2x64xbf16>
    tpu.vector_store %arg13[%c8_199, %c0_200], %574 {strides = array<i32>} : memref<32x64xbf16, #tpu.memory_space<vmem>>, vector<2x64xbf16>,
    %c22_201 = arith.constant 22 : index
    %c0_202 = arith.constant 0 : index
    %576 = vector.load %arg14[%c22_201, %c0_202] : memref<32x64xbf16, #tpu.memory_space<vmem>>, vector<2x64xbf16>
    tpu.vector_store %arg14[%c22_201, %c0_202], %574 {strides = array<i32>} : memref<32x64xbf16, #tpu.memory_space<vmem>>, vector<2x64xbf16>,
    %c10_203 = arith.constant 10 : index
    %c0_204 = arith.constant 0 : index
    %577 = vector.load %arg12[%c10_203, %c0_204] : memref<32x256xf32, #tpu.memory_space<vmem>>, vector<2x256xf32>
    %cst_205 = arith.constant dense<0.000000e+00> : vector<2x256xf32>
    %578 = tpu.matmul %574, %444, %cst_205 {dimension_numbers = #tpu.dot_dimension_numbers<[1], [0], [0], [1], [0, 0, 1, 1], [], []>} : vector<2x64xbf16>, vector<64x256xbf16>, vector<2x256xf32> -> vector<2x256xf32>
    %579 = arith.addf %577, %578 : vector<2x256xf32>
    %580 = arith.addf %579, %579 : vector<2x256xf32>
    %581 = arith.select %5, %580, %579 : vector<2x256xi1>, vector<2x256xf32>
    %582 = arith.negf %581 : vector<2x256xf32>
    %583 = math.exp %582 : vector<2x256xf32>
    %cst_206 = arith.constant 1.000000e+00 : f32
    %584 = vector.broadcast %cst_206 : f32 to vector<2x256xf32>
    %585 = arith.addf %584, %583 : vector<2x256xf32>
    %586 = arith.divf %584, %585 : vector<2x256xf32>
    %587 = arith.addf %586, %586 : vector<2x256xf32>
    %cst_207 = arith.constant 1.000000e+00 : f32
    %588 = vector.broadcast %cst_207 : f32 to vector<2x256xf32>
    %589 = arith.subf %587, %588 : vector<2x256xf32>
    %590 = arith.select %5, %589, %586 : vector<2x256xi1>, vector<2x256xf32>
    %591 = vector.extract_strided_slice %590 {offsets = [0, 0], sizes = [2, 64], strides = [1, 1]} : vector<2x256xf32> to vector<2x64xf32>
    %592 = vector.extract_strided_slice %590 {offsets = [0, 64], sizes = [2, 64], strides = [1, 1]} : vector<2x256xf32> to vector<2x64xf32>
    %593 = vector.extract_strided_slice %590 {offsets = [0, 128], sizes = [2, 64], strides = [1, 1]} : vector<2x256xf32> to vector<2x64xf32>
    %594 = vector.extract_strided_slice %590 {offsets = [0, 192], sizes = [2, 64], strides = [1, 1]} : vector<2x256xf32> to vector<2x64xf32>
    %595 = arith.mulf %592, %571 : vector<2x64xf32>
    %596 = arith.mulf %591, %593 : vector<2x64xf32>
    %597 = arith.addf %595, %596 : vector<2x64xf32>
    %598 = math.tanh %597 : vector<2x64xf32>
    %599 = arith.mulf %594, %598 : vector<2x64xf32>
    %600 = arith.truncf %599 : vector<2x64xf32> to vector<2x64xbf16>
    %c10_208 = arith.constant 10 : index
    %c0_209 = arith.constant 0 : index
    %601 = vector.load %arg13[%c10_208, %c0_209] : memref<32x64xbf16, #tpu.memory_space<vmem>>, vector<2x64xbf16>
    tpu.vector_store %arg13[%c10_208, %c0_209], %600 {strides = array<i32>} : memref<32x64xbf16, #tpu.memory_space<vmem>>, vector<2x64xbf16>,
    %c20_210 = arith.constant 20 : index
    %c0_211 = arith.constant 0 : index
    %602 = vector.load %arg14[%c20_210, %c0_211] : memref<32x64xbf16, #tpu.memory_space<vmem>>, vector<2x64xbf16>
    tpu.vector_store %arg14[%c20_210, %c0_211], %600 {strides = array<i32>} : memref<32x64xbf16, #tpu.memory_space<vmem>>, vector<2x64xbf16>,
    %c12_212 = arith.constant 12 : index
    %c0_213 = arith.constant 0 : index
    %603 = vector.load %arg12[%c12_212, %c0_213] : memref<32x256xf32, #tpu.memory_space<vmem>>, vector<2x256xf32>
    %cst_214 = arith.constant dense<0.000000e+00> : vector<2x256xf32>
    %604 = tpu.matmul %600, %444, %cst_214 {dimension_numbers = #tpu.dot_dimension_numbers<[1], [0], [0], [1], [0, 0, 1, 1], [], []>} : vector<2x64xbf16>, vector<64x256xbf16>, vector<2x256xf32> -> vector<2x256xf32>
    %605 = arith.addf %603, %604 : vector<2x256xf32>
    %606 = arith.addf %605, %605 : vector<2x256xf32>
    %607 = arith.select %5, %606, %605 : vector<2x256xi1>, vector<2x256xf32>
    %608 = arith.negf %607 : vector<2x256xf32>
    %609 = math.exp %608 : vector<2x256xf32>
    %cst_215 = arith.constant 1.000000e+00 : f32
    %610 = vector.broadcast %cst_215 : f32 to vector<2x256xf32>
    %611 = arith.addf %610, %609 : vector<2x256xf32>
    %612 = arith.divf %610, %611 : vector<2x256xf32>
    %613 = arith.addf %612, %612 : vector<2x256xf32>
    %cst_216 = arith.constant 1.000000e+00 : f32
    %614 = vector.broadcast %cst_216 : f32 to vector<2x256xf32>
    %615 = arith.subf %613, %614 : vector<2x256xf32>
    %616 = arith.select %5, %615, %612 : vector<2x256xi1>, vector<2x256xf32>
    %617 = vector.extract_strided_slice %616 {offsets = [0, 0], sizes = [2, 64], strides = [1, 1]} : vector<2x256xf32> to vector<2x64xf32>
    %618 = vector.extract_strided_slice %616 {offsets = [0, 64], sizes = [2, 64], strides = [1, 1]} : vector<2x256xf32> to vector<2x64xf32>
    %619 = vector.extract_strided_slice %616 {offsets = [0, 128], sizes = [2, 64], strides = [1, 1]} : vector<2x256xf32> to vector<2x64xf32>
    %620 = vector.extract_strided_slice %616 {offsets = [0, 192], sizes = [2, 64], strides = [1, 1]} : vector<2x256xf32> to vector<2x64xf32>
    %621 = arith.mulf %618, %597 : vector<2x64xf32>
    %622 = arith.mulf %617, %619 : vector<2x64xf32>
    %623 = arith.addf %621, %622 : vector<2x64xf32>
    %624 = math.tanh %623 : vector<2x64xf32>
    %625 = arith.mulf %620, %624 : vector<2x64xf32>
    %626 = arith.truncf %625 : vector<2x64xf32> to vector<2x64xbf16>
    %c12_217 = arith.constant 12 : index
    %c0_218 = arith.constant 0 : index
    %627 = vector.load %arg13[%c12_217, %c0_218] : memref<32x64xbf16, #tpu.memory_space<vmem>>, vector<2x64xbf16>
    tpu.vector_store %arg13[%c12_217, %c0_218], %626 {strides = array<i32>} : memref<32x64xbf16, #tpu.memory_space<vmem>>, vector<2x64xbf16>,
    %c18_219 = arith.constant 18 : index
    %c0_220 = arith.constant 0 : index
    %628 = vector.load %arg14[%c18_219, %c0_220] : memref<32x64xbf16, #tpu.memory_space<vmem>>, vector<2x64xbf16>
    tpu.vector_store %arg14[%c18_219, %c0_220], %626 {strides = array<i32>} : memref<32x64xbf16, #tpu.memory_space<vmem>>, vector<2x64xbf16>,
    %c14_221 = arith.constant 14 : index
    %c0_222 = arith.constant 0 : index
    %629 = vector.load %arg12[%c14_221, %c0_222] : memref<32x256xf32, #tpu.memory_space<vmem>>, vector<2x256xf32>
    %cst_223 = arith.constant dense<0.000000e+00> : vector<2x256xf32>
    %630 = tpu.matmul %626, %444, %cst_223 {dimension_numbers = #tpu.dot_dimension_numbers<[1], [0], [0], [1], [0, 0, 1, 1], [], []>} : vector<2x64xbf16>, vector<64x256xbf16>, vector<2x256xf32> -> vector<2x256xf32>
    %631 = arith.addf %629, %630 : vector<2x256xf32>
    %632 = arith.addf %631, %631 : vector<2x256xf32>
    %633 = arith.select %5, %632, %631 : vector<2x256xi1>, vector<2x256xf32>
    %634 = arith.negf %633 : vector<2x256xf32>
    %635 = math.exp %634 : vector<2x256xf32>
    %cst_224 = arith.constant 1.000000e+00 : f32
    %636 = vector.broadcast %cst_224 : f32 to vector<2x256xf32>
    %637 = arith.addf %636, %635 : vector<2x256xf32>
    %638 = arith.divf %636, %637 : vector<2x256xf32>
    %639 = arith.addf %638, %638 : vector<2x256xf32>
    %cst_225 = arith.constant 1.000000e+00 : f32
    %640 = vector.broadcast %cst_225 : f32 to vector<2x256xf32>
    %641 = arith.subf %639, %640 : vector<2x256xf32>
    %642 = arith.select %5, %641, %638 : vector<2x256xi1>, vector<2x256xf32>
    %643 = vector.extract_strided_slice %642 {offsets = [0, 0], sizes = [2, 64], strides = [1, 1]} : vector<2x256xf32> to vector<2x64xf32>
    %644 = vector.extract_strided_slice %642 {offsets = [0, 64], sizes = [2, 64], strides = [1, 1]} : vector<2x256xf32> to vector<2x64xf32>
    %645 = vector.extract_strided_slice %642 {offsets = [0, 128], sizes = [2, 64], strides = [1, 1]} : vector<2x256xf32> to vector<2x64xf32>
    %646 = vector.extract_strided_slice %642 {offsets = [0, 192], sizes = [2, 64], strides = [1, 1]} : vector<2x256xf32> to vector<2x64xf32>
    %647 = arith.mulf %644, %623 : vector<2x64xf32>
    %648 = arith.mulf %643, %645 : vector<2x64xf32>
    %649 = arith.addf %647, %648 : vector<2x64xf32>
    %650 = math.tanh %649 : vector<2x64xf32>
    %651 = arith.mulf %646, %650 : vector<2x64xf32>
    %652 = arith.truncf %651 : vector<2x64xf32> to vector<2x64xbf16>
    %c14_226 = arith.constant 14 : index
    %c0_227 = arith.constant 0 : index
    %653 = vector.load %arg13[%c14_226, %c0_227] : memref<32x64xbf16, #tpu.memory_space<vmem>>, vector<2x64xbf16>
    tpu.vector_store %arg13[%c14_226, %c0_227], %652 {strides = array<i32>} : memref<32x64xbf16, #tpu.memory_space<vmem>>, vector<2x64xbf16>,
    %c16_228 = arith.constant 16 : index
    %c0_229 = arith.constant 0 : index
    %654 = vector.load %arg14[%c16_228, %c0_229] : memref<32x64xbf16, #tpu.memory_space<vmem>>, vector<2x64xbf16>
    tpu.vector_store %arg14[%c16_228, %c0_229], %652 {strides = array<i32>} : memref<32x64xbf16, #tpu.memory_space<vmem>>, vector<2x64xbf16>,
    %c16_230 = arith.constant 16 : index
    %c0_231 = arith.constant 0 : index
    %655 = vector.load %arg12[%c16_230, %c0_231] : memref<32x256xf32, #tpu.memory_space<vmem>>, vector<2x256xf32>
    %cst_232 = arith.constant dense<0.000000e+00> : vector<2x256xf32>
    %656 = tpu.matmul %652, %444, %cst_232 {dimension_numbers = #tpu.dot_dimension_numbers<[1], [0], [0], [1], [0, 0, 1, 1], [], []>} : vector<2x64xbf16>, vector<64x256xbf16>, vector<2x256xf32> -> vector<2x256xf32>
    %657 = arith.addf %655, %656 : vector<2x256xf32>
    %658 = arith.addf %657, %657 : vector<2x256xf32>
    %659 = arith.select %5, %658, %657 : vector<2x256xi1>, vector<2x256xf32>
    %660 = arith.negf %659 : vector<2x256xf32>
    %661 = math.exp %660 : vector<2x256xf32>
    %cst_233 = arith.constant 1.000000e+00 : f32
    %662 = vector.broadcast %cst_233 : f32 to vector<2x256xf32>
    %663 = arith.addf %662, %661 : vector<2x256xf32>
    %664 = arith.divf %662, %663 : vector<2x256xf32>
    %665 = arith.addf %664, %664 : vector<2x256xf32>
    %cst_234 = arith.constant 1.000000e+00 : f32
    %666 = vector.broadcast %cst_234 : f32 to vector<2x256xf32>
    %667 = arith.subf %665, %666 : vector<2x256xf32>
    %668 = arith.select %5, %667, %664 : vector<2x256xi1>, vector<2x256xf32>
    %669 = vector.extract_strided_slice %668 {offsets = [0, 0], sizes = [2, 64], strides = [1, 1]} : vector<2x256xf32> to vector<2x64xf32>
    %670 = vector.extract_strided_slice %668 {offsets = [0, 64], sizes = [2, 64], strides = [1, 1]} : vector<2x256xf32> to vector<2x64xf32>
    %671 = vector.extract_strided_slice %668 {offsets = [0, 128], sizes = [2, 64], strides = [1, 1]} : vector<2x256xf32> to vector<2x64xf32>
    %672 = vector.extract_strided_slice %668 {offsets = [0, 192], sizes = [2, 64], strides = [1, 1]} : vector<2x256xf32> to vector<2x64xf32>
    %673 = arith.mulf %670, %649 : vector<2x64xf32>
    %674 = arith.mulf %669, %671 : vector<2x64xf32>
    %675 = arith.addf %673, %674 : vector<2x64xf32>
    %676 = math.tanh %675 : vector<2x64xf32>
    %677 = arith.mulf %672, %676 : vector<2x64xf32>
    %678 = arith.truncf %677 : vector<2x64xf32> to vector<2x64xbf16>
    %c16_235 = arith.constant 16 : index
    %c0_236 = arith.constant 0 : index
    %679 = vector.load %arg13[%c16_235, %c0_236] : memref<32x64xbf16, #tpu.memory_space<vmem>>, vector<2x64xbf16>
    tpu.vector_store %arg13[%c16_235, %c0_236], %678 {strides = array<i32>} : memref<32x64xbf16, #tpu.memory_space<vmem>>, vector<2x64xbf16>,
    %c14_237 = arith.constant 14 : index
    %c0_238 = arith.constant 0 : index
    %680 = vector.load %arg14[%c14_237, %c0_238] : memref<32x64xbf16, #tpu.memory_space<vmem>>, vector<2x64xbf16>
    tpu.vector_store %arg14[%c14_237, %c0_238], %678 {strides = array<i32>} : memref<32x64xbf16, #tpu.memory_space<vmem>>, vector<2x64xbf16>,
    %c18_239 = arith.constant 18 : index
    %c0_240 = arith.constant 0 : index
    %681 = vector.load %arg12[%c18_239, %c0_240] : memref<32x256xf32, #tpu.memory_space<vmem>>, vector<2x256xf32>
    %cst_241 = arith.constant dense<0.000000e+00> : vector<2x256xf32>
    %682 = tpu.matmul %678, %444, %cst_241 {dimension_numbers = #tpu.dot_dimension_numbers<[1], [0], [0], [1], [0, 0, 1, 1], [], []>} : vector<2x64xbf16>, vector<64x256xbf16>, vector<2x256xf32> -> vector<2x256xf32>
    %683 = arith.addf %681, %682 : vector<2x256xf32>
    %684 = arith.addf %683, %683 : vector<2x256xf32>
    %685 = arith.select %5, %684, %683 : vector<2x256xi1>, vector<2x256xf32>
    %686 = arith.negf %685 : vector<2x256xf32>
    %687 = math.exp %686 : vector<2x256xf32>
    %cst_242 = arith.constant 1.000000e+00 : f32
    %688 = vector.broadcast %cst_242 : f32 to vector<2x256xf32>
    %689 = arith.addf %688, %687 : vector<2x256xf32>
    %690 = arith.divf %688, %689 : vector<2x256xf32>
    %691 = arith.addf %690, %690 : vector<2x256xf32>
    %cst_243 = arith.constant 1.000000e+00 : f32
    %692 = vector.broadcast %cst_243 : f32 to vector<2x256xf32>
    %693 = arith.subf %691, %692 : vector<2x256xf32>
    %694 = arith.select %5, %693, %690 : vector<2x256xi1>, vector<2x256xf32>
    %695 = vector.extract_strided_slice %694 {offsets = [0, 0], sizes = [2, 64], strides = [1, 1]} : vector<2x256xf32> to vector<2x64xf32>
    %696 = vector.extract_strided_slice %694 {offsets = [0, 64], sizes = [2, 64], strides = [1, 1]} : vector<2x256xf32> to vector<2x64xf32>
    %697 = vector.extract_strided_slice %694 {offsets = [0, 128], sizes = [2, 64], strides = [1, 1]} : vector<2x256xf32> to vector<2x64xf32>
    %698 = vector.extract_strided_slice %694 {offsets = [0, 192], sizes = [2, 64], strides = [1, 1]} : vector<2x256xf32> to vector<2x64xf32>
    %699 = arith.mulf %696, %675 : vector<2x64xf32>
    %700 = arith.mulf %695, %697 : vector<2x64xf32>
    %701 = arith.addf %699, %700 : vector<2x64xf32>
    %702 = math.tanh %701 : vector<2x64xf32>
    %703 = arith.mulf %698, %702 : vector<2x64xf32>
    %704 = arith.truncf %703 : vector<2x64xf32> to vector<2x64xbf16>
    %c18_244 = arith.constant 18 : index
    %c0_245 = arith.constant 0 : index
    %705 = vector.load %arg13[%c18_244, %c0_245] : memref<32x64xbf16, #tpu.memory_space<vmem>>, vector<2x64xbf16>
    tpu.vector_store %arg13[%c18_244, %c0_245], %704 {strides = array<i32>} : memref<32x64xbf16, #tpu.memory_space<vmem>>, vector<2x64xbf16>,
    %c12_246 = arith.constant 12 : index
    %c0_247 = arith.constant 0 : index
    %706 = vector.load %arg14[%c12_246, %c0_247] : memref<32x64xbf16, #tpu.memory_space<vmem>>, vector<2x64xbf16>
    tpu.vector_store %arg14[%c12_246, %c0_247], %704 {strides = array<i32>} : memref<32x64xbf16, #tpu.memory_space<vmem>>, vector<2x64xbf16>,
    %c20_248 = arith.constant 20 : index
    %c0_249 = arith.constant 0 : index
    %707 = vector.load %arg12[%c20_248, %c0_249] : memref<32x256xf32, #tpu.memory_space<vmem>>, vector<2x256xf32>
    %cst_250 = arith.constant dense<0.000000e+00> : vector<2x256xf32>
    %708 = tpu.matmul %704, %444, %cst_250 {dimension_numbers = #tpu.dot_dimension_numbers<[1], [0], [0], [1], [0, 0, 1, 1], [], []>} : vector<2x64xbf16>, vector<64x256xbf16>, vector<2x256xf32> -> vector<2x256xf32>
    %709 = arith.addf %707, %708 : vector<2x256xf32>
    %710 = arith.addf %709, %709 : vector<2x256xf32>
    %711 = arith.select %5, %710, %709 : vector<2x256xi1>, vector<2x256xf32>
    %712 = arith.negf %711 : vector<2x256xf32>
    %713 = math.exp %712 : vector<2x256xf32>
    %cst_251 = arith.constant 1.000000e+00 : f32
    %714 = vector.broadcast %cst_251 : f32 to vector<2x256xf32>
    %715 = arith.addf %714, %713 : vector<2x256xf32>
    %716 = arith.divf %714, %715 : vector<2x256xf32>
    %717 = arith.addf %716, %716 : vector<2x256xf32>
    %cst_252 = arith.constant 1.000000e+00 : f32
    %718 = vector.broadcast %cst_252 : f32 to vector<2x256xf32>
    %719 = arith.subf %717, %718 : vector<2x256xf32>
    %720 = arith.select %5, %719, %716 : vector<2x256xi1>, vector<2x256xf32>
    %721 = vector.extract_strided_slice %720 {offsets = [0, 0], sizes = [2, 64], strides = [1, 1]} : vector<2x256xf32> to vector<2x64xf32>
    %722 = vector.extract_strided_slice %720 {offsets = [0, 64], sizes = [2, 64], strides = [1, 1]} : vector<2x256xf32> to vector<2x64xf32>
    %723 = vector.extract_strided_slice %720 {offsets = [0, 128], sizes = [2, 64], strides = [1, 1]} : vector<2x256xf32> to vector<2x64xf32>
    %724 = vector.extract_strided_slice %720 {offsets = [0, 192], sizes = [2, 64], strides = [1, 1]} : vector<2x256xf32> to vector<2x64xf32>
    %725 = arith.mulf %722, %701 : vector<2x64xf32>
    %726 = arith.mulf %721, %723 : vector<2x64xf32>
    %727 = arith.addf %725, %726 : vector<2x64xf32>
    %728 = math.tanh %727 : vector<2x64xf32>
    %729 = arith.mulf %724, %728 : vector<2x64xf32>
    %730 = arith.truncf %729 : vector<2x64xf32> to vector<2x64xbf16>
    %c20_253 = arith.constant 20 : index
    %c0_254 = arith.constant 0 : index
    %731 = vector.load %arg13[%c20_253, %c0_254] : memref<32x64xbf16, #tpu.memory_space<vmem>>, vector<2x64xbf16>
    tpu.vector_store %arg13[%c20_253, %c0_254], %730 {strides = array<i32>} : memref<32x64xbf16, #tpu.memory_space<vmem>>, vector<2x64xbf16>,
    %c10_255 = arith.constant 10 : index
    %c0_256 = arith.constant 0 : index
    %732 = vector.load %arg14[%c10_255, %c0_256] : memref<32x64xbf16, #tpu.memory_space<vmem>>, vector<2x64xbf16>
    tpu.vector_store %arg14[%c10_255, %c0_256], %730 {strides = array<i32>} : memref<32x64xbf16, #tpu.memory_space<vmem>>, vector<2x64xbf16>,
    %c22_257 = arith.constant 22 : index
    %c0_258 = arith.constant 0 : index
    %733 = vector.load %arg12[%c22_257, %c0_258] : memref<32x256xf32, #tpu.memory_space<vmem>>, vector<2x256xf32>
    %cst_259 = arith.constant dense<0.000000e+00> : vector<2x256xf32>
    %734 = tpu.matmul %730, %444, %cst_259 {dimension_numbers = #tpu.dot_dimension_numbers<[1], [0], [0], [1], [0, 0, 1, 1], [], []>} : vector<2x64xbf16>, vector<64x256xbf16>, vector<2x256xf32> -> vector<2x256xf32>
    %735 = arith.addf %733, %734 : vector<2x256xf32>
    %736 = arith.addf %735, %735 : vector<2x256xf32>
    %737 = arith.select %5, %736, %735 : vector<2x256xi1>, vector<2x256xf32>
    %738 = arith.negf %737 : vector<2x256xf32>
    %739 = math.exp %738 : vector<2x256xf32>
    %cst_260 = arith.constant 1.000000e+00 : f32
    %740 = vector.broadcast %cst_260 : f32 to vector<2x256xf32>
    %741 = arith.addf %740, %739 : vector<2x256xf32>
    %742 = arith.divf %740, %741 : vector<2x256xf32>
    %743 = arith.addf %742, %742 : vector<2x256xf32>
    %cst_261 = arith.constant 1.000000e+00 : f32
    %744 = vector.broadcast %cst_261 : f32 to vector<2x256xf32>
    %745 = arith.subf %743, %744 : vector<2x256xf32>
    %746 = arith.select %5, %745, %742 : vector<2x256xi1>, vector<2x256xf32>
    %747 = vector.extract_strided_slice %746 {offsets = [0, 0], sizes = [2, 64], strides = [1, 1]} : vector<2x256xf32> to vector<2x64xf32>
    %748 = vector.extract_strided_slice %746 {offsets = [0, 64], sizes = [2, 64], strides = [1, 1]} : vector<2x256xf32> to vector<2x64xf32>
    %749 = vector.extract_strided_slice %746 {offsets = [0, 128], sizes = [2, 64], strides = [1, 1]} : vector<2x256xf32> to vector<2x64xf32>
    %750 = vector.extract_strided_slice %746 {offsets = [0, 192], sizes = [2, 64], strides = [1, 1]} : vector<2x256xf32> to vector<2x64xf32>
    %751 = arith.mulf %748, %727 : vector<2x64xf32>
    %752 = arith.mulf %747, %749 : vector<2x64xf32>
    %753 = arith.addf %751, %752 : vector<2x64xf32>
    %754 = math.tanh %753 : vector<2x64xf32>
    %755 = arith.mulf %750, %754 : vector<2x64xf32>
    %756 = arith.truncf %755 : vector<2x64xf32> to vector<2x64xbf16>
    %c22_262 = arith.constant 22 : index
    %c0_263 = arith.constant 0 : index
    %757 = vector.load %arg13[%c22_262, %c0_263] : memref<32x64xbf16, #tpu.memory_space<vmem>>, vector<2x64xbf16>
    tpu.vector_store %arg13[%c22_262, %c0_263], %756 {strides = array<i32>} : memref<32x64xbf16, #tpu.memory_space<vmem>>, vector<2x64xbf16>,
    %c8_264 = arith.constant 8 : index
    %c0_265 = arith.constant 0 : index
    %758 = vector.load %arg14[%c8_264, %c0_265] : memref<32x64xbf16, #tpu.memory_space<vmem>>, vector<2x64xbf16>
    tpu.vector_store %arg14[%c8_264, %c0_265], %756 {strides = array<i32>} : memref<32x64xbf16, #tpu.memory_space<vmem>>, vector<2x64xbf16>,
    %c24_266 = arith.constant 24 : index
    %c0_267 = arith.constant 0 : index
    %759 = vector.load %arg12[%c24_266, %c0_267] : memref<32x256xf32, #tpu.memory_space<vmem>>, vector<2x256xf32>
    %cst_268 = arith.constant dense<0.000000e+00> : vector<2x256xf32>
    %760 = tpu.matmul %756, %444, %cst_268 {dimension_numbers = #tpu.dot_dimension_numbers<[1], [0], [0], [1], [0, 0, 1, 1], [], []>} : vector<2x64xbf16>, vector<64x256xbf16>, vector<2x256xf32> -> vector<2x256xf32>
    %761 = arith.addf %759, %760 : vector<2x256xf32>
    %762 = arith.addf %761, %761 : vector<2x256xf32>
    %763 = arith.select %5, %762, %761 : vector<2x256xi1>, vector<2x256xf32>
    %764 = arith.negf %763 : vector<2x256xf32>
    %765 = math.exp %764 : vector<2x256xf32>
    %cst_269 = arith.constant 1.000000e+00 : f32
    %766 = vector.broadcast %cst_269 : f32 to vector<2x256xf32>
    %767 = arith.addf %766, %765 : vector<2x256xf32>
    %768 = arith.divf %766, %767 : vector<2x256xf32>
    %769 = arith.addf %768, %768 : vector<2x256xf32>
    %cst_270 = arith.constant 1.000000e+00 : f32
    %770 = vector.broadcast %cst_270 : f32 to vector<2x256xf32>
    %771 = arith.subf %769, %770 : vector<2x256xf32>
    %772 = arith.select %5, %771, %768 : vector<2x256xi1>, vector<2x256xf32>
    %773 = vector.extract_strided_slice %772 {offsets = [0, 0], sizes = [2, 64], strides = [1, 1]} : vector<2x256xf32> to vector<2x64xf32>
    %774 = vector.extract_strided_slice %772 {offsets = [0, 64], sizes = [2, 64], strides = [1, 1]} : vector<2x256xf32> to vector<2x64xf32>
    %775 = vector.extract_strided_slice %772 {offsets = [0, 128], sizes = [2, 64], strides = [1, 1]} : vector<2x256xf32> to vector<2x64xf32>
    %776 = vector.extract_strided_slice %772 {offsets = [0, 192], sizes = [2, 64], strides = [1, 1]} : vector<2x256xf32> to vector<2x64xf32>
    %777 = arith.mulf %774, %753 : vector<2x64xf32>
    %778 = arith.mulf %773, %775 : vector<2x64xf32>
    %779 = arith.addf %777, %778 : vector<2x64xf32>
    %780 = math.tanh %779 : vector<2x64xf32>
    %781 = arith.mulf %776, %780 : vector<2x64xf32>
    %782 = arith.truncf %781 : vector<2x64xf32> to vector<2x64xbf16>
    %c24_271 = arith.constant 24 : index
    %c0_272 = arith.constant 0 : index
    %783 = vector.load %arg13[%c24_271, %c0_272] : memref<32x64xbf16, #tpu.memory_space<vmem>>, vector<2x64xbf16>
    tpu.vector_store %arg13[%c24_271, %c0_272], %782 {strides = array<i32>} : memref<32x64xbf16, #tpu.memory_space<vmem>>, vector<2x64xbf16>,
    %c6_273 = arith.constant 6 : index
    %c0_274 = arith.constant 0 : index
    %784 = vector.load %arg14[%c6_273, %c0_274] : memref<32x64xbf16, #tpu.memory_space<vmem>>, vector<2x64xbf16>
    tpu.vector_store %arg14[%c6_273, %c0_274], %782 {strides = array<i32>} : memref<32x64xbf16, #tpu.memory_space<vmem>>, vector<2x64xbf16>,
    %c26_275 = arith.constant 26 : index
    %c0_276 = arith.constant 0 : index
    %785 = vector.load %arg12[%c26_275, %c0_276] : memref<32x256xf32, #tpu.memory_space<vmem>>, vector<2x256xf32>
    %cst_277 = arith.constant dense<0.000000e+00> : vector<2x256xf32>
    %786 = tpu.matmul %782, %444, %cst_277 {dimension_numbers = #tpu.dot_dimension_numbers<[1], [0], [0], [1], [0, 0, 1, 1], [], []>} : vector<2x64xbf16>, vector<64x256xbf16>, vector<2x256xf32> -> vector<2x256xf32>
    %787 = arith.addf %785, %786 : vector<2x256xf32>
    %788 = arith.addf %787, %787 : vector<2x256xf32>
    %789 = arith.select %5, %788, %787 : vector<2x256xi1>, vector<2x256xf32>
    %790 = arith.negf %789 : vector<2x256xf32>
    %791 = math.exp %790 : vector<2x256xf32>
    %cst_278 = arith.constant 1.000000e+00 : f32
    %792 = vector.broadcast %cst_278 : f32 to vector<2x256xf32>
    %793 = arith.addf %792, %791 : vector<2x256xf32>
    %794 = arith.divf %792, %793 : vector<2x256xf32>
    %795 = arith.addf %794, %794 : vector<2x256xf32>
    %cst_279 = arith.constant 1.000000e+00 : f32
    %796 = vector.broadcast %cst_279 : f32 to vector<2x256xf32>
    %797 = arith.subf %795, %796 : vector<2x256xf32>
    %798 = arith.select %5, %797, %794 : vector<2x256xi1>, vector<2x256xf32>
    %799 = vector.extract_strided_slice %798 {offsets = [0, 0], sizes = [2, 64], strides = [1, 1]} : vector<2x256xf32> to vector<2x64xf32>
    %800 = vector.extract_strided_slice %798 {offsets = [0, 64], sizes = [2, 64], strides = [1, 1]} : vector<2x256xf32> to vector<2x64xf32>
    %801 = vector.extract_strided_slice %798 {offsets = [0, 128], sizes = [2, 64], strides = [1, 1]} : vector<2x256xf32> to vector<2x64xf32>
    %802 = vector.extract_strided_slice %798 {offsets = [0, 192], sizes = [2, 64], strides = [1, 1]} : vector<2x256xf32> to vector<2x64xf32>
    %803 = arith.mulf %800, %779 : vector<2x64xf32>
    %804 = arith.mulf %799, %801 : vector<2x64xf32>
    %805 = arith.addf %803, %804 : vector<2x64xf32>
    %806 = math.tanh %805 : vector<2x64xf32>
    %807 = arith.mulf %802, %806 : vector<2x64xf32>
    %808 = arith.truncf %807 : vector<2x64xf32> to vector<2x64xbf16>
    %c26_280 = arith.constant 26 : index
    %c0_281 = arith.constant 0 : index
    %809 = vector.load %arg13[%c26_280, %c0_281] : memref<32x64xbf16, #tpu.memory_space<vmem>>, vector<2x64xbf16>
    tpu.vector_store %arg13[%c26_280, %c0_281], %808 {strides = array<i32>} : memref<32x64xbf16, #tpu.memory_space<vmem>>, vector<2x64xbf16>,
    %c4_282 = arith.constant 4 : index
    %c0_283 = arith.constant 0 : index
    %810 = vector.load %arg14[%c4_282, %c0_283] : memref<32x64xbf16, #tpu.memory_space<vmem>>, vector<2x64xbf16>
    tpu.vector_store %arg14[%c4_282, %c0_283], %808 {strides = array<i32>} : memref<32x64xbf16, #tpu.memory_space<vmem>>, vector<2x64xbf16>,
    %c28_284 = arith.constant 28 : index
    %c0_285 = arith.constant 0 : index
    %811 = vector.load %arg12[%c28_284, %c0_285] : memref<32x256xf32, #tpu.memory_space<vmem>>, vector<2x256xf32>
    %cst_286 = arith.constant dense<0.000000e+00> : vector<2x256xf32>
    %812 = tpu.matmul %808, %444, %cst_286 {dimension_numbers = #tpu.dot_dimension_numbers<[1], [0], [0], [1], [0, 0, 1, 1], [], []>} : vector<2x64xbf16>, vector<64x256xbf16>, vector<2x256xf32> -> vector<2x256xf32>
    %813 = arith.addf %811, %812 : vector<2x256xf32>
    %814 = arith.addf %813, %813 : vector<2x256xf32>
    %815 = arith.select %5, %814, %813 : vector<2x256xi1>, vector<2x256xf32>
    %816 = arith.negf %815 : vector<2x256xf32>
    %817 = math.exp %816 : vector<2x256xf32>
    %cst_287 = arith.constant 1.000000e+00 : f32
    %818 = vector.broadcast %cst_287 : f32 to vector<2x256xf32>
    %819 = arith.addf %818, %817 : vector<2x256xf32>
    %820 = arith.divf %818, %819 : vector<2x256xf32>
    %821 = arith.addf %820, %820 : vector<2x256xf32>
    %cst_288 = arith.constant 1.000000e+00 : f32
    %822 = vector.broadcast %cst_288 : f32 to vector<2x256xf32>
    %823 = arith.subf %821, %822 : vector<2x256xf32>
    %824 = arith.select %5, %823, %820 : vector<2x256xi1>, vector<2x256xf32>
    %825 = vector.extract_strided_slice %824 {offsets = [0, 0], sizes = [2, 64], strides = [1, 1]} : vector<2x256xf32> to vector<2x64xf32>
    %826 = vector.extract_strided_slice %824 {offsets = [0, 64], sizes = [2, 64], strides = [1, 1]} : vector<2x256xf32> to vector<2x64xf32>
    %827 = vector.extract_strided_slice %824 {offsets = [0, 128], sizes = [2, 64], strides = [1, 1]} : vector<2x256xf32> to vector<2x64xf32>
    %828 = vector.extract_strided_slice %824 {offsets = [0, 192], sizes = [2, 64], strides = [1, 1]} : vector<2x256xf32> to vector<2x64xf32>
    %829 = arith.mulf %826, %805 : vector<2x64xf32>
    %830 = arith.mulf %825, %827 : vector<2x64xf32>
    %831 = arith.addf %829, %830 : vector<2x64xf32>
    %832 = math.tanh %831 : vector<2x64xf32>
    %833 = arith.mulf %828, %832 : vector<2x64xf32>
    %834 = arith.truncf %833 : vector<2x64xf32> to vector<2x64xbf16>
    %c28_289 = arith.constant 28 : index
    %c0_290 = arith.constant 0 : index
    %835 = vector.load %arg13[%c28_289, %c0_290] : memref<32x64xbf16, #tpu.memory_space<vmem>>, vector<2x64xbf16>
    tpu.vector_store %arg13[%c28_289, %c0_290], %834 {strides = array<i32>} : memref<32x64xbf16, #tpu.memory_space<vmem>>, vector<2x64xbf16>,
    %c2_291 = arith.constant 2 : index
    %c0_292 = arith.constant 0 : index
    %836 = vector.load %arg14[%c2_291, %c0_292] : memref<32x64xbf16, #tpu.memory_space<vmem>>, vector<2x64xbf16>
    tpu.vector_store %arg14[%c2_291, %c0_292], %834 {strides = array<i32>} : memref<32x64xbf16, #tpu.memory_space<vmem>>, vector<2x64xbf16>,
    %c30_293 = arith.constant 30 : index
    %c0_294 = arith.constant 0 : index
    %837 = vector.load %arg12[%c30_293, %c0_294] : memref<32x256xf32, #tpu.memory_space<vmem>>, vector<2x256xf32>
    %cst_295 = arith.constant dense<0.000000e+00> : vector<2x256xf32>
    %838 = tpu.matmul %834, %444, %cst_295 {dimension_numbers = #tpu.dot_dimension_numbers<[1], [0], [0], [1], [0, 0, 1, 1], [], []>} : vector<2x64xbf16>, vector<64x256xbf16>, vector<2x256xf32> -> vector<2x256xf32>
    %839 = arith.addf %837, %838 : vector<2x256xf32>
    %840 = arith.addf %839, %839 : vector<2x256xf32>
    %841 = arith.select %5, %840, %839 : vector<2x256xi1>, vector<2x256xf32>
    %842 = arith.negf %841 : vector<2x256xf32>
    %843 = math.exp %842 : vector<2x256xf32>
    %cst_296 = arith.constant 1.000000e+00 : f32
    %844 = vector.broadcast %cst_296 : f32 to vector<2x256xf32>
    %845 = arith.addf %844, %843 : vector<2x256xf32>
    %846 = arith.divf %844, %845 : vector<2x256xf32>
    %847 = arith.addf %846, %846 : vector<2x256xf32>
    %cst_297 = arith.constant 1.000000e+00 : f32
    %848 = vector.broadcast %cst_297 : f32 to vector<2x256xf32>
    %849 = arith.subf %847, %848 : vector<2x256xf32>
    %850 = arith.select %5, %849, %846 : vector<2x256xi1>, vector<2x256xf32>
    %851 = vector.extract_strided_slice %850 {offsets = [0, 0], sizes = [2, 64], strides = [1, 1]} : vector<2x256xf32> to vector<2x64xf32>
    %852 = vector.extract_strided_slice %850 {offsets = [0, 64], sizes = [2, 64], strides = [1, 1]} : vector<2x256xf32> to vector<2x64xf32>
    %853 = vector.extract_strided_slice %850 {offsets = [0, 128], sizes = [2, 64], strides = [1, 1]} : vector<2x256xf32> to vector<2x64xf32>
    %854 = vector.extract_strided_slice %850 {offsets = [0, 192], sizes = [2, 64], strides = [1, 1]} : vector<2x256xf32> to vector<2x64xf32>
    %855 = arith.mulf %852, %831 : vector<2x64xf32>
    %856 = arith.mulf %851, %853 : vector<2x64xf32>
    %857 = arith.addf %855, %856 : vector<2x64xf32>
    %858 = math.tanh %857 : vector<2x64xf32>
    %859 = arith.mulf %854, %858 : vector<2x64xf32>
    %860 = arith.truncf %859 : vector<2x64xf32> to vector<2x64xbf16>
    %c30_298 = arith.constant 30 : index
    %c0_299 = arith.constant 0 : index
    %861 = vector.load %arg13[%c30_298, %c0_299] : memref<32x64xbf16, #tpu.memory_space<vmem>>, vector<2x64xbf16>
    tpu.vector_store %arg13[%c30_298, %c0_299], %860 {strides = array<i32>} : memref<32x64xbf16, #tpu.memory_space<vmem>>, vector<2x64xbf16>,
    %c0_300 = arith.constant 0 : index
    %c0_301 = arith.constant 0 : index
    %862 = vector.load %arg14[%c0_300, %c0_301] : memref<32x64xbf16, #tpu.memory_space<vmem>>, vector<2x64xbf16>
    tpu.vector_store %arg14[%c0_300, %c0_301], %860 {strides = array<i32>} : memref<32x64xbf16, #tpu.memory_space<vmem>>, vector<2x64xbf16>,
    %c0_302 = arith.constant 0 : index
    %c0_303 = arith.constant 0 : index
    %863 = vector.load %arg13[%c0_302, %c0_303] : memref<32x64xbf16, #tpu.memory_space<vmem>>, vector<32x64xbf16>
    %c0_304 = arith.constant 0 : index
    %c0_305 = arith.constant 0 : index
    %864 = vector.load %arg8[%c0_304, %c0_305] : memref<64x128xbf16, #tpu.memory_space<vmem>>, vector<64x128xbf16>
    %cst_306 = arith.constant dense<0.000000e+00> : vector<32x128xf32>
    %865 = tpu.matmul %863, %864, %cst_306 {dimension_numbers = #tpu.dot_dimension_numbers<[1], [0], [0], [1], [0, 0, 1, 1], [], []>} : vector<32x64xbf16>, vector<64x128xbf16>, vector<32x128xf32> -> vector<32x128xf32>
    %c0_307 = arith.constant 0 : index
    %c0_308 = arith.constant 0 : index
    %866 = vector.load %arg14[%c0_307, %c0_308] : memref<32x64xbf16, #tpu.memory_space<vmem>>, vector<32x64xbf16>
    %c0_309 = arith.constant 0 : index
    %c0_310 = arith.constant 0 : index
    %867 = vector.load %arg9[%c0_309, %c0_310] : memref<64x128xbf16, #tpu.memory_space<vmem>>, vector<64x128xbf16>
    %cst_311 = arith.constant dense<0.000000e+00> : vector<32x128xf32>
    %868 = tpu.matmul %866, %867, %cst_311 {dimension_numbers = #tpu.dot_dimension_numbers<[1], [0], [0], [1], [0, 0, 1, 1], [], []>} : vector<32x64xbf16>, vector<64x128xbf16>, vector<32x128xf32> -> vector<32x128xf32>
    %869 = arith.addf %865, %868 : vector<32x128xf32>
    %c0_312 = arith.constant 0 : index
    %c0_313 = arith.constant 0 : index
    %870 = vector.load %arg10[%c0_312, %c0_313] : memref<1x128xf32, #tpu.memory_space<vmem>>, vector<1x128xf32>
    %871 = vector.broadcast %870 : vector<1x128xf32> to vector<32x128xf32>
    %872 = arith.addf %869, %871 : vector<32x128xf32>
    %cst_314 = arith.constant dense<0xFF800000> : vector<32xf32>
    %873 = vector.multi_reduction <maximumf>, %872, %cst_314 [1] : vector<32x128xf32> to vector<32xf32>
    %874 = vector.shape_cast %873 : vector<32xf32> to vector<32x1xf32>
    %875 = vector.broadcast %874 : vector<32x1xf32> to vector<32x128xf32>
    %876 = arith.subf %872, %875 : vector<32x128xf32>
    %877 = math.exp %876 : vector<32x128xf32>
    %cst_315 = arith.constant dense<0.000000e+00> : vector<32xf32>
    %878 = vector.multi_reduction <add>, %877, %cst_315 [1] : vector<32x128xf32> to vector<32xf32>
    %879 = vector.shape_cast %878 : vector<32xf32> to vector<32x1xf32>
    %880 = vector.broadcast %879 : vector<32x1xf32> to vector<32x128xf32>
    %881 = arith.divf %877, %880 : vector<32x128xf32>
    %c0_316 = arith.constant 0 : index
    %c0_317 = arith.constant 0 : index
    %882 = vector.load %arg11[%c0_316, %c0_317] : memref<32x128xf32, #tpu.memory_space<vmem>>, vector<32x128xf32>
    tpu.vector_store %arg11[%c0_316, %c0_317], %881 {strides = array<i32>} : memref<32x128xf32, #tpu.memory_space<vmem>>, vector<32x128xf32>,
    return
  }
}

</mosaic_0001>

<bundles_post_ra>
// kernel: crnn_decoder_forward.1
= control target key start
LH: loop header
LB: loop body
LE: loop exit
PB: predicated region body
PF: predicated region fallthrough
CT: control target
= control target key end

     0   :  { %v4853_v1 = vmov 0   ;;  %vm114_vm0 = vcmask 523264   ;;  %v39_v20 = vlaneseq  ;;  %vm322_vm2 = vcmask 519171   ;;  %s6070_s1 = inlined_call_operand.vmem [shape: bf16[64,256], index: 1, kind: input, shape index: {}]   ;;  %s6071_s3 = inlined_call_operand.vmem [shape: bf16[64,256], index: 3, kind: input, shape index: {}]   ;;  %s6072_s0 = inlined_call_operand.vmem [shape: f32[32,64], index: 0, kind: input, shape index: {}]   ;;  %s6073_s2 = inlined_call_operand.vmem [shape: f32[1,256], index: 2, kind: input, shape index: {}]   ;;  %s6074_s4 = inlined_call_operand.vmem [shape: bf16[64,256], index: 4, kind: input, shape index: {}]   ;;  %s6075_s5 = inlined_call_operand.vmem [shape: bf16[64,256], index: 5, kind: input, shape index: {}]   ;;  %s6076_s7 = inlined_call_operand.vmem [shape: bf16[64,256], index: 7, kind: input, shape index: {}]   ;;  %s6077_s6 = inlined_call_operand.vmem [shape: f32[1,256], index: 6, kind: input, shape index: {}]   ;;  %s6078_s9 = inlined_call_operand.vmem [shape: bf16[64,128], index: 9, kind: input, shape index: {}]   ;;  %s6079_s8 = inlined_call_operand.vmem [shape: bf16[64,128], index: 8, kind: input, shape index: {}]   ;;  %s6080_s10 = inlined_call_operand.vmem [shape: f32[1,128], index: 10, kind: input, shape index: {}]   ;;  %s6081_s11 = inlined_call_operand.vmem [shape: f32[32,128], index: 11, kind: output, shape index: {}]  }
   0x1   :  { %v4425_v0 = vld [vmem:[%s6070_s1 + $0x34] ss:$8 sps:$4 sm:$0xff]   ;;  %153 = vmatprep.mubr.bf16.mxu0 %v4853_v1  ;;  %267 = vmatprep.mubr.bf16.mxu1 %v4853_v1  ;;  %v4427_v2 = vld [vmem:[%s6070_s1 + $0x30] ss:$8 sps:$4 sm:$0xff]   ;;  %v4428_v3 = vld [vmem:[%s6070_s1 + $0x24] ss:$8 sps:$4 sm:$0xff]  }
   0x2   :  { %129 = vmatprep.subr.bf16.mxu0 %v4425_v0  ;;  %v4929_v4 = vld [vmem:[%s6071_s3 + $0x34] ss:$8 sps:$4 sm:$0xff]   ;;  %v4432_v5 = vld [vmem:[%s6070_s1 + $0x20] ss:$8 sps:$4 sm:$0xff]   ;;  %v4937_v6 = vld [vmem:[%s6071_s3 + $0x30] ss:$8 sps:$4 sm:$0xff]  }
   0x3   :  { %130 = vmatpush1.bf16.msra.mxu0 %v4427_v2  ;;  %v4434_v7 = vld [vmem:[%s6070_s1 + $0x14] ss:$8 sps:$4 sm:$0xff]   ;;  %243 = vmatprep.subr.bf16.mxu1 %v4929_v4  ;;  %v4946_v8 = vld [vmem:[%s6071_s3 + $0x24] ss:$8 sps:$4 sm:$0xff]   ;;  %v4952_v9 = vld [vmem:[%s6071_s3 + $0x20] ss:$8 sps:$4 sm:$0xff]  }
   0x4   :  { %131 = vmatprep.subr.bf16.mxu0 %v4428_v3  ;;  %244 = vmatpush1.bf16.msra.mxu1 %v4937_v6  ;;  %v4438_v10 = vld [vmem:[%s6070_s1 + $0x10] ss:$8 sps:$4 sm:$0xff]   ;;  %v4440_v11 = vld [vmem:[%s6070_s1 + $0x4] ss:$8 sps:$4 sm:$0xff]   ;;  %v4964_v12 = vld [vmem:[%s6071_s3 + $0x14] ss:$8 sps:$4 sm:$0xff]  }
   0x5   :  { %245 = vmatprep.subr.bf16.mxu1 %v4946_v8  ;;  %v4444_v13 = vld [vmem:[%s6070_s1] ss:$8 sps:$4 sm:$0xff]   ;;  %v4973_v14 = vld [vmem:[%s6071_s3 + $0x10] ss:$8 sps:$4 sm:$0xff]   ;;  %v4985_v17 = vld [vmem:[%s6071_s3 + $0x4] ss:$8 sps:$4 sm:$0xff]  }
   0x6   :  { %v48_v15 = vld [vmem:[%s6072_s0] sm:$0xff]  ;;  %v49_v16 = vld [vmem:[%s6072_s0 + $0x8] sm:$0xff]  ;;  %v5017_v21 = vshrl.u32 %v39_v20, 7  ;;  %v40_v35 = vand.u32 127, %v39_v20  ;;  %v50_v59 = vld [vmem:[%s6072_s0 + $0x10] sm:$0xff]  ;;  %vm421_vm3 = vcmask 517121  }
   0x7   :  { %132 = vmatpush1.bf16.msra.mxu0 %v4432_v5  ;;  %v52_v18 = vpack.c.bf16 %v49_v16, %v48_v15  ;;  %v4991_v19 = vld [vmem:[%s6071_s3] ss:$8 sps:$4 sm:$0xff]   ;;  %v51_v60 = vld [vmem:[%s6072_s0 + $0x18] sm:$0xff]  ;;  %vm316_vm4 = vcmask 516096   ;;  %vm427_vm5 = vcmask 518146  }
   0x8   :  { %133 = vmatprep.subr.bf16.mxu0 %v4434_v7  ;;  %246 = vmatpush1.bf16.msra.mxu1 %v4952_v9  ;;  %v66_v22 = vsub.s32 0, %v5017_v21  ;;  %v62_v23 = vld [vmem:[%s6073_s2] sm:$0x3]  ;;  %v70_v24 = vsub.s32 1, %v5017_v21  ;;  %v5036_v40 = vadd.s32 128, %v40_v35  ;;  %s4854_s2 = smov 64   ;;  %v53_v61 = vpack.c.bf16 %v51_v60, %v50_v59 }
   0x9   :  { %247 = vmatprep.subr.bf16.mxu1 %v4964_v12 }
   0xa   :  { %v5026_v25 = vrot.slane %v62_v23, %v66_v22  ;;  %v5030_v26 = vrot.slane %v62_v23, %v70_v24  ;;  %vm45_vm1 = vcmp.lt.s32.totalorder %v5036_v40, 192 }
   0xb   :  { %134 = vmatpush1.bf16.msra.mxu0 %v4438_v10 }
   0xc   :  { %135 = vmatprep.subr.bf16.mxu0 %v4440_v11  ;;  %248 = vmatpush1.bf16.msra.mxu1 %v4973_v14 }
   0xd   :  { %249 = vmatprep.subr.bf16.mxu1 %v4985_v17 }
   0xf   :  { %136 = vmatpush1.bf16.msra.mxu0 %v4444_v13 }
  0x10   :  { %339 = vmatprep.subr.bf16.mxu0 %v4929_v4  ;;  %250 = vmatpush1.bf16.msra.mxu1 %v4991_v19 }
  0x11   :  { %445 = vmatprep.subr.bf16.mxu1 %v4929_v4 }
  0x12   :  { %4090 = vmatmul.mubr.msk.bf16.vlgmr.msra.gmra.mxu0 %vm114_vm0, %v52_v18 }
  0x13   :  { %340 = vmatpush1.bf16.msra.mxu0 %v4937_v6  ;;  %163 = vmatprep.mubr.bf16.mxu0 %v4853_v1 }
  0x14   :  { %341 = vmatprep.subr.bf16.mxu0 %v4946_v8  ;;  %268 = vmatmul.mubr.bf16.vlgmr.msra.gmra.mxu1 %v4853_v1 }
  0x15   :  { %446 = vmatpush1.bf16.msra.mxu1 %v4937_v6  ;;  %469 = vmatprep.mubr.bf16.mxu1 %v4853_v1 }
  0x16   :  { %447 = vmatprep.subr.bf16.mxu1 %v4946_v8 }
  0x17   :  { %342 = vmatpush1.bf16.msra.mxu0 %v4952_v9 }
  0x18   :  { %343 = vmatprep.subr.bf16.mxu0 %v4964_v12 }
  0x19   :  { %448 = vmatpush1.bf16.msra.mxu1 %v4952_v9 }
  0x1a   :  { %449 = vmatprep.subr.bf16.mxu1 %v4964_v12  ;;  %4091 = vmatmul.mubr.msk.bf16.gmra.mxu0 %vm114_vm0, %v53_v61 }
  0x1b   :  { %344 = vmatpush1.bf16.msra.mxu0 %v4973_v14  ;;  %363 = vmatprep.mubr.bf16.mxu0 %v4853_v1 }
  0x1c   :  { %345 = vmatprep.subr.bf16.mxu0 %v4985_v17 }
  0x1d   :  { %450 = vmatpush1.bf16.msra.mxu1 %v4973_v14 }
  0x1e   :  { %451 = vmatprep.subr.bf16.mxu1 %v4985_v17 }
  0x1f   :  { %346 = vmatpush1.bf16.msra.mxu0 %v4991_v19 }
  0x20   :  { %550 = vmatprep.subr.bf16.mxu0 %v4929_v4 }
  0x21   :  { %452 = vmatpush1.bf16.msra.mxu1 %v4991_v19 }
  0x22   :  { %655 = vmatprep.subr.bf16.mxu1 %v4929_v4 }
  0xd2   :  { %v155_v27 = vpop.f32.mrf.mxu0 }
  0xd3   :  { %v156_v28 = vadd.f32 %v155_v27, %v5026_v25 }
  0xd4   :  { %v157_v29 = vpop.f32.mrf.mxu0  ;;  %v269_v31 = vpop.f32.mrf.mxu1 }
  0xd5   :  { %174 = vst [vmem:[#allocation2 + $0x30] sm:$0xff] %v156_v28  ;;  %v158_v30 = vadd.f32 %v157_v29, %v5030_v26 }
  0xd6   :  { %v159_v32 = vpop.f32.mrf.mxu0  ;;  %v271_v34 = vpop.f32.mrf.mxu1 }
  0xd7   :  { %175 = vst [vmem:[#allocation2] sm:$0xff] %v158_v30  ;;  %v160_v33 = vadd.f32 %v159_v32, %v5026_v25 }
  0xd8   :  { %v161_v36 = vpop.f32.mrf.mxu0  ;;  %v273_v38 = vpop.f32.mrf.mxu1 }
  0xd9   :  { %176 = vst [vmem:[#allocation2 + $0x18] sm:$0xff] %v160_v33  ;;  %v162_v37 = vadd.f32 %v161_v36, %v5030_v26 }
  0xda   :  { %v274_v39 = vpop.f32.mrf.mxu1  ;;  %v165_v7 = vpop.f32.mrf.mxu0 }
  0xdb   :  { %177 = vst [vmem:[#allocation2 + $0x10] sm:$0xff] %v162_v37  ;;  %v166_v10 = vadd.f32 %v165_v7, %v5026_v25 }
  0xdc   :  { %v190_v41 = vld [vmem:[#allocation2 + $0x30] sm:$0x3]  ;;  %v167_v11 = vpop.f32.mrf.mxu0  ;;  %v324_v27 = vld [vmem:[#allocation2 + $0x30] sm:$0xc]  ;;  %v429_v61 = vld [vmem:[#allocation2 + $0x30] sm:$0x30] }
  0xdd   :  { %v276_v43 = vadd.f32 %v269_v31, %v190_v41  ;;  %178 = vst [vmem:[#allocation2 + $0x8] sm:$0xff] %v166_v10  ;;  %v168_v13 = vadd.f32 %v167_v11, %v5030_v26 }
  0xde   :  { %v191_v42 = vld [vmem:[#allocation2] sm:$0x3]  ;;  %v169_v15 = vpop.f32.mrf.mxu0  ;;  %v325_v31 = vld [vmem:[#allocation2] sm:$0xc] }
  0xdf   :  { %v277_v44 = vadd.f32 %v271_v34, %v191_v42  ;;  %v4100_v46 = vmul.f32 -1.442695, %v276_v43  ;;  %179 = vst [vmem:[#allocation2 + $0x20] sm:$0xff] %v168_v13  ;;  %v170_v16 = vadd.f32 %v169_v15, %v5026_v25 }
  0xe0   :  { %v171_v18 = vpop.f32.mrf.mxu0 }
  0xe1   :  { %v279_v45 = vadd.f32 %v277_v44, %v277_v44  ;;  %180 = vst [vmem:[#allocation2 + $0x28] sm:$0xff] %v170_v16  ;;  %v172_v20 = vadd.f32 %v171_v18, %v5030_v26 }
  0xe3   :  { %v281_v47 = vsel %vm45_vm1, %v279_v45, %v277_v44  ;;  %181 = vst [vmem:[#allocation2 + $0x38] sm:$0xff] %v172_v20 }
  0xe4   :  { %v4101_v48 = vmul.f32 -1.442695, %v281_v47 }
  0xe6   :  { %4501 = vpow2.f32 %v4101_v48 }
  0xe7   :  { %4503 = vpow2.f32 %v4100_v46 }
  0xf3   :  { %v4502_v49 = vpop.eup %4501 }
  0xf4   :  { %v4504_v50 = vpop.eup %4503  ;;  %v289_v51 = vadd.f32 1.0, %v4502_v49 }
  0xf5   :  { %v288_v52 = vadd.f32 1.0, %v4504_v50 }
  0xf6   :  { %4505 = vrcp.f32 %v289_v51 }
  0xf7   :  { %4507 = vrcp.f32 %v288_v52 }
 0x103   :  { %v4506_v53 = vpop.eup %4505 }
 0x104   :  { %v295_v54 = vadd.f32 %v4506_v53, %v4506_v53  ;;  %v4508_v56 = vpop.eup %4507 }
 0x105   :  { %v300_v62 = vmul.f32 0.0, %v4508_v56 }
 0x106   :  { %v4103_v55 = vadd.f32 -1.0, %v295_v54 }
 0x108   :  { %v299_v57 = vsel %vm45_vm1, %v4103_v55, %v4506_v53 }
 0x109   :  { %v301_v58 = vmul.f32 %v4508_v56, %v299_v57 }
 0x10b   :  { %303 = vrot.lane.b32.xlu0 %v301_v58, %s4854_s2 }
 0x17d   :  { %v304_v63 = vpop.permute.xlu0 %303 }
 0x17e   :  { %v306_v0 = vadd.f32 %v304_v63, %v300_v62 }
 0x180   :  { %4509 = vtanh.f32 %v306_v0  ;;  %v403_v44 = vrot.slane %v306_v0, 6 }
 0x18d   :  { %v4510_v2 = vpop.eup %4509 }
 0x18e   :  { %v308_v3 = vmul.f32 %v4510_v2, %v299_v57  ;;  %v430_v2 = vld [vmem:[#allocation2] sm:$0x30] }
 0x190   :  { %v5052_v5 = vpack.c.bf16 %v308_v3, %v308_v3 }
 0x192   :  { %326 = vrot.lane.b32.xlu0 %v5052_v5, %s4854_s2 }
 0x204   :  { %v327_v23 = vpop.permute.xlu0 %326 }
 0x205   :  { %4105 = vmatmul.mubr.msk.bf16.vlgmr.msra.gmra.mxu0 %vm114_vm0, %v327_v23 }
 0x206   :  { %551 = vmatpush1.bf16.msra.mxu0 %v4937_v6  ;;  %574 = vmatprep.mubr.bf16.mxu0 %v4853_v1 }
 0x207   :  { %552 = vmatprep.subr.bf16.mxu0 %v4946_v8 }
 0x20a   :  { %553 = vmatpush1.bf16.msra.mxu0 %v4952_v9 }
 0x20b   :  { %554 = vmatprep.subr.bf16.mxu0 %v4964_v12 }
 0x20e   :  { %555 = vmatpush1.bf16.msra.mxu0 %v4973_v14 }
 0x20f   :  { %556 = vmatprep.subr.bf16.mxu0 %v4985_v17 }
 0x212   :  { %557 = vmatpush1.bf16.msra.mxu0 %v4991_v19 }
 0x213   :  { %752 = vmatprep.subr.bf16.mxu0 %v4929_v4 }
 0x2c5   :  { %v365_v25 = vpop.f32.mrf.mxu0 }
 0x2c6   :  { %v374_v26 = vrot.slane %v365_v25, 6 }
 0x2c7   :  { %v367_v28 = vpop.f32.mrf.mxu0 }
 0x2c8   :  { %v378_v29 = vadd.f32 %v374_v26, %v324_v27  ;;  %v375_v30 = vrot.slane %v367_v28, 6 }
 0x2c9   :  { %v369_v32 = vpop.f32.mrf.mxu0 }
 0x2ca   :  { %v4106_v33 = vmul.f32 -1.442695, %v378_v29  ;;  %v379_v34 = vadd.f32 %v375_v30, %v325_v31 }
 0x2cb   :  { %v370_v35 = vpop.f32.mrf.mxu0 }
 0x2cc   :  { %4511 = vpow2.f32 %v4106_v33  ;;  %v381_v36 = vadd.f32 %v379_v34, %v379_v34 }
 0x2ce   :  { %v383_v37 = vsel %vm45_vm1, %v381_v36, %v379_v34 }
 0x2cf   :  { %v4107_v38 = vmul.f32 -1.442695, %v383_v37 }
 0x2d1   :  { %4513 = vpow2.f32 %v4107_v38 }
 0x2d9   :  { %v4512_v39 = vpop.eup %4511 }
 0x2da   :  { %v390_v41 = vadd.f32 1.0, %v4512_v39 }
 0x2dc   :  { %4515 = vrcp.f32 %v390_v41 }
 0x2de   :  { %v4514_v42 = vpop.eup %4513 }
 0x2df   :  { %v391_v43 = vadd.f32 1.0, %v4514_v42 }
 0x2e1   :  { %4517 = vrcp.f32 %v391_v43 }
 0x2e9   :  { %v4516_v45 = vpop.eup %4515 }
 0x2ea   :  { %v405_v46 = vmul.f32 %v4516_v45, %v403_v44  ;;  %v534_v44 = vld [vmem:[#allocation2 + $0x30] sm:$0xc0] }
 0x2ee   :  { %v4518_v47 = vpop.eup %4517 }
 0x2ef   :  { %v397_v48 = vadd.f32 %v4518_v47, %v4518_v47 }
 0x2f1   :  { %v4109_v49 = vadd.f32 -1.0, %v397_v48  ;;  %v535_v48 = vld [vmem:[#allocation2] sm:$0xc0] }
 0x2f3   :  { %v401_v50 = vsel %vm45_vm1, %v4109_v49, %v4518_v47 }
 0x2f4   :  { %v406_v51 = vmul.f32 %v4516_v45, %v401_v50 }
 0x2f6   :  { %408 = vrot.lane.b32.xlu1 %v406_v51, %s4854_s2 }
 0x368   :  { %v409_v52 = vpop.permute.xlu1 %408 }
 0x369   :  { %v411_v53 = vadd.f32 %v409_v52, %v405_v46 }
 0x36b   :  { %4519 = vtanh.f32 %v411_v53  ;;  %v509_v26 = vrot.slane %v411_v53, 6 }
 0x378   :  { %v4520_v54 = vpop.eup %4519 }
 0x379   :  { %v413_v55 = vmul.f32 %v4520_v54, %v401_v50 }
 0x37b   :  { %v5075_v56 = vpack.c.bf16 %v413_v55, %v413_v55 }
 0x37d   :  { %v431_v57 = vrot.slane %v5075_v56, 1 }
 0x37f   :  { %432 = vrot.lane.b32.xlu1 %v431_v57, %s4854_s2 }
 0x3f1   :  { %v433_v58 = vpop.permute.xlu1 %432 }
 0x3f2   :  { %4111 = vmatmul.mubr.msk.bf16.vlgmr.msra.gmra.mxu1 %vm114_vm0, %v433_v58 }
 0x3f3   :  { %656 = vmatpush1.bf16.msra.mxu1 %v4937_v6  ;;  %679 = vmatprep.mubr.bf16.mxu1 %v4853_v1 }
 0x3f4   :  { %657 = vmatprep.subr.bf16.mxu1 %v4946_v8 }
 0x3f7   :  { %658 = vmatpush1.bf16.msra.mxu1 %v4952_v9 }
 0x3f8   :  { %659 = vmatprep.subr.bf16.mxu1 %v4964_v12 }
 0x3fb   :  { %660 = vmatpush1.bf16.msra.mxu1 %v4973_v14 }
 0x3fc   :  { %661 = vmatprep.subr.bf16.mxu1 %v4985_v17 }
 0x3ff   :  { %662 = vmatpush1.bf16.msra.mxu1 %v4991_v19 }
 0x400   :  { %856 = vmatprep.subr.bf16.mxu1 %v4929_v4 }
 0x4b2   :  { %v471_v59 = vpop.f32.mrf.mxu1 }
 0x4b3   :  { %v480_v60 = vrot.slane %v471_v59, 4 }
 0x4b4   :  { %v473_v62 = vpop.f32.mrf.mxu1 }
 0x4b5   :  { %v484_v63 = vadd.f32 %v480_v60, %v429_v61  ;;  %v481_v0 = vrot.slane %v473_v62, 4 }
 0x4b6   :  { %v475_v3 = vpop.f32.mrf.mxu1 }
 0x4b7   :  { %v4112_v7 = vmul.f32 -1.442695, %v484_v63  ;;  %v485_v10 = vadd.f32 %v481_v0, %v430_v2 }
 0x4b8   :  { %v476_v11 = vpop.f32.mrf.mxu1 }
 0x4b9   :  { %4521 = vpow2.f32 %v4112_v7  ;;  %v487_v13 = vadd.f32 %v485_v10, %v485_v10 }
 0x4bb   :  { %v489_v15 = vsel %vm45_vm1, %v487_v13, %v485_v10 }
 0x4bc   :  { %v4113_v16 = vmul.f32 -1.442695, %v489_v15 }
 0x4be   :  { %4523 = vpow2.f32 %v4113_v16 }
 0x4c6   :  { %v4522_v18 = vpop.eup %4521 }
 0x4c7   :  { %v496_v20 = vadd.f32 1.0, %v4522_v18 }
 0x4c9   :  { %4525 = vrcp.f32 %v496_v20 }
 0x4cb   :  { %v4524_v23 = vpop.eup %4523 }
 0x4cc   :  { %v497_v25 = vadd.f32 1.0, %v4524_v23 }
 0x4ce   :  { %4527 = vrcp.f32 %v497_v25  ;;  %v639_v25 = vld [vmem:[#allocation2 + $0x18] sm:$0x3] }
 0x4d6   :  { %v4526_v27 = vpop.eup %4525 }
 0x4d7   :  { %v511_v28 = vmul.f32 %v4526_v27, %v509_v26 }
 0x4db   :  { %v4528_v29 = vpop.eup %4527 }
 0x4dc   :  { %v503_v30 = vadd.f32 %v4528_v29, %v4528_v29 }
 0x4de   :  { %v4115_v31 = vadd.f32 -1.0, %v503_v30 }
 0x4e0   :  { %v507_v32 = vsel %vm45_vm1, %v4115_v31, %v4528_v29 }
 0x4e1   :  { %v512_v33 = vmul.f32 %v4526_v27, %v507_v32 }
 0x4e3   :  { %514 = vrot.lane.b32.xlu0 %v512_v33, %s4854_s2 }
 0x555   :  { %v515_v34 = vpop.permute.xlu0 %514 }
 0x556   :  { %v517_v35 = vadd.f32 %v515_v34, %v511_v28  ;;  %v640_v28 = vld [vmem:[#allocation2 + $0x10] sm:$0x3] }
 0x558   :  { %4529 = vtanh.f32 %v517_v35  ;;  %v614_v61 = vrot.slane %v517_v35, 6 }
 0x565   :  { %v4530_v36 = vpop.eup %4529 }
 0x566   :  { %v519_v37 = vmul.f32 %v4530_v36, %v507_v32 }
 0x568   :  { %v5094_v38 = vpack.c.bf16 %v519_v37, %v519_v37 }
 0x56a   :  { %v536_v39 = vrot.slane %v5094_v38, 2 }
 0x56c   :  { %537 = vrot.lane.b32.xlu1 %v536_v39, %s4854_s2 }
 0x5de   :  { %v538_v41 = vpop.permute.xlu1 %537 }
 0x5df   :  { %4118 = vmatmul.mubr.msk.bf16.vlgmr.msra.gmra.mxu0 %vm114_vm0, %v538_v41 }
 0x5e0   :  { %753 = vmatpush1.bf16.msra.mxu0 %v4937_v6  ;;  %776 = vmatprep.mubr.bf16.mxu0 %v4853_v1 }
 0x5e1   :  { %754 = vmatprep.subr.bf16.mxu0 %v4946_v8 }
 0x5e4   :  { %755 = vmatpush1.bf16.msra.mxu0 %v4952_v9 }
 0x5e5   :  { %756 = vmatprep.subr.bf16.mxu0 %v4964_v12 }
 0x5e8   :  { %757 = vmatpush1.bf16.msra.mxu0 %v4973_v14 }
 0x5e9   :  { %758 = vmatprep.subr.bf16.mxu0 %v4985_v17 }
 0x5ec   :  { %759 = vmatpush1.bf16.msra.mxu0 %v4991_v19 }
 0x5ed   :  { %961 = vmatprep.subr.bf16.mxu0 %v4929_v4 }
 0x69f   :  { %v576_v42 = vpop.f32.mrf.mxu0 }
 0x6a0   :  { %v585_v43 = vrot.slane %v576_v42, 2 }
 0x6a1   :  { %v578_v45 = vpop.f32.mrf.mxu0 }
 0x6a2   :  { %v589_v46 = vadd.f32 %v585_v43, %v534_v44  ;;  %v586_v47 = vrot.slane %v578_v45, 2 }
 0x6a3   :  { %v580_v49 = vpop.f32.mrf.mxu0 }
 0x6a4   :  { %v4119_v50 = vmul.f32 -1.442695, %v589_v46  ;;  %v590_v51 = vadd.f32 %v586_v47, %v535_v48 }
 0x6a5   :  { %v581_v52 = vpop.f32.mrf.mxu0 }
 0x6a6   :  { %4531 = vpow2.f32 %v4119_v50  ;;  %v592_v53 = vadd.f32 %v590_v51, %v590_v51 }
 0x6a8   :  { %v594_v54 = vsel %vm45_vm1, %v592_v53, %v590_v51 }
 0x6a9   :  { %v4120_v55 = vmul.f32 -1.442695, %v594_v54 }
 0x6ab   :  { %4533 = vpow2.f32 %v4120_v55 }
 0x6b3   :  { %v4532_v57 = vpop.eup %4531 }
 0x6b4   :  { %v601_v58 = vadd.f32 1.0, %v4532_v57 }
 0x6b6   :  { %4535 = vrcp.f32 %v601_v58 }
 0x6b8   :  { %v4534_v59 = vpop.eup %4533 }
 0x6b9   :  { %v602_v60 = vadd.f32 1.0, %v4534_v59 }
 0x6bb   :  { %4537 = vrcp.f32 %v602_v60  ;;  %v737_v60 = vld [vmem:[#allocation2 + $0x18] sm:$0xc] }
 0x6c3   :  { %v4536_v62 = vpop.eup %4535 }
 0x6c4   :  { %v616_v63 = vmul.f32 %v4536_v62, %v614_v61 }
 0x6c8   :  { %v4538_v0 = vpop.eup %4537 }
 0x6c9   :  { %v608_v2 = vadd.f32 %v4538_v0, %v4538_v0 }
 0x6cb   :  { %v4122_v3 = vadd.f32 -1.0, %v608_v2 }
 0x6cd   :  { %v612_v7 = vsel %vm45_vm1, %v4122_v3, %v4538_v0  ;;  %v738_v0 = vld [vmem:[#allocation2 + $0x10] sm:$0xc] }
 0x6ce   :  { %v617_v10 = vmul.f32 %v4536_v62, %v612_v7 }
 0x6d0   :  { %619 = vrot.lane.b32.xlu0 %v617_v10, %s4854_s2 }
 0x742   :  { %v620_v11 = vpop.permute.xlu0 %619 }
 0x743   :  { %v622_v13 = vadd.f32 %v620_v11, %v616_v63 }
 0x745   :  { %4539 = vtanh.f32 %v622_v13  ;;  %v713_v43 = vrot.slane %v622_v13, 6 }
 0x752   :  { %v4540_v15 = vpop.eup %4539 }
 0x753   :  { %v624_v16 = vmul.f32 %v4540_v15, %v612_v7 }
 0x755   :  { %v5113_v18 = vpack.c.bf16 %v624_v16, %v624_v16 }
 0x757   :  { %v641_v20 = vrot.slane %v5113_v18, 3 }
 0x759   :  { %642 = vrot.lane.b32.xlu1 %v641_v20, %s4854_s2 }
 0x7cb   :  { %v643_v23 = vpop.permute.xlu1 %642 }
 0x7cc   :  { %4125 = vmatmul.mubr.msk.bf16.vlgmr.msra.gmra.mxu1 %vm114_vm0, %v643_v23 }
 0x7cd   :  { %857 = vmatpush1.bf16.msra.mxu1 %v4937_v6  ;;  %880 = vmatprep.mubr.bf16.mxu1 %v4853_v1 }
 0x7ce   :  { %858 = vmatprep.subr.bf16.mxu1 %v4946_v8 }
 0x7d1   :  { %859 = vmatpush1.bf16.msra.mxu1 %v4952_v9 }
 0x7d2   :  { %860 = vmatprep.subr.bf16.mxu1 %v4964_v12 }
 0x7d5   :  { %861 = vmatpush1.bf16.msra.mxu1 %v4973_v14 }
 0x7d6   :  { %862 = vmatprep.subr.bf16.mxu1 %v4985_v17 }
 0x7d9   :  { %863 = vmatpush1.bf16.msra.mxu1 %v4991_v19 }
 0x7da   :  { %1066 = vmatprep.subr.bf16.mxu1 %v4929_v4 }
 0x88c   :  { %v681_v26 = vpop.f32.mrf.mxu1 }
 0x88d   :  { %v688_v27 = vadd.f32 %v681_v26, %v639_v25 }
 0x88e   :  { %v683_v29 = vpop.f32.mrf.mxu1 }
 0x88f   :  { %v4126_v30 = vmul.f32 -1.442695, %v688_v27  ;;  %v689_v31 = vadd.f32 %v683_v29, %v640_v28 }
 0x890   :  { %v685_v32 = vpop.f32.mrf.mxu1 }
 0x891   :  { %4541 = vpow2.f32 %v4126_v30  ;;  %v691_v33 = vadd.f32 %v689_v31, %v689_v31 }
 0x892   :  { %v686_v34 = vpop.f32.mrf.mxu1 }
 0x893   :  { %v693_v35 = vsel %vm45_vm1, %v691_v33, %v689_v31 }
 0x894   :  { %v4127_v36 = vmul.f32 -1.442695, %v693_v35 }
 0x896   :  { %4543 = vpow2.f32 %v4127_v36 }
 0x89e   :  { %v4542_v37 = vpop.eup %4541 }
 0x89f   :  { %v700_v39 = vadd.f32 1.0, %v4542_v37 }
 0x8a1   :  { %4545 = vrcp.f32 %v700_v39 }
 0x8a3   :  { %v4544_v41 = vpop.eup %4543 }
 0x8a4   :  { %v701_v42 = vadd.f32 1.0, %v4544_v41 }
 0x8a6   :  { %4547 = vrcp.f32 %v701_v42 }
 0x8ae   :  { %v4546_v44 = vpop.eup %4545 }
 0x8af   :  { %v715_v45 = vmul.f32 %v4546_v44, %v713_v43 }
 0x8b3   :  { %v4548_v46 = vpop.eup %4547 }
 0x8b4   :  { %v707_v47 = vadd.f32 %v4548_v46, %v4548_v46 }
 0x8b6   :  { %v4129_v48 = vadd.f32 -1.0, %v707_v47 }
 0x8b8   :  { %v711_v49 = vsel %vm45_vm1, %v4129_v48, %v4548_v46 }
 0x8b9   :  { %v716_v50 = vmul.f32 %v4546_v44, %v711_v49 }
 0x8bb   :  { %718 = vrot.lane.b32.xlu0 %v716_v50, %s4854_s2 }
 0x92d   :  { %v719_v51 = vpop.permute.xlu0 %718 }
 0x92e   :  { %v721_v52 = vadd.f32 %v719_v51, %v715_v45  ;;  %v840_v45 = vld [vmem:[#allocation2 + $0x18] sm:$0x30] }
 0x930   :  { %4549 = vtanh.f32 %v721_v52  ;;  %v816_v26 = vrot.slane %v721_v52, 6 }
 0x93d   :  { %v4550_v53 = vpop.eup %4549 }
 0x93e   :  { %v723_v54 = vmul.f32 %v4550_v53, %v711_v49  ;;  %v841_v49 = vld [vmem:[#allocation2 + $0x10] sm:$0x30] }
 0x940   :  { %v5132_v55 = vpack.c.bf16 %v723_v54, %v723_v54 }
 0x942   :  { %739 = vrot.lane.b32.xlu1 %v5132_v55, %s4854_s2 }
 0x9b4   :  { %v740_v57 = vpop.permute.xlu1 %739 }
 0x9b5   :  { %4131 = vmatmul.mubr.msk.bf16.vlgmr.msra.gmra.mxu0 %vm114_vm0, %v740_v57 }
 0x9b6   :  { %962 = vmatpush1.bf16.msra.mxu0 %v4937_v6  ;;  %985 = vmatprep.mubr.bf16.mxu0 %v4853_v1 }
 0x9b7   :  { %963 = vmatprep.subr.bf16.mxu0 %v4946_v8 }
 0x9ba   :  { %964 = vmatpush1.bf16.msra.mxu0 %v4952_v9 }
 0x9bb   :  { %965 = vmatprep.subr.bf16.mxu0 %v4964_v12 }
 0x9be   :  { %966 = vmatpush1.bf16.msra.mxu0 %v4973_v14 }
 0x9bf   :  { %967 = vmatprep.subr.bf16.mxu0 %v4985_v17 }
 0x9c2   :  { %968 = vmatpush1.bf16.msra.mxu0 %v4991_v19 }
 0x9c3   :  { %1163 = vmatprep.subr.bf16.mxu0 %v4929_v4 }
 0xa75   :  { %v778_v58 = vpop.f32.mrf.mxu0 }
 0xa76   :  { %v787_v59 = vrot.slane %v778_v58, 6 }
 0xa77   :  { %v780_v61 = vpop.f32.mrf.mxu0 }
 0xa78   :  { %v791_v62 = vadd.f32 %v787_v59, %v737_v60  ;;  %v788_v63 = vrot.slane %v780_v61, 6 }
 0xa79   :  { %v782_v2 = vpop.f32.mrf.mxu0 }
 0xa7a   :  { %v4132_v3 = vmul.f32 -1.442695, %v791_v62  ;;  %v792_v7 = vadd.f32 %v788_v63, %v738_v0 }
 0xa7b   :  { %v783_v10 = vpop.f32.mrf.mxu0 }
 0xa7c   :  { %4551 = vpow2.f32 %v4132_v3  ;;  %v794_v11 = vadd.f32 %v792_v7, %v792_v7 }
 0xa7e   :  { %v796_v13 = vsel %vm45_vm1, %v794_v11, %v792_v7 }
 0xa7f   :  { %v4133_v15 = vmul.f32 -1.442695, %v796_v13 }
 0xa81   :  { %4553 = vpow2.f32 %v4133_v15 }
 0xa89   :  { %v4552_v16 = vpop.eup %4551 }
 0xa8a   :  { %v803_v20 = vadd.f32 1.0, %v4552_v16 }
 0xa8c   :  { %4555 = vrcp.f32 %v803_v20 }
 0xa8e   :  { %v4554_v23 = vpop.eup %4553 }
 0xa8f   :  { %v804_v25 = vadd.f32 1.0, %v4554_v23 }
 0xa91   :  { %4557 = vrcp.f32 %v804_v25 }
 0xa99   :  { %v4556_v27 = vpop.eup %4555 }
 0xa9a   :  { %v818_v28 = vmul.f32 %v4556_v27, %v816_v26 }
 0xa9e   :  { %v4558_v29 = vpop.eup %4557 }
 0xa9f   :  { %v810_v30 = vadd.f32 %v4558_v29, %v4558_v29 }
 0xaa1   :  { %v4135_v31 = vadd.f32 -1.0, %v810_v30  ;;  %v945_v30 = vld [vmem:[#allocation2 + $0x18] sm:$0xc0] }
 0xaa3   :  { %v814_v32 = vsel %vm45_vm1, %v4135_v31, %v4558_v29 }
 0xaa4   :  { %v819_v33 = vmul.f32 %v4556_v27, %v814_v32 }
 0xaa6   :  { %821 = vrot.lane.b32.xlu0 %v819_v33, %s4854_s2 }
 0xb18   :  { %v822_v34 = vpop.permute.xlu0 %821 }
 0xb19   :  { %v824_v35 = vadd.f32 %v822_v34, %v818_v28  ;;  %v946_v34 = vld [vmem:[#allocation2 + $0x10] sm:$0xc0] }
 0xb1b   :  { %4559 = vtanh.f32 %v824_v35  ;;  %v920_v63 = vrot.slane %v824_v35, 6 }
 0xb28   :  { %v4560_v36 = vpop.eup %4559 }
 0xb29   :  { %v826_v37 = vmul.f32 %v4560_v36, %v814_v32 }
 0xb2b   :  { %v5151_v39 = vpack.c.bf16 %v826_v37, %v826_v37 }
 0xb2d   :  { %v842_v41 = vrot.slane %v5151_v39, 1 }
 0xb2f   :  { %843 = vrot.lane.b32.xlu1 %v842_v41, %s4854_s2 }
 0xba1   :  { %v844_v42 = vpop.permute.xlu1 %843 }
 0xba2   :  { %4137 = vmatmul.mubr.msk.bf16.vlgmr.msra.gmra.mxu1 %vm114_vm0, %v844_v42 }
 0xba3   :  { %1067 = vmatpush1.bf16.msra.mxu1 %v4937_v6  ;;  %1090 = vmatprep.mubr.bf16.mxu1 %v4853_v1 }
 0xba4   :  { %1068 = vmatprep.subr.bf16.mxu1 %v4946_v8 }
 0xba7   :  { %1069 = vmatpush1.bf16.msra.mxu1 %v4952_v9 }
 0xba8   :  { %1070 = vmatprep.subr.bf16.mxu1 %v4964_v12 }
 0xbab   :  { %1071 = vmatpush1.bf16.msra.mxu1 %v4973_v14 }
 0xbac   :  { %1072 = vmatprep.subr.bf16.mxu1 %v4985_v17 }
 0xbaf   :  { %1073 = vmatpush1.bf16.msra.mxu1 %v4991_v19 }
 0xbb0   :  { %1267 = vmatprep.subr.bf16.mxu1 %v4929_v4 }
 0xc62   :  { %v882_v43 = vpop.f32.mrf.mxu1 }
 0xc63   :  { %v891_v44 = vrot.slane %v882_v43, 4 }
 0xc64   :  { %v884_v46 = vpop.f32.mrf.mxu1 }
 0xc65   :  { %v895_v47 = vadd.f32 %v891_v44, %v840_v45  ;;  %v892_v48 = vrot.slane %v884_v46, 4 }
 0xc66   :  { %v886_v50 = vpop.f32.mrf.mxu1 }
 0xc67   :  { %v4138_v51 = vmul.f32 -1.442695, %v895_v47  ;;  %v896_v52 = vadd.f32 %v892_v48, %v841_v49 }
 0xc68   :  { %v887_v53 = vpop.f32.mrf.mxu1 }
 0xc69   :  { %4561 = vpow2.f32 %v4138_v51  ;;  %v898_v54 = vadd.f32 %v896_v52, %v896_v52 }
 0xc6b   :  { %v900_v57 = vsel %vm45_vm1, %v898_v54, %v896_v52 }
 0xc6c   :  { %v4139_v58 = vmul.f32 -1.442695, %v900_v57 }
 0xc6e   :  { %4563 = vpow2.f32 %v4139_v58 }
 0xc76   :  { %v4562_v59 = vpop.eup %4561 }
 0xc77   :  { %v907_v60 = vadd.f32 1.0, %v4562_v59 }
 0xc79   :  { %4565 = vrcp.f32 %v907_v60 }
 0xc7b   :  { %v4564_v61 = vpop.eup %4563 }
 0xc7c   :  { %v908_v62 = vadd.f32 1.0, %v4564_v61 }
 0xc7e   :  { %4567 = vrcp.f32 %v908_v62 }
 0xc86   :  { %v4566_v0 = vpop.eup %4565 }
 0xc87   :  { %v922_v2 = vmul.f32 %v4566_v0, %v920_v63 }
 0xc8b   :  { %v4568_v3 = vpop.eup %4567 }
 0xc8c   :  { %v914_v7 = vadd.f32 %v4568_v3, %v4568_v3 }
 0xc8e   :  { %v4141_v10 = vadd.f32 -1.0, %v914_v7 }
 0xc90   :  { %v918_v11 = vsel %vm45_vm1, %v4141_v10, %v4568_v3  ;;  %v1050_v3 = vld [vmem:[#allocation2 + $0x8] sm:$0x3] }
 0xc91   :  { %v923_v13 = vmul.f32 %v4566_v0, %v918_v11 }
 0xc93   :  { %925 = vrot.lane.b32.xlu0 %v923_v13, %s4854_s2 }
 0xd05   :  { %v926_v15 = vpop.permute.xlu0 %925 }
 0xd06   :  { %v928_v16 = vadd.f32 %v926_v15, %v922_v2 }
 0xd08   :  { %4569 = vtanh.f32 %v928_v16  ;;  %v1025_v49 = vrot.slane %v928_v16, 6 }
 0xd15   :  { %v4570_v20 = vpop.eup %4569 }
 0xd16   :  { %v930_v23 = vmul.f32 %v4570_v20, %v918_v11 }
 0xd18   :  { %v5170_v25 = vpack.c.bf16 %v930_v23, %v930_v23 }
 0xd1a   :  { %v947_v26 = vrot.slane %v5170_v25, 2 }
 0xd1c   :  { %948 = vrot.lane.b32.xlu1 %v947_v26, %s4854_s2 }
 0xd8e   :  { %v949_v27 = vpop.permute.xlu1 %948 }
 0xd8f   :  { %4144 = vmatmul.mubr.msk.bf16.vlgmr.msra.gmra.mxu0 %vm114_vm0, %v949_v27 }
 0xd90   :  { %1164 = vmatpush1.bf16.msra.mxu0 %v4937_v6  ;;  %1187 = vmatprep.mubr.bf16.mxu0 %v4853_v1 }
 0xd91   :  { %1165 = vmatprep.subr.bf16.mxu0 %v4946_v8 }
 0xd94   :  { %1166 = vmatpush1.bf16.msra.mxu0 %v4952_v9 }
 0xd95   :  { %1167 = vmatprep.subr.bf16.mxu0 %v4964_v12 }
 0xd98   :  { %1168 = vmatpush1.bf16.msra.mxu0 %v4973_v14 }
 0xd99   :  { %1169 = vmatprep.subr.bf16.mxu0 %v4985_v17 }
 0xd9c   :  { %1170 = vmatpush1.bf16.msra.mxu0 %v4991_v19 }
 0xd9d   :  { %1372 = vmatprep.subr.bf16.mxu0 %v4929_v4 }
 0xe4f   :  { %v987_v28 = vpop.f32.mrf.mxu0 }
 0xe50   :  { %v996_v29 = vrot.slane %v987_v28, 2 }
 0xe51   :  { %v989_v31 = vpop.f32.mrf.mxu0 }
 0xe52   :  { %v1000_v32 = vadd.f32 %v996_v29, %v945_v30  ;;  %v997_v33 = vrot.slane %v989_v31, 2 }
 0xe53   :  { %v991_v35 = vpop.f32.mrf.mxu0 }
 0xe54   :  { %v4145_v36 = vmul.f32 -1.442695, %v1000_v32  ;;  %v1001_v37 = vadd.f32 %v997_v33, %v946_v34 }
 0xe55   :  { %v992_v41 = vpop.f32.mrf.mxu0 }
 0xe56   :  { %4571 = vpow2.f32 %v4145_v36  ;;  %v1003_v42 = vadd.f32 %v1001_v37, %v1001_v37 }
 0xe58   :  { %v1005_v43 = vsel %vm45_vm1, %v1003_v42, %v1001_v37 }
 0xe59   :  { %v4146_v44 = vmul.f32 -1.442695, %v1005_v43 }
 0xe5b   :  { %4573 = vpow2.f32 %v4146_v44  ;;  %v5216_v44 = vld [vmem:[%s6071_s3 + $0x30] ss:$8 sps:$4 sm:$0xff]  }
 0xe63   :  { %v4572_v45 = vpop.eup %4571 }
 0xe64   :  { %v1012_v46 = vadd.f32 1.0, %v4572_v45  ;;  %v5223_v45 = vld [vmem:[%s6071_s3 + $0x24] ss:$8 sps:$4 sm:$0xff]  }
 0xe66   :  { %4575 = vrcp.f32 %v1012_v46  ;;  %v5229_v46 = vld [vmem:[%s6071_s3 + $0x20] ss:$8 sps:$4 sm:$0xff]  }
 0xe68   :  { %v4574_v47 = vpop.eup %4573 }
 0xe69   :  { %v1013_v48 = vadd.f32 1.0, %v4574_v47  ;;  %v5235_v47 = vld [vmem:[%s6071_s3 + $0x14] ss:$8 sps:$4 sm:$0xff]  }
 0xe6b   :  { %4577 = vrcp.f32 %v1013_v48  ;;  %v5241_v48 = vld [vmem:[%s6071_s3 + $0x10] ss:$8 sps:$4 sm:$0xff]  }
 0xe73   :  { %v4576_v50 = vpop.eup %4575 }
 0xe74   :  { %v1027_v51 = vmul.f32 %v4576_v50, %v1025_v49  ;;  %v5249_v49 = vld [vmem:[%s6071_s3 + $0x34] ss:$8 sps:$4 sm:$0xff]  }
 0xe78   :  { %v4578_v52 = vpop.eup %4577 }
 0xe79   :  { %v1019_v53 = vadd.f32 %v4578_v52, %v4578_v52 }
 0xe7b   :  { %v4148_v54 = vadd.f32 -1.0, %v1019_v53 }
 0xe7d   :  { %v1023_v57 = vsel %vm45_vm1, %v4148_v54, %v4578_v52  ;;  %v1148_v52 = vld [vmem:[#allocation2 + $0x8] sm:$0xc] }
 0xe7e   :  { %v1028_v58 = vmul.f32 %v4576_v50, %v1023_v57 }
 0xe80   :  { %1030 = vrot.lane.b32.xlu0 %v1028_v58, %s4854_s2  ;;  %v1149_v58 = vld [vmem:[#allocation2 + $0x20] sm:$0xc] }
 0xef2   :  { %v1031_v59 = vpop.permute.xlu0 %1030 }
 0xef3   :  { %v1033_v60 = vadd.f32 %v1031_v59, %v1027_v51 }
 0xef5   :  { %4579 = vtanh.f32 %v1033_v60  ;;  %v1124_v27 = vrot.slane %v1033_v60, 6 }
 0xf02   :  { %v4580_v61 = vpop.eup %4579 }
 0xf03   :  { %v1035_v62 = vmul.f32 %v4580_v61, %v1023_v57 }
 0xf05   :  { %v5189_v63 = vpack.c.bf16 %v1035_v62, %v1035_v62 }
 0xf07   :  { %v1052_v0 = vrot.slane %v5189_v63, 3 }
 0xf09   :  { %1053 = vrot.lane.b32.xlu1 %v1052_v0, %s4854_s2 }
 0xf7b   :  { %v1054_v2 = vpop.permute.xlu1 %1053 }
 0xf7c   :  { %4151 = vmatmul.mubr.msk.bf16.vlgmr.msra.gmra.mxu1 %vm114_vm0, %v1054_v2 }
 0xf7d   :  { %1268 = vmatpush1.bf16.msra.mxu1 %v4937_v6  ;;  %1291 = vmatprep.mubr.bf16.mxu1 %v4853_v1  ;;  %v1051_v6 = vld [vmem:[#allocation2 + $0x20] sm:$0x3] }
 0xf7e   :  { %1269 = vmatprep.subr.bf16.mxu1 %v4946_v8 }
 0xf81   :  { %1270 = vmatpush1.bf16.msra.mxu1 %v4952_v9 }
 0xf82   :  { %1271 = vmatprep.subr.bf16.mxu1 %v4964_v12 }
 0xf85   :  { %1272 = vmatpush1.bf16.msra.mxu1 %v4973_v14 }
 0xf86   :  { %1273 = vmatprep.subr.bf16.mxu1 %v4985_v17 }
 0xf89   :  { %1274 = vmatpush1.bf16.msra.mxu1 %v4991_v19 }
 0xf8a   :  { %1477 = vmatprep.subr.bf16.mxu1 %v4929_v4 }
0x103c   :  { %v1092_v7 = vpop.f32.mrf.mxu1 }
0x103d   :  { %v1099_v10 = vadd.f32 %v1092_v7, %v1050_v3 }
0x103e   :  { %v1094_v11 = vpop.f32.mrf.mxu1 }
0x103f   :  { %v4152_v13 = vmul.f32 -1.442695, %v1099_v10  ;;  %v1100_v15 = vadd.f32 %v1094_v11, %v1051_v6 }
0x1040   :  { %v1096_v8 = vpop.f32.mrf.mxu1 }
0x1041   :  { %4581 = vpow2.f32 %v4152_v13  ;;  %v1102_v9 = vadd.f32 %v1100_v15, %v1100_v15 }
0x1042   :  { %v1097_v16 = vpop.f32.mrf.mxu1 }
0x1043   :  { %v1104_v12 = vsel %vm45_vm1, %v1102_v9, %v1100_v15 }
0x1044   :  { %v4153_v14 = vmul.f32 -1.442695, %v1104_v12 }
0x1046   :  { %4583 = vpow2.f32 %v4153_v14 }
0x104e   :  { %v4582_v20 = vpop.eup %4581 }
0x104f   :  { %v1111_v23 = vadd.f32 1.0, %v4582_v20 }
0x1051   :  { %4585 = vrcp.f32 %v1111_v23 }
0x1053   :  { %v4584_v4 = vpop.eup %4583 }
0x1054   :  { %v1112_v26 = vadd.f32 1.0, %v4584_v4 }
0x1056   :  { %4587 = vrcp.f32 %v1112_v26 }
0x105e   :  { %v4586_v28 = vpop.eup %4585 }
0x105f   :  { %v1126_v29 = vmul.f32 %v4586_v28, %v1124_v27 }
0x1063   :  { %v4588_v30 = vpop.eup %4587 }
0x1064   :  { %v1118_v31 = vadd.f32 %v4588_v30, %v4588_v30 }
0x1066   :  { %v4155_v32 = vadd.f32 -1.0, %v1118_v31 }
0x1068   :  { %v1122_v33 = vsel %vm45_vm1, %v4155_v32, %v4588_v30  ;;  %v5277_v30 = vld [vmem:[%s6071_s3] ss:$8 sps:$4 sm:$0xff]  }
0x1069   :  { %v1127_v34 = vmul.f32 %v4586_v28, %v1122_v33 }
0x106b   :  { %1129 = vrot.lane.b32.xlu0 %v1127_v34, %s4854_s2 }
0x10dd   :  { %v1130_v35 = vpop.permute.xlu0 %1129 }
0x10de   :  { %v1132_v36 = vadd.f32 %v1130_v35, %v1126_v29  ;;  %v5271_v29 = vld [vmem:[%s6071_s3 + $0x4] ss:$8 sps:$4 sm:$0xff]  }
0x10e0   :  { %4589 = vtanh.f32 %v1132_v36  ;;  %v1227_v6 = vrot.slane %v1132_v36, 6 }
0x10ed   :  { %v4590_v37 = vpop.eup %4589 }
0x10ee   :  { %v1134_v41 = vmul.f32 %v4590_v37, %v1122_v33  ;;  %v1251_v33 = vld [vmem:[#allocation2 + $0x8] sm:$0x30]  ;;  %v1252_v37 = vld [vmem:[#allocation2 + $0x20] sm:$0x30] }
0x10f0   :  { %v5208_v42 = vpack.c.bf16 %v1134_v41, %v1134_v41 }
0x10f2   :  { %1150 = vrot.lane.b32.xlu1 %v5208_v42, %s4854_s2 }
0x1164   :  { %v1151_v43 = vpop.permute.xlu1 %1150 }
0x1165   :  { %4157 = vmatmul.mubr.msk.bf16.vlgmr.msra.gmra.mxu0 %vm114_vm0, %v1151_v43 }
0x1166   :  { %1373 = vmatpush1.bf16.msra.mxu0 %v5216_v44  ;;  %1396 = vmatprep.mubr.bf16.mxu0 %v4853_v1 }
0x1167   :  { %1374 = vmatprep.subr.bf16.mxu0 %v5223_v45 }
0x116a   :  { %1375 = vmatpush1.bf16.msra.mxu0 %v5229_v46 }
0x116b   :  { %1376 = vmatprep.subr.bf16.mxu0 %v5235_v47 }
0x116e   :  { %1377 = vmatpush1.bf16.msra.mxu0 %v5241_v48 }
0x116f   :  { %1378 = vmatprep.subr.bf16.mxu0 %v4985_v17 }
0x1172   :  { %1379 = vmatpush1.bf16.msra.mxu0 %v4991_v19 }
0x1173   :  { %1574 = vmatprep.subr.bf16.mxu0 %v5249_v49 }
0x1225   :  { %v1189_v50 = vpop.f32.mrf.mxu0 }
0x1226   :  { %v1198_v51 = vrot.slane %v1189_v50, 6 }
0x1227   :  { %v1191_v53 = vpop.f32.mrf.mxu0 }
0x1228   :  { %v1202_v54 = vadd.f32 %v1198_v51, %v1148_v52  ;;  %v1199_v57 = vrot.slane %v1191_v53, 6 }
0x1229   :  { %v1193_v59 = vpop.f32.mrf.mxu0 }
0x122a   :  { %v4158_v60 = vmul.f32 -1.442695, %v1202_v54  ;;  %v1203_v61 = vadd.f32 %v1199_v57, %v1149_v58 }
0x122b   :  { %v1194_v17 = vpop.f32.mrf.mxu0 }
0x122c   :  { %4591 = vpow2.f32 %v4158_v60  ;;  %v1205_v19 = vadd.f32 %v1203_v61, %v1203_v61 }
0x122e   :  { %v1207_v62 = vsel %vm45_vm1, %v1205_v19, %v1203_v61 }
0x122f   :  { %v4159_v0 = vmul.f32 -1.442695, %v1207_v62 }
0x1231   :  { %4593 = vpow2.f32 %v4159_v0 }
0x1239   :  { %v4592_v2 = vpop.eup %4591 }
0x123a   :  { %v1214_v3 = vadd.f32 1.0, %v4592_v2 }
0x123c   :  { %4595 = vrcp.f32 %v1214_v3 }
0x123e   :  { %v4594_v7 = vpop.eup %4593 }
0x123f   :  { %v1215_v10 = vadd.f32 1.0, %v4594_v7 }
0x1241   :  { %4597 = vrcp.f32 %v1215_v10 }
0x1249   :  { %v4596_v11 = vpop.eup %4595 }
0x124a   :  { %v1229_v13 = vmul.f32 %v4596_v11, %v1227_v6 }
0x124e   :  { %v4598_v15 = vpop.eup %4597 }
0x124f   :  { %v1221_v8 = vadd.f32 %v4598_v15, %v4598_v15 }
0x1251   :  { %v4161_v9 = vadd.f32 -1.0, %v1221_v8 }
0x1253   :  { %v1225_v16 = vsel %vm45_vm1, %v4161_v9, %v4598_v15 }
0x1254   :  { %v1230_v12 = vmul.f32 %v4596_v11, %v1225_v16 }
0x1256   :  { %1232 = vrot.lane.b32.xlu0 %v1230_v12, %s4854_s2 }
0x12c8   :  { %v1233_v14 = vpop.permute.xlu0 %1232 }
0x12c9   :  { %v1235_v20 = vadd.f32 %v1233_v14, %v1229_v13  ;;  %v1356_v14 = vld [vmem:[#allocation2 + $0x8] sm:$0xc0] }
0x12cb   :  { %4599 = vtanh.f32 %v1235_v20  ;;  %v1331_v61 = vrot.slane %v1235_v20, 6 }
0x12d8   :  { %v4600_v23 = vpop.eup %4599 }
0x12d9   :  { %v1237_v4 = vmul.f32 %v4600_v23, %v1225_v16 }
0x12db   :  { %v5257_v26 = vpack.c.bf16 %v1237_v4, %v1237_v4 }
0x12dd   :  { %v1253_v27 = vrot.slane %v5257_v26, 1 }
0x12df   :  { %1254 = vrot.lane.b32.xlu1 %v1253_v27, %s4854_s2  ;;  %v1357_v27 = vld [vmem:[#allocation2 + $0x20] sm:$0xc0] }
0x1351   :  { %v1255_v28 = vpop.permute.xlu1 %1254 }
0x1352   :  { %4163 = vmatmul.mubr.msk.bf16.vlgmr.msra.gmra.mxu1 %vm114_vm0, %v1255_v28 }
0x1353   :  { %1478 = vmatpush1.bf16.msra.mxu1 %v5216_v44  ;;  %1501 = vmatprep.mubr.bf16.mxu1 %v4853_v1 }
0x1354   :  { %1479 = vmatprep.subr.bf16.mxu1 %v5223_v45 }
0x1357   :  { %1480 = vmatpush1.bf16.msra.mxu1 %v5229_v46 }
0x1358   :  { %1481 = vmatprep.subr.bf16.mxu1 %v5235_v47 }
0x135b   :  { %1482 = vmatpush1.bf16.msra.mxu1 %v5241_v48 }
0x135c   :  { %1483 = vmatprep.subr.bf16.mxu1 %v5271_v29 }
0x135f   :  { %1484 = vmatpush1.bf16.msra.mxu1 %v5277_v30 }
0x1360   :  { %1678 = vmatprep.subr.bf16.mxu1 %v5249_v49 }
0x1412   :  { %v1293_v31 = vpop.f32.mrf.mxu1 }
0x1413   :  { %v1302_v32 = vrot.slane %v1293_v31, 4 }
0x1414   :  { %v1295_v34 = vpop.f32.mrf.mxu1 }
0x1415   :  { %v1306_v35 = vadd.f32 %v1302_v32, %v1251_v33  ;;  %v1303_v36 = vrot.slane %v1295_v34, 4 }
0x1416   :  { %v1297_v41 = vpop.f32.mrf.mxu1 }
0x1417   :  { %v4164_v43 = vmul.f32 -1.442695, %v1306_v35  ;;  %v1307_v50 = vadd.f32 %v1303_v36, %v1252_v37 }
0x1418   :  { %v1298_v51 = vpop.f32.mrf.mxu1 }
0x1419   :  { %4601 = vpow2.f32 %v4164_v43  ;;  %v1309_v52 = vadd.f32 %v1307_v50, %v1307_v50 }
0x141b   :  { %v1311_v53 = vsel %vm45_vm1, %v1309_v52, %v1307_v50 }
0x141c   :  { %v4165_v54 = vmul.f32 -1.442695, %v1311_v53 }
0x141e   :  { %4603 = vpow2.f32 %v4165_v54 }
0x1426   :  { %v4602_v57 = vpop.eup %4601 }
0x1427   :  { %v1318_v58 = vadd.f32 1.0, %v4602_v57 }
0x1429   :  { %4605 = vrcp.f32 %v1318_v58 }
0x142b   :  { %v4604_v59 = vpop.eup %4603 }
0x142c   :  { %v1319_v60 = vadd.f32 1.0, %v4604_v59 }
0x142e   :  { %4607 = vrcp.f32 %v1319_v60 }
0x1436   :  { %v4606_v17 = vpop.eup %4605 }
0x1437   :  { %v1333_v19 = vmul.f32 %v4606_v17, %v1331_v61 }
0x143b   :  { %v4608_v62 = vpop.eup %4607 }
0x143c   :  { %v1325_v0 = vadd.f32 %v4608_v62, %v4608_v62 }
0x143e   :  { %v4167_v2 = vadd.f32 -1.0, %v1325_v0 }
0x1440   :  { %v1329_v3 = vsel %vm45_vm1, %v4167_v2, %v4608_v62 }
0x1441   :  { %v1334_v7 = vmul.f32 %v4606_v17, %v1329_v3 }
0x1443   :  { %1336 = vrot.lane.b32.xlu0 %v1334_v7, %s4854_s2 }
0x14b5   :  { %v1337_v10 = vpop.permute.xlu0 %1336 }
0x14b6   :  { %v1339_v6 = vadd.f32 %v1337_v10, %v1333_v19 }
0x14b8   :  { %4609 = vtanh.f32 %v1339_v6  ;;  %v1436_v50 = vrot.slane %v1339_v6, 6  ;;  %v1462_v6 = vld [vmem:[#allocation2 + $0x38] sm:$0x3] }
0x14c5   :  { %v4610_v11 = vpop.eup %4609 }
0x14c6   :  { %v1341_v13 = vmul.f32 %v4610_v11, %v1329_v3  ;;  %v1461_v3 = vld [vmem:[#allocation2 + $0x28] sm:$0x3] }
0x14c8   :  { %v5286_v15 = vpack.c.bf16 %v1341_v13, %v1341_v13 }
0x14ca   :  { %v1358_v8 = vrot.slane %v5286_v15, 2 }
0x14cc   :  { %1359 = vrot.lane.b32.xlu1 %v1358_v8, %s4854_s2 }
0x153e   :  { %v1360_v9 = vpop.permute.xlu1 %1359 }
0x153f   :  { %4170 = vmatmul.mubr.msk.bf16.vlgmr.msra.gmra.mxu0 %vm114_vm0, %v1360_v9 }
0x1540   :  { %1575 = vmatpush1.bf16.msra.mxu0 %v5216_v44  ;;  %1598 = vmatprep.mubr.bf16.mxu0 %v4853_v1 }
0x1541   :  { %1576 = vmatprep.subr.bf16.mxu0 %v5223_v45 }
0x1544   :  { %1577 = vmatpush1.bf16.msra.mxu0 %v5229_v46 }
0x1545   :  { %1578 = vmatprep.subr.bf16.mxu0 %v5235_v47 }
0x1548   :  { %1579 = vmatpush1.bf16.msra.mxu0 %v5241_v48 }
0x1549   :  { %1580 = vmatprep.subr.bf16.mxu0 %v5271_v29 }
0x154c   :  { %1581 = vmatpush1.bf16.msra.mxu0 %v5277_v30 }
0x154d   :  { %1783 = vmatprep.subr.bf16.mxu0 %v5249_v49 }
0x15ff   :  { %v1398_v16 = vpop.f32.mrf.mxu0 }
0x1600   :  { %v1407_v12 = vrot.slane %v1398_v16, 2 }
0x1601   :  { %v1400_v20 = vpop.f32.mrf.mxu0 }
0x1602   :  { %v1411_v23 = vadd.f32 %v1407_v12, %v1356_v14  ;;  %v1408_v4 = vrot.slane %v1400_v20, 2 }
0x1603   :  { %v1402_v28 = vpop.f32.mrf.mxu0 }
0x1604   :  { %v4171_v31 = vmul.f32 -1.442695, %v1411_v23  ;;  %v1412_v32 = vadd.f32 %v1408_v4, %v1357_v27 }
0x1605   :  { %v1403_v33 = vpop.f32.mrf.mxu0 }
0x1606   :  { %4611 = vpow2.f32 %v4171_v31  ;;  %v1414_v34 = vadd.f32 %v1412_v32, %v1412_v32 }
0x1608   :  { %v1416_v35 = vsel %vm45_vm1, %v1414_v34, %v1412_v32 }
0x1609   :  { %v4172_v36 = vmul.f32 -1.442695, %v1416_v35 }
0x160b   :  { %4613 = vpow2.f32 %v4172_v36 }
0x1613   :  { %v4612_v37 = vpop.eup %4611 }
0x1614   :  { %v1423_v49 = vadd.f32 1.0, %v4612_v37 }
0x1616   :  { %4615 = vrcp.f32 %v1423_v49 }
0x1618   :  { %v4614_v41 = vpop.eup %4613 }
0x1619   :  { %v1424_v43 = vadd.f32 1.0, %v4614_v41 }
0x161b   :  { %4617 = vrcp.f32 %v1424_v43 }
0x1623   :  { %v4616_v51 = vpop.eup %4615 }
0x1624   :  { %v1438_v52 = vmul.f32 %v4616_v51, %v1436_v50 }
0x1628   :  { %v4618_v53 = vpop.eup %4617 }
0x1629   :  { %v1430_v54 = vadd.f32 %v4618_v53, %v4618_v53 }
0x162b   :  { %v4174_v57 = vadd.f32 -1.0, %v1430_v54 }
0x162d   :  { %v1434_v58 = vsel %vm45_vm1, %v4174_v57, %v4618_v53 }
0x162e   :  { %v1439_v59 = vmul.f32 %v4616_v51, %v1434_v58 }
0x1630   :  { %1441 = vrot.lane.b32.xlu0 %v1439_v59, %s4854_s2 }
0x16a2   :  { %v1442_v60 = vpop.permute.xlu0 %1441 }
0x16a3   :  { %v1444_v61 = vadd.f32 %v1442_v60, %v1438_v52 }
0x16a5   :  { %4619 = vtanh.f32 %v1444_v61  ;;  %v1535_v31 = vrot.slane %v1444_v61, 6  ;;  %v1560_v61 = vld [vmem:[#allocation2 + $0x38] sm:$0xc] }
0x16b2   :  { %v4620_v17 = vpop.eup %4619 }
0x16b3   :  { %v1446_v19 = vmul.f32 %v4620_v17, %v1434_v58  ;;  %v1559_v58 = vld [vmem:[#allocation2 + $0x28] sm:$0xc] }
0x16b5   :  { %v5305_v62 = vpack.c.bf16 %v1446_v19, %v1446_v19 }
0x16b7   :  { %v1463_v0 = vrot.slane %v5305_v62, 3 }
0x16b9   :  { %1464 = vrot.lane.b32.xlu1 %v1463_v0, %s4854_s2 }
0x172b   :  { %v1465_v2 = vpop.permute.xlu1 %1464 }
0x172c   :  { %4177 = vmatmul.mubr.msk.bf16.vlgmr.msra.gmra.mxu1 %vm114_vm0, %v1465_v2 }
0x172d   :  { %1679 = vmatpush1.bf16.msra.mxu1 %v5216_v44  ;;  %1702 = vmatprep.mubr.bf16.mxu1 %v4853_v1 }
0x172e   :  { %1680 = vmatprep.subr.bf16.mxu1 %v5223_v45 }
0x1731   :  { %1681 = vmatpush1.bf16.msra.mxu1 %v5229_v46 }
0x1732   :  { %1682 = vmatprep.subr.bf16.mxu1 %v5235_v47 }
0x1735   :  { %1683 = vmatpush1.bf16.msra.mxu1 %v5241_v48 }
0x1736   :  { %1684 = vmatprep.subr.bf16.mxu1 %v5271_v29 }
0x1739   :  { %1685 = vmatpush1.bf16.msra.mxu1 %v5277_v30 }
0x17ec   :  { %v1503_v7 = vpop.f32.mrf.mxu1 }
0x17ed   :  { %v1510_v10 = vadd.f32 %v1503_v7, %v1461_v3 }
0x17ee   :  { %v1505_v11 = vpop.f32.mrf.mxu1 }
0x17ef   :  { %v4178_v13 = vmul.f32 -1.442695, %v1510_v10  ;;  %v1511_v8 = vadd.f32 %v1505_v11, %v1462_v6 }
0x17f0   :  { %v1507_v9 = vpop.f32.mrf.mxu1 }
0x17f1   :  { %4621 = vpow2.f32 %v4178_v13  ;;  %v1513_v16 = vadd.f32 %v1511_v8, %v1511_v8 }
0x17f2   :  { %v1508_v12 = vpop.f32.mrf.mxu1 }
0x17f3   :  { %v1515_v14 = vsel %vm45_vm1, %v1513_v16, %v1511_v8 }
0x17f4   :  { %v4179_v20 = vmul.f32 -1.442695, %v1515_v14 }
0x17f6   :  { %4623 = vpow2.f32 %v4179_v20 }
0x17fe   :  { %v4622_v23 = vpop.eup %4621 }
0x17ff   :  { %v1522_v4 = vadd.f32 1.0, %v4622_v23 }
0x1801   :  { %4625 = vrcp.f32 %v1522_v4 }
0x1803   :  { %v4624_v27 = vpop.eup %4623 }
0x1804   :  { %v1523_v28 = vadd.f32 1.0, %v4624_v27 }
0x1806   :  { %4627 = vrcp.f32 %v1523_v28 }
0x180e   :  { %v4626_v32 = vpop.eup %4625 }
0x180f   :  { %v1537_v33 = vmul.f32 %v4626_v32, %v1535_v31 }
0x1813   :  { %v4628_v34 = vpop.eup %4627 }
0x1814   :  { %v1529_v35 = vadd.f32 %v4628_v34, %v4628_v34 }
0x1816   :  { %v4181_v36 = vadd.f32 -1.0, %v1529_v35 }
0x1818   :  { %v1533_v37 = vsel %vm45_vm1, %v4181_v36, %v4628_v34 }
0x1819   :  { %v1538_v49 = vmul.f32 %v4626_v32, %v1533_v37 }
0x181b   :  { %1540 = vrot.lane.b32.xlu0 %v1538_v49, %s4854_s2 }
0x188d   :  { %v1541_v41 = vpop.permute.xlu0 %1540 }
0x188e   :  { %v1543_v43 = vadd.f32 %v1541_v41, %v1537_v33  ;;  %v1662_v33 = vld [vmem:[#allocation2 + $0x28] sm:$0x30] }
0x1890   :  { %4629 = vtanh.f32 %v1543_v43  ;;  %v1638_v7 = vrot.slane %v1543_v43, 6 }
0x189d   :  { %v4630_v50 = vpop.eup %4629 }
0x189e   :  { %v1545_v51 = vmul.f32 %v4630_v50, %v1533_v37  ;;  %v1663_v37 = vld [vmem:[#allocation2 + $0x38] sm:$0x30] }
0x18a0   :  { %v5323_v52 = vpack.c.bf16 %v1545_v51, %v1545_v51 }
0x18a2   :  { %1561 = vrot.lane.b32.xlu1 %v5323_v52, %s4854_s2 }
0x1914   :  { %v1562_v53 = vpop.permute.xlu1 %1561 }
0x1915   :  { %4183 = vmatmul.mubr.msk.bf16.vlgmr.msra.gmra.mxu0 %vm114_vm0, %v1562_v53 }
0x1916   :  { %1784 = vmatpush1.bf16.msra.mxu0 %v5216_v44  ;;  %1807 = vmatprep.mubr.bf16.mxu0 %v4853_v1 }
0x1917   :  { %1785 = vmatprep.subr.bf16.mxu0 %v5223_v45 }
0x191a   :  { %1786 = vmatpush1.bf16.msra.mxu0 %v5229_v46 }
0x191b   :  { %1787 = vmatprep.subr.bf16.mxu0 %v5235_v47 }
0x191e   :  { %1788 = vmatpush1.bf16.msra.mxu0 %v5241_v48 }
0x191f   :  { %1789 = vmatprep.subr.bf16.mxu0 %v5271_v29 }
0x1922   :  { %1790 = vmatpush1.bf16.msra.mxu0 %v5277_v30 }
0x19d5   :  { %v1600_v54 = vpop.f32.mrf.mxu0 }
0x19d6   :  { %v1609_v57 = vrot.slane %v1600_v54, 6 }
0x19d7   :  { %v1602_v59 = vpop.f32.mrf.mxu0 }
0x19d8   :  { %v1613_v60 = vadd.f32 %v1609_v57, %v1559_v58  ;;  %v1610_v44 = vrot.slane %v1602_v59, 6 }
0x19d9   :  { %v1604_v17 = vpop.f32.mrf.mxu0 }
0x19da   :  { %v4184_v19 = vmul.f32 -1.442695, %v1613_v60  ;;  %v1614_v45 = vadd.f32 %v1610_v44, %v1560_v61 }
0x19db   :  { %v1605_v0 = vpop.f32.mrf.mxu0 }
0x19dc   :  { %4631 = vpow2.f32 %v4184_v19  ;;  %v1616_v46 = vadd.f32 %v1614_v45, %v1614_v45 }
0x19de   :  { %v1618_v47 = vsel %vm45_vm1, %v1616_v46, %v1614_v45 }
0x19df   :  { %v4185_v48 = vmul.f32 -1.442695, %v1618_v47 }
0x19e1   :  { %4633 = vpow2.f32 %v4185_v48 }
0x19e9   :  { %v4632_v29 = vpop.eup %4631 }
0x19ea   :  { %v1625_v30 = vadd.f32 1.0, %v4632_v29 }
0x19ec   :  { %4635 = vrcp.f32 %v1625_v30 }
0x19ee   :  { %v4634_v2 = vpop.eup %4633 }
0x19ef   :  { %v1626_v3 = vadd.f32 1.0, %v4634_v2 }
0x19f1   :  { %4637 = vrcp.f32 %v1626_v3 }
0x19f9   :  { %v4636_v10 = vpop.eup %4635 }
0x19fa   :  { %v1640_v6 = vmul.f32 %v4636_v10, %v1638_v7 }
0x19fe   :  { %v4638_v11 = vpop.eup %4637 }
0x19ff   :  { %v1632_v13 = vadd.f32 %v4638_v11, %v4638_v11 }
0x1a01   :  { %v4187_v8 = vadd.f32 -1.0, %v1632_v13 }
0x1a03   :  { %v1636_v9 = vsel %vm45_vm1, %v4187_v8, %v4638_v11  ;;  %v1554_v11 = vrot.slane %v5323_v52, 5  ;;  %v318_v8 = vrot.slane %v5052_v5, 5 }
0x1a04   :  { %v1641_v16 = vmul.f32 %v4636_v10, %v1636_v9  ;;  %v1143_v10 = vrot.slane %v5208_v42, 5 }
0x1a06   :  { %1643 = vrot.lane.b32.xlu0 %v1641_v16, %s4854_s2  ;;  %v732_v16 = vrot.slane %v5132_v55, 5 }
0x1a78   :  { %v1644_v12 = vpop.permute.xlu0 %1643 }
0x1a79   :  { %v1646_v14 = vadd.f32 %v1644_v12, %v1640_v6  ;;  %v4169_v6 = vrot.slane %v5286_v15, 9  ;;  %v4143_v12 = vrot.slane %v5170_v25, 9 }
0x1a7b   :  { %4639 = vtanh.f32 %v1646_v14  ;;  %v1742_v44 = vrot.slane %v1646_v14, 6 }
0x1a88   :  { %v4640_v20 = vpop.eup %4639 }
0x1a89   :  { %v1648_v23 = vmul.f32 %v4640_v20, %v1636_v9  ;;  %v4117_v9 = vrot.slane %v5094_v38, 9 }
0x1a8b   :  { %v5341_v4 = vpack.c.bf16 %v1648_v23, %v1648_v23 }
0x1a8d   :  { %v1664_v27 = vrot.slane %v5341_v4, 1 }
0x1a8f   :  { %1665 = vrot.lane.b32.xlu1 %v1664_v27, %s4854_s2 }
0x1b01   :  { %v1666_v28 = vpop.permute.xlu1 %1665 }
0x1b02   :  { %4189 = vmatmul.mubr.msk.bf16.vlgmr.msra.gmra.mxu1 %vm114_vm0, %v1666_v28 }
0x1b03   :  { %1984 = vmatprep.mubr.bf16.mxu1 %v4853_v1 }
0x1bc2   :  { %v1704_v31 = vpop.f32.mrf.mxu1 }
0x1bc3   :  { %v1713_v32 = vrot.slane %v1704_v31, 4 }
0x1bc4   :  { %v1706_v34 = vpop.f32.mrf.mxu1 }
0x1bc5   :  { %v1717_v35 = vadd.f32 %v1713_v32, %v1662_v33  ;;  %v1714_v36 = vrot.slane %v1706_v34, 4 }
0x1bc6   :  { %v1708_v49 = vpop.f32.mrf.mxu1 }
0x1bc7   :  { %v4190_v41 = vmul.f32 -1.442695, %v1717_v35  ;;  %v1718_v43 = vadd.f32 %v1714_v36, %v1663_v37  ;;  %v1767_v37 = vld [vmem:[#allocation2 + $0x28] sm:$0xc0] }
0x1bc8   :  { %v1709_v50 = vpop.f32.mrf.mxu1 }
0x1bc9   :  { %4641 = vpow2.f32 %v4190_v41  ;;  %v1720_v51 = vadd.f32 %v1718_v43, %v1718_v43  ;;  %v1768_v50 = vld [vmem:[#allocation2 + $0x38] sm:$0xc0] }
0x1bcb   :  { %v1722_v53 = vsel %vm45_vm1, %v1720_v51, %v1718_v43 }
0x1bcc   :  { %v4191_v54 = vmul.f32 -1.442695, %v1722_v53 }
0x1bce   :  { %4643 = vpow2.f32 %v4191_v54 }
0x1bd6   :  { %v4642_v57 = vpop.eup %4641 }
0x1bd7   :  { %v1729_v58 = vadd.f32 1.0, %v4642_v57 }
0x1bd9   :  { %4645 = vrcp.f32 %v1729_v58 }
0x1bdb   :  { %v4644_v59 = vpop.eup %4643 }
0x1bdc   :  { %v1730_v60 = vadd.f32 1.0, %v4644_v59 }
0x1bde   :  { %4647 = vrcp.f32 %v1730_v60 }
0x1be6   :  { %v4646_v61 = vpop.eup %4645 }
0x1be7   :  { %v1744_v17 = vmul.f32 %v4646_v61, %v1742_v44 }
0x1beb   :  { %v4648_v19 = vpop.eup %4647 }
0x1bec   :  { %v1736_v45 = vadd.f32 %v4648_v19, %v4648_v19 }
0x1bee   :  { %v4193_v0 = vadd.f32 -1.0, %v1736_v45 }
0x1bf0   :  { %v1740_v46 = vsel %vm45_vm1, %v4193_v0, %v4648_v19 }
0x1bf1   :  { %v1745_v47 = vmul.f32 %v4646_v61, %v1740_v46 }
0x1bf3   :  { %1747 = vrot.lane.b32.xlu0 %v1745_v47, %s4854_s2 }
0x1c65   :  { %v1748_v48 = vpop.permute.xlu0 %1747 }
0x1c66   :  { %v5352_v29 = vadd.f32 %v1748_v48, %v1744_v17 }
0x1c68   :  { %4649 = vtanh.f32 %v5352_v29  ;;  %v1847_v45 = vrot.slane %v5352_v29, 6  ;;  %v4449_v29 = vld [vmem:[%s6074_s4 + $0x30] ss:$8 sps:$4 sm:$0xff]  }
0x1c75   :  { %v4650_v30 = vpop.eup %4649 }
0x1c76   :  { %v1752_v2 = vmul.f32 %v4650_v30, %v1740_v46 }
0x1c78   :  { %v5355_v3 = vpack.c.bf16 %v1752_v2, %v1752_v2 }
0x1c7a   :  { %v1769_v7 = vrot.slane %v5355_v3, 2  ;;  %v4195_v13 = vrot.slane %v5355_v3, 9 }
0x1c7c   :  { %1770 = vrot.lane.b32.xlu1 %v1769_v7, %s4854_s2 }
0x1c80   :  { %1144 = vrot.lane.b32.xlu1 %v1143_v10, %s4854_s2  ;;  %v1246_v10 = vrot.slane %v5257_v26, 7 }
0x1c84   :  { %1352 = vrot.lane.b32.xlu1 %v4169_v6, %s4854_s2  ;;  %v4176_v6 = vrot.slane %v5305_v62, 11 }
0x1c88   :  { %1555 = vrot.lane.b32.xlu1 %v1554_v11, %s4854_s2  ;;  %v4451_v11 = vld [vmem:[%s6074_s4 + $0x34] ss:$8 sps:$4 sm:$0xff]  }
0x1c89   :  { %2069 = vmatprep.subr.bf16.mxu0 %v4451_v11 }
0x1c8c   :  { %1763 = vrot.lane.b32.xlu1 %v4195_v13, %s4854_s2  ;;  %v1657_v13 = vrot.slane %v5341_v4, 7 }
0x1c90   :  { %313 = vrot.lane.b32.xlu1 %v5052_v5, %s4854_s2 }
0x1c94   :  { %524 = vrot.lane.b32.xlu1 %v5094_v38, %s4854_s2 }
0x1c98   :  { %728 = vrot.lane.b32.xlu1 %v5132_v55, %s4854_s2 }
0x1c9c   :  { %935 = vrot.lane.b32.xlu1 %v5170_v25, %s4854_s2 }
0x1ca0   :  { %319 = vrot.lane.b32.xlu1 %v318_v8, %s4854_s2  ;;  %v4452_v8 = vld [vmem:[%s6074_s4 + $0x20] ss:$8 sps:$4 sm:$0xff]  }
0x1ca4   :  { %530 = vrot.lane.b32.xlu1 %v4117_v9, %s4854_s2  ;;  %v4454_v9 = vld [vmem:[%s6074_s4 + $0x24] ss:$8 sps:$4 sm:$0xff]  }
0x1ca8   :  { %733 = vrot.lane.b32.xlu1 %v732_v16, %s4854_s2  ;;  %v4455_v16 = vld [vmem:[%s6074_s4 + $0x10] ss:$8 sps:$4 sm:$0xff]  }
0x1cac   :  { %941 = vrot.lane.b32.xlu1 %v4143_v12, %s4854_s2  ;;  %v4457_v12 = vld [vmem:[%s6074_s4 + $0x14] ss:$8 sps:$4 sm:$0xff]  }
0x1cee   :  { %v1771_v14 = vpop.permute.xlu1 %1770 }
0x1cef   :  { %4196 = vmatmul.mubr.msk.bf16.vlgmr.msra.gmra.mxu0 %vm114_vm0, %v1771_v14  ;;  %v4458_v14 = vld [vmem:[%s6074_s4] ss:$8 sps:$4 sm:$0xff]  }
0x1cf0   :  { %2093 = vmatprep.mubr.bf16.mxu0 %v4853_v1  ;;  %2070 = vmatpush1.bf16.msra.mxu0 %v4449_v29 }
0x1cf1   :  { %2071 = vmatprep.subr.bf16.mxu0 %v4454_v9 }
0x1cf2   :  { %v1145_v5 = vpop.permute.xlu1 %1144 }
0x1cf3   :  { %1147 = vst.msk [vmem:[#allocation4 + $0x4] sm:$0x8] %vm322_vm2, %v1145_v5  ;;  %v4460_v5 = vld [vmem:[%s6074_s4 + $0x4] ss:$8 sps:$4 sm:$0xff]  }
0x1cf4   :  { %2072 = vmatpush1.bf16.msra.mxu0 %v4452_v8 }
0x1cf5   :  { %2073 = vmatprep.subr.bf16.mxu0 %v4457_v12 }
0x1cf6   :  { %v1353_v38 = vpop.permute.xlu1 %1352 }
0x1cf7   :  { %1355 = vst.msk [vmem:[#allocation4 + $0x4] sm:$0x2] %vm421_vm3, %v1353_v38  ;;  %v423_v38 = vrot.slane %v5075_v56, 7 }
0x1cf8   :  { %2074 = vmatpush1.bf16.msra.mxu0 %v4455_v16 }
0x1cf9   :  { %2075 = vmatprep.subr.bf16.mxu0 %v4460_v5 }
0x1cfa   :  { %v1556_v55 = vpop.permute.xlu1 %1555 }
0x1cfb   :  { %1558 = vst.msk [vmem:[#allocation4] sm:$0x8] %vm322_vm2, %v1556_v55  ;;  %v4124_v55 = vrot.slane %v5113_v18, 11 }
0x1cfc   :  { %2076 = vmatpush1.bf16.msra.mxu0 %v4458_v14 }
0x1cfe   :  { %v1764_v20 = vpop.permute.xlu1 %1763 }
0x1cff   :  { %1766 = vst.msk [vmem:[#allocation4] sm:$0x2] %vm421_vm3, %v1764_v20  ;;  %v4462_v20 = vld [vmem:[%s6075_s5 + $0x30] ss:$8 sps:$4 sm:$0xff]  }
0x1d02   :  { %v314_v25 = vpop.permute.xlu1 %313 }
0x1d03   :  { %317 = vst.msk [vmem:[#allocation3] sm:$0x1] %vm316_vm4, %v314_v25  ;;  %v4464_v25 = vld [vmem:[%s6075_s5 + $0x34] ss:$8 sps:$4 sm:$0xff]  }
0x1d04   :  { %1960 = vmatprep.subr.bf16.mxu1 %v4464_v25 }
0x1d05   :  { %1961 = vmatpush1.bf16.msra.mxu1 %v4462_v20 }
0x1d06   :  { %v525_v23 = vpop.permute.xlu1 %524 }
0x1d07   :  { %527 = vst.msk [vmem:[#allocation3] sm:$0x4] %vm427_vm5, %v525_v23  ;;  %v4467_v23 = vld [vmem:[%s6075_s5 + $0x24] ss:$8 sps:$4 sm:$0xff]  }
0x1d08   :  { %1962 = vmatprep.subr.bf16.mxu1 %v4467_v23 }
0x1d0a   :  { %v729_v27 = vpop.permute.xlu1 %728 }
0x1d0b   :  { %731 = vst.msk [vmem:[#allocation3 + $0x4] sm:$0x1] %vm316_vm4, %v729_v27 }
0x1d0e   :  { %v936_v28 = vpop.permute.xlu1 %935 }
0x1d0f   :  { %938 = vst.msk [vmem:[#allocation3 + $0x4] sm:$0x4] %vm427_vm5, %v936_v28 }
0x1d12   :  { %v320_v31 = vpop.permute.xlu1 %319 }
0x1d13   :  { %323 = vst.msk [vmem:[#allocation4 + $0xc] sm:$0x8] %vm322_vm2, %v320_v31 }
0x1d16   :  { %v531_v32 = vpop.permute.xlu1 %530 }
0x1d17   :  { %533 = vst.msk [vmem:[#allocation4 + $0xc] sm:$0x2] %vm421_vm3, %v531_v32  ;;  %v4468_v32 = vld [vmem:[%s6075_s5 + $0x10] ss:$8 sps:$4 sm:$0xff]  }
0x1d1a   :  { %v734_v33 = vpop.permute.xlu1 %733 }
0x1d1b   :  { %736 = vst.msk [vmem:[#allocation4 + $0x8] sm:$0x8] %vm322_vm2, %v734_v33  ;;  %v4470_v33 = vld [vmem:[%s6075_s5 + $0x14] ss:$8 sps:$4 sm:$0xff]  }
0x1d1e   :  { %v942_v34 = vpop.permute.xlu1 %941 }
0x1d1f   :  { %944 = vst.msk [vmem:[#allocation4 + $0x8] sm:$0x2] %vm421_vm3, %v942_v34 }
0x1daf   :  { %v1809_v35 = vpop.f32.mrf.mxu0 }
0x1db0   :  { %v1818_v36 = vrot.slane %v1809_v35, 2  ;;  %v4471_v35 = vld [vmem:[%s6075_s5] ss:$8 sps:$4 sm:$0xff]  }
0x1db1   :  { %v1811_v49 = vpop.f32.mrf.mxu0 }
0x1db2   :  { %v1822_v41 = vadd.f32 %v1818_v36, %v1767_v37  ;;  %v1819_v43 = vrot.slane %v1811_v49, 2  ;;  %v4473_v36 = vld [vmem:[%s6075_s5 + $0x4] ss:$8 sps:$4 sm:$0xff]  }
0x1db3   :  { %v1813_v51 = vpop.f32.mrf.mxu0 }
0x1db4   :  { %v4197_v53 = vmul.f32 -1.442695, %v1822_v41  ;;  %v1823_v54 = vadd.f32 %v1819_v43, %v1768_v50  ;;  %v5476_v43 = vld [vmem:[%s6076_s7 + $0x34] ss:$8 sps:$4 sm:$0xff]  }
0x1db5   :  { %v1814_v57 = vpop.f32.mrf.mxu0  ;;  %2294 = vmatprep.subr.bf16.mxu0 %v5476_v43 }
0x1db6   :  { %4651 = vpow2.f32 %v4197_v53  ;;  %v1825_v58 = vadd.f32 %v1823_v54, %v1823_v54  ;;  %v835_v57 = vrot.slane %v5151_v39, 7 }
0x1db8   :  { %v1827_v59 = vsel %vm45_vm1, %v1825_v58, %v1823_v54 }
0x1db9   :  { %v4198_v60 = vmul.f32 -1.442695, %v1827_v59  ;;  %v4150_v59 = vrot.slane %v5189_v63, 11 }
0x1dbb   :  { %4653 = vpow2.f32 %v4198_v60 }
0x1dc3   :  { %v4652_v44 = vpop.eup %4651 }
0x1dc4   :  { %v1834_v61 = vadd.f32 1.0, %v4652_v44 }
0x1dc6   :  { %4655 = vrcp.f32 %v1834_v61 }
0x1dc8   :  { %v4654_v17 = vpop.eup %4653 }
0x1dc9   :  { %v1835_v19 = vadd.f32 1.0, %v4654_v17  ;;  %v5528_v17 = vld [vmem:[%s6076_s7 + $0x10] ss:$8 sps:$4 sm:$0xff]  }
0x1dcb   :  { %4657 = vrcp.f32 %v1835_v19  ;;  %v5542_v19 = vld [vmem:[%s6076_s7] ss:$8 sps:$4 sm:$0xff]  }
0x1dd3   :  { %v4656_v0 = vpop.eup %4655 }
0x1dd4   :  { %v1849_v46 = vmul.f32 %v4656_v0, %v1847_v45 }
0x1dd8   :  { %v4658_v47 = vpop.eup %4657 }
0x1dd9   :  { %v1841_v48 = vadd.f32 %v4658_v47, %v4658_v47 }
0x1ddb   :  { %v4200_v30 = vadd.f32 -1.0, %v1841_v48 }
0x1ddd   :  { %v1845_v2 = vsel %vm45_vm1, %v4200_v30, %v4658_v47 }
0x1dde   :  { %v1850_v7 = vmul.f32 %v4656_v0, %v1845_v2 }
0x1de0   :  { %1852 = vrot.lane.b32.xlu0 %v1850_v7, %s4854_s2 }
0x1de4   :  { %1247 = vrot.lane.b32.xlu0 %v1246_v10, %s4854_s2 }
0x1de8   :  { %1457 = vrot.lane.b32.xlu0 %v4176_v6, %s4854_s2  ;;  %v2114_v6 = vld [vmem:[%s6077_s6] sm:$0x3] }
0x1de9   :  { %v5580_v11 = vrot.slane %v2114_v6, %v66_v22  ;;  %v5584_v9 = vrot.slane %v2114_v6, %v70_v24 }
0x1dec   :  { %1658 = vrot.lane.b32.xlu0 %v1657_v13, %s4854_s2 }
0x1df0   :  { %418 = vrot.lane.b32.xlu0 %v5075_v56, %s4854_s2  ;;  %v4465_v56 = vld [vmem:[%s6075_s5 + $0x20] ss:$8 sps:$4 sm:$0xff]  }
0x1df1   :  { %1963 = vmatpush1.bf16.msra.mxu1 %v4465_v56 }
0x1df2   :  { %1964 = vmatprep.subr.bf16.mxu1 %v4470_v33 }
0x1df4   :  { %629 = vrot.lane.b32.xlu0 %v5113_v18, %s4854_s2 }
0x1df5   :  { %1965 = vmatpush1.bf16.msra.mxu1 %v4468_v32 }
0x1df6   :  { %1966 = vmatprep.subr.bf16.mxu1 %v4473_v36 }
0x1df8   :  { %831 = vrot.lane.b32.xlu0 %v5151_v39, %s4854_s2  ;;  %v5499_v39 = vld [vmem:[%s6076_s7 + $0x30] ss:$8 sps:$4 sm:$0xff]  }
0x1df9   :  { %1967 = vmatpush1.bf16.msra.mxu1 %v4471_v35 }
0x1dfa   :  { %2200 = vmatprep.subr.bf16.mxu1 %v5476_v43 }
0x1dfc   :  { %1040 = vrot.lane.b32.xlu0 %v5189_v63, %s4854_s2  ;;  %v5506_v63 = vld [vmem:[%s6076_s7 + $0x24] ss:$8 sps:$4 sm:$0xff]  }
0x1e00   :  { %424 = vrot.lane.b32.xlu0 %v423_v38, %s4854_s2 }
0x1e04   :  { %635 = vrot.lane.b32.xlu0 %v4124_v55, %s4854_s2 }
0x1e52   :  { %v1853_v18 = vpop.permute.xlu0 %1852 }
0x1e53   :  { %v1855_v27 = vadd.f32 %v1853_v18, %v1849_v46 }
0x1e55   :  { %4659 = vtanh.f32 %v1855_v27 }
0x1e56   :  { %v1248_v28 = vpop.permute.xlu0 %1247 }
0x1e57   :  { %1250 = vst.msk [vmem:[#allocation4 + $0x4] sm:$0x4] %vm427_vm5, %v1248_v28 }
0x1e5a   :  { %v1458_v31 = vpop.permute.xlu0 %1457 }
0x1e5b   :  { %1460 = vst.msk [vmem:[#allocation4 + $0x4] sm:$0x1] %vm316_vm4, %v1458_v31 }
0x1e5e   :  { %v1659_v34 = vpop.permute.xlu0 %1658 }
0x1e5f   :  { %1661 = vst.msk [vmem:[#allocation4] sm:$0x4] %vm427_vm5, %v1659_v34 }
0x1e62   :  { %v4660_v37 = vpop.eup %4659  ;;  %v419_v49 = vpop.permute.xlu0 %418 }
0x1e63   :  { %422 = vst.msk [vmem:[#allocation3] sm:$0x2] %vm421_vm3, %v419_v49  ;;  %v1857_v41 = vmul.f32 %v4660_v37, %v1845_v2 }
0x1e65   :  { %v5478_v50 = vpack.c.bf16 %v1857_v41, %v1857_v41 }
0x1e66   :  { %v630_v51 = vpop.permute.xlu0 %629 }
0x1e67   :  { %632 = vst.msk [vmem:[#allocation3] sm:$0x8] %vm322_vm2, %v630_v51  ;;  %v4202_v53 = vrot.slane %v5478_v50, 11 }
0x1e69   :  { %1868 = vrot.lane.b32.xlu0 %v4202_v53, %s4854_s2 }
0x1e6a   :  { %v832_v54 = vpop.permute.xlu0 %831 }
0x1e6b   :  { %834 = vst.msk [vmem:[#allocation3 + $0x4] sm:$0x2] %vm421_vm3, %v832_v54 }
0x1e6d   :  { %836 = vrot.lane.b32.xlu0 %v835_v57, %s4854_s2 }
0x1e6e   :  { %v1041_v58 = vpop.permute.xlu0 %1040 }
0x1e6f   :  { %1043 = vst.msk [vmem:[#allocation3 + $0x4] sm:$0x8] %vm322_vm2, %v1041_v58 }
0x1e71   :  { %1046 = vrot.lane.b32.xlu0 %v4150_v59, %s4854_s2 }
0x1e72   :  { %v425_v60 = vpop.permute.xlu0 %424 }
0x1e73   :  { %428 = vst.msk [vmem:[#allocation4 + $0xc] sm:$0x4] %vm427_vm5, %v425_v60 }
0x1e75   :  { %1139 = vrot.lane.b32.xlu0 %v5208_v42, %s4854_s2  ;;  %v5514_v42 = vld [vmem:[%s6076_s7 + $0x20] ss:$8 sps:$4 sm:$0xff]  }
0x1e76   :  { %v636_v44 = vpop.permute.xlu0 %635  ;;  %v4461_v61 = vld [vmem:[#allocation3] sm:$0xff]  }
0x1e77   :  { %638 = vst.msk [vmem:[#allocation4 + $0xc] sm:$0x1] %vm316_vm4, %v636_v44  ;;  %4225 = vmatmul.mubr.msk.bf16.vlgmr.msra.gmra.mxu0 %vm114_vm0, %v4461_v61 }
0x1e78   :  { %2103 = vmatprep.mubr.bf16.mxu0 %v4853_v1  ;;  %2295 = vmatpush1.bf16.msra.mxu0 %v5499_v39 }
0x1e79   :  { %1346 = vrot.lane.b32.xlu0 %v5286_v15, %s4854_s2  ;;  %2296 = vmatprep.subr.bf16.mxu0 %v5506_v63  ;;  %v5521_v15 = vld [vmem:[%s6076_s7 + $0x14] ss:$8 sps:$4 sm:$0xff]  }
0x1e7c   :  { %2297 = vmatpush1.bf16.msra.mxu0 %v5514_v42 }
0x1e7d   :  { %1550 = vrot.lane.b32.xlu0 %v5323_v52, %s4854_s2  ;;  %2298 = vmatprep.subr.bf16.mxu0 %v5521_v15  ;;  %v5535_v52 = vld [vmem:[%s6076_s7 + $0x4] ss:$8 sps:$4 sm:$0xff]  }
0x1e80   :  { %2299 = vmatpush1.bf16.msra.mxu0 %v5528_v17 }
0x1e81   :  { %1757 = vrot.lane.b32.xlu0 %v5355_v3, %s4854_s2  ;;  %2300 = vmatprep.subr.bf16.mxu0 %v5535_v52 }
0x1e84   :  { %2301 = vmatpush1.bf16.msra.mxu0 %v5542_v19 }
0x1e85   :  { %2503 = vmatprep.subr.bf16.mxu0 %v5476_v43 }
0x1edb   :  { %v1869_v45 = vpop.permute.xlu0 %1868 }
0x1edc   :  { %1871 = vst.msk [vmem:[#allocation4] sm:$0x1] %vm316_vm4, %v1869_v45 }
0x1edf   :  { %v837_v3 = vpop.permute.xlu0 %836 }
0x1ee0   :  { %839 = vst.msk [vmem:[#allocation4 + $0x8] sm:$0x4] %vm427_vm5, %v837_v3 }
0x1ee3   :  { %v1047_v0 = vpop.permute.xlu0 %1046  ;;  %v4476_v46 = vld [vmem:[#allocation4] sm:$0xff]  }
0x1ee4   :  { %1049 = vst.msk [vmem:[#allocation4 + $0x8] sm:$0x1] %vm316_vm4, %v1047_v0  ;;  %4213 = vmatmul.mubr.msk.bf16.vlgmr.msra.gmra.mxu1 %vm114_vm0, %v4476_v46 }
0x1ee5   :  { %2201 = vmatpush1.bf16.msra.mxu1 %v5499_v39  ;;  %1994 = vmatprep.mubr.bf16.mxu1 %v4853_v1 }
0x1ee6   :  { %2202 = vmatprep.subr.bf16.mxu1 %v5506_v63 }
0x1ee7   :  { %v1140_v47 = vpop.permute.xlu0 %1139 }
0x1ee8   :  { %1142 = vst.msk [vmem:[#allocation3 + $0x8] sm:$0x1] %vm316_vm4, %v1140_v47 }
0x1ee9   :  { %2203 = vmatpush1.bf16.msra.mxu1 %v5514_v42 }
0x1eea   :  { %2204 = vmatprep.subr.bf16.mxu1 %v5521_v15 }
0x1eeb   :  { %v1347_v48 = vpop.permute.xlu0 %1346  ;;  %v4483_v30 = vld [vmem:[#allocation4 + $0x8] sm:$0xff]  }
0x1eec   :  { %1349 = vst.msk [vmem:[#allocation3 + $0x8] sm:$0x4] %vm427_vm5, %v1347_v48  ;;  %4214 = vmatmul.mubr.msk.bf16.gmra.mxu1 %vm114_vm0, %v4483_v30 }
0x1eed   :  { %2205 = vmatpush1.bf16.msra.mxu1 %v5528_v17  ;;  %2224 = vmatprep.mubr.bf16.mxu1 %v4853_v1 }
0x1eee   :  { %2206 = vmatprep.subr.bf16.mxu1 %v5535_v52 }
0x1eef   :  { %v1551_v2 = vpop.permute.xlu0 %1550 }
0x1ef0   :  { %1553 = vst.msk [vmem:[#allocation3 + $0xc] sm:$0x1] %vm316_vm4, %v1551_v2 }
0x1ef1   :  { %2207 = vmatpush1.bf16.msra.mxu1 %v5542_v19 }
0x1ef2   :  { %2398 = vmatprep.subr.bf16.mxu1 %v5476_v43 }
0x1ef3   :  { %v1758_v7 = vpop.permute.xlu0 %1757 }
0x1ef4   :  { %1760 = vst.msk [vmem:[#allocation3 + $0xc] sm:$0x4] %vm427_vm5, %v1758_v7  ;;  %2225 = vmatmul.mubr.bf16.vlgmr.msra.gmra.mxu1 %v4853_v1 }
0x1ef5   :  { %2399 = vmatpush1.bf16.msra.mxu1 %v5499_v39  ;;  %2422 = vmatprep.mubr.bf16.mxu1 %v4853_v1 }
0x1ef6   :  { %2400 = vmatprep.subr.bf16.mxu1 %v5506_v63 }
0x1ef9   :  { %2401 = vmatpush1.bf16.msra.mxu1 %v5514_v42 }
0x1efa   :  { %2402 = vmatprep.subr.bf16.mxu1 %v5521_v15 }
0x1efd   :  { %2403 = vmatpush1.bf16.msra.mxu1 %v5528_v17 }
0x1efe   :  { %2404 = vmatprep.subr.bf16.mxu1 %v5535_v52 }
0x1f01   :  { %2405 = vmatpush1.bf16.msra.mxu1 %v5542_v19 }
0x1f02   :  { %2608 = vmatprep.subr.bf16.mxu1 %v5476_v43 }
0x1f37   :  { %v2095_v10 = vpop.f32.mrf.mxu0 }
0x1f39   :  { %v2097_v29 = vpop.f32.mrf.mxu0 }
0x1f3b   :  { %v2099_v16 = vpop.f32.mrf.mxu0 }
0x1f3d   :  { %v2101_v25 = vpop.f32.mrf.mxu0 }
0x1fa4   :  { %v1986_v13 = vpop.f32.mrf.mxu1 }
0x1fa5   :  { %v2096_v8 = vadd.f32 %v2095_v10, %v1986_v13 }
0x1fa6   :  { %v1988_v12 = vpop.f32.mrf.mxu1 }
0x1fa7   :  { %v2126_v14 = vadd.f32 %v5580_v11, %v2096_v8  ;;  %v2098_v5 = vadd.f32 %v2097_v29, %v1988_v12 }
0x1fa8   :  { %v1990_v38 = vpop.f32.mrf.mxu1 }
0x1fa9   :  { %2134 = vst [vmem:[#allocation2 + $0x30] sm:$0xff] %v2126_v14  ;;  %v2127_v55 = vadd.f32 %v5584_v9, %v2098_v5  ;;  %v2100_v20 = vadd.f32 %v2099_v16, %v1990_v38 }
0x1faa   :  { %v1992_v23 = vpop.f32.mrf.mxu1 }
0x1fab   :  { %2135 = vst [vmem:[#allocation2] sm:$0xff] %v2127_v55  ;;  %v2128_v22 = vadd.f32 %v5580_v11, %v2100_v20  ;;  %v2102_v56 = vadd.f32 %v2101_v25, %v1992_v23 }
0x1fac   :  { %v5589_v18 = vpop.f32.mrf.mxu1 }
0x1fad   :  { %2136 = vst [vmem:[#allocation2 + $0x18] sm:$0xff] %v2128_v22  ;;  %v2129_v21 = vadd.f32 %v5584_v9, %v2102_v56 }
0x1fae   :  { %v5592_v24 = vpop.f32.mrf.mxu1 }
0x1faf   :  { %2137 = vst [vmem:[#allocation2 + $0x10] sm:$0xff] %v2129_v21 }
0x1fb0   :  { %v5594_v27 = vpop.f32.mrf.mxu1  ;;  %v2150_v32 = vld [vmem:[#allocation2 + $0x30] sm:$0x3]  ;;  %v2279_v21 = vld [vmem:[#allocation2 + $0x30] sm:$0xc] }
0x1fb2   :  { %v5596_v28 = vpop.f32.mrf.mxu1  ;;  %v2151_v33 = vld [vmem:[#allocation2] sm:$0x3] }
0x1fb4   :  { %v2226_v31 = vpop.f32.mrf.mxu1 }
0x1fb5   :  { %v2233_v35 = vadd.f32 %v2226_v31, %v2150_v32 }
0x1fb6   :  { %v2228_v34 = vpop.f32.mrf.mxu1 }
0x1fb7   :  { %v2234_v36 = vadd.f32 %v2228_v34, %v2151_v33  ;;  %v4235_v51 = vmul.f32 -1.442695, %v2233_v35  ;;  %v2280_v33 = vld [vmem:[#allocation2] sm:$0xc] }
0x1fb8   :  { %v2230_v37 = vpop.f32.mrf.mxu1 }
0x1fb9   :  { %v2236_v49 = vadd.f32 %v2234_v36, %v2234_v36 }
0x1fba   :  { %v2231_v41 = vpop.f32.mrf.mxu1 }
0x1fbb   :  { %v2238_v53 = vsel %vm45_vm1, %v2236_v49, %v2234_v36 }
0x1fbc   :  { %v4236_v54 = vmul.f32 -1.442695, %v2238_v53 }
0x1fbe   :  { %4661 = vpow2.f32 %v4236_v54 }
0x1fbf   :  { %4663 = vpow2.f32 %v4235_v51 }
0x1fcb   :  { %v4662_v57 = vpop.eup %4661 }
0x1fcc   :  { %v4664_v58 = vpop.eup %4663  ;;  %v2246_v59 = vadd.f32 1.0, %v4662_v57 }
0x1fcd   :  { %v2245_v60 = vadd.f32 1.0, %v4664_v58 }
0x1fce   :  { %4665 = vrcp.f32 %v2246_v59 }
0x1fcf   :  { %4667 = vrcp.f32 %v2245_v60 }
0x1fdb   :  { %v4666_v44 = vpop.eup %4665 }
0x1fdc   :  { %v2252_v61 = vadd.f32 %v4666_v44, %v4666_v44  ;;  %v4668_v3 = vpop.eup %4667 }
0x1fdd   :  { %v2257_v47 = vmul.f32 0.0, %v4668_v3 }
0x1fde   :  { %v4238_v45 = vadd.f32 -1.0, %v2252_v61 }
0x1fe0   :  { %v2256_v0 = vsel %vm45_vm1, %v4238_v45, %v4666_v44 }
0x1fe1   :  { %v2258_v46 = vmul.f32 %v4668_v3, %v2256_v0 }
0x1fe3   :  { %2260 = vrot.lane.b32.xlu1 %v2258_v46, %s4854_s2 }
0x1fe7   :  { %1242 = vrot.lane.b32.xlu1 %v5257_v26, %s4854_s2 }
0x1feb   :  { %1451 = vrot.lane.b32.xlu1 %v5305_v62, %s4854_s2 }
0x1fef   :  { %1653 = vrot.lane.b32.xlu1 %v5341_v4, %s4854_s2 }
0x1ff3   :  { %1862 = vrot.lane.b32.xlu1 %v5478_v50, %s4854_s2 }
0x2055   :  { %v2261_v48 = vpop.permute.xlu1 %2260 }
0x2056   :  { %v5611_v30 = vadd.f32 %v2261_v48, %v2257_v47 }
0x2058   :  { %4669 = vtanh.f32 %v5611_v30  ;;  %v2358_v53 = vrot.slane %v5611_v30, 6 }
0x2059   :  { %v1243_v2 = vpop.permute.xlu1 %1242 }
0x205a   :  { %1245 = vst.msk [vmem:[#allocation3 + $0x8] sm:$0x2] %vm421_vm3, %v1243_v2 }
0x205d   :  { %v1452_v7 = vpop.permute.xlu1 %1451 }
0x205e   :  { %1454 = vst.msk [vmem:[#allocation3 + $0x8] sm:$0x8] %vm322_vm2, %v1452_v7 }
0x2061   :  { %v1654_v26 = vpop.permute.xlu1 %1653 }
0x2062   :  { %1656 = vst.msk [vmem:[#allocation3 + $0xc] sm:$0x2] %vm421_vm3, %v1654_v26  ;;  %v2382_v26 = vld [vmem:[#allocation2 + $0x30] sm:$0x30] }
0x2065   :  { %v4670_v62 = vpop.eup %4669  ;;  %v1863_v4 = vpop.permute.xlu1 %1862 }
0x2066   :  { %1865 = vst.msk [vmem:[#allocation3 + $0xc] sm:$0x8] %vm322_vm2, %v1863_v4  ;;  %v2265_v50 = vmul.f32 %v4670_v62, %v2256_v0 }
0x2068   :  { %v5618_v10 = vpack.c.bf16 %v2265_v50, %v2265_v50 }
0x206a   :  { %2281 = vrot.lane.b32.xlu0 %v5618_v10, %s4854_s2 }
0x206d   :  { %v4488_v6 = vld [vmem:[#allocation3 + $0x8] sm:$0xff]  }
0x206e   :  { %4226 = vmatmul.mubr.msk.bf16.gmra.mxu0 %vm114_vm0, %v4488_v6  ;;  %v2383_v6 = vld [vmem:[#allocation2] sm:$0x30] }
0x206f   :  { %2318 = vmatprep.mubr.bf16.mxu0 %v4853_v1 }
0x20dc   :  { %v2282_v29 = vpop.permute.xlu0 %2281 }
0x20dd   :  { %4240 = vmatmul.mubr.msk.bf16.vlgmr.msra.gmra.mxu0 %vm114_vm0, %v2282_v29 }
0x20de   :  { %2504 = vmatpush1.bf16.msra.mxu0 %v5499_v39  ;;  %2527 = vmatprep.mubr.bf16.mxu0 %v4853_v1 }
0x20df   :  { %2505 = vmatprep.subr.bf16.mxu0 %v5506_v63 }
0x20e2   :  { %2506 = vmatpush1.bf16.msra.mxu0 %v5514_v42 }
0x20e3   :  { %2507 = vmatprep.subr.bf16.mxu0 %v5521_v15 }
0x20e6   :  { %2508 = vmatpush1.bf16.msra.mxu0 %v5528_v17 }
0x20e7   :  { %2509 = vmatprep.subr.bf16.mxu0 %v5535_v52 }
0x20ea   :  { %2510 = vmatpush1.bf16.msra.mxu0 %v5542_v19 }
0x20eb   :  { %2705 = vmatprep.subr.bf16.mxu0 %v5476_v43 }
0x212e   :  { %v2105_v13 = vpop.f32.mrf.mxu0 }
0x212f   :  { %v2106_v8 = vadd.f32 %v2105_v13, %v5589_v18 }
0x2130   :  { %v2107_v16 = vpop.f32.mrf.mxu0 }
0x2131   :  { %v2130_v12 = vadd.f32 %v5580_v11, %v2106_v8  ;;  %v2108_v14 = vadd.f32 %v2107_v16, %v5592_v24 }
0x2132   :  { %v2109_v5 = vpop.f32.mrf.mxu0 }
0x2133   :  { %2138 = vst [vmem:[#allocation2 + $0x8] sm:$0xff] %v2130_v12  ;;  %v2131_v38 = vadd.f32 %v5584_v9, %v2108_v14  ;;  %v2110_v55 = vadd.f32 %v2109_v5, %v5594_v27 }
0x2134   :  { %v2111_v20 = vpop.f32.mrf.mxu0 }
0x2135   :  { %2139 = vst [vmem:[#allocation2 + $0x20] sm:$0xff] %v2131_v38  ;;  %v2132_v25 = vadd.f32 %v5580_v11, %v2110_v55  ;;  %v2112_v23 = vadd.f32 %v2111_v20, %v5596_v28 }
0x2137   :  { %2140 = vst [vmem:[#allocation2 + $0x28] sm:$0xff] %v2132_v25  ;;  %v2133_v22 = vadd.f32 %v5584_v9, %v2112_v23 }
0x2139   :  { %2141 = vst [vmem:[#allocation2 + $0x38] sm:$0xff] %v2133_v22 }
0x219d   :  { %v2320_v56 = vpop.f32.mrf.mxu0 }
0x219e   :  { %v2329_v18 = vrot.slane %v2320_v56, 6 }
0x219f   :  { %v2322_v24 = vpop.f32.mrf.mxu0 }
0x21a0   :  { %v2333_v31 = vadd.f32 %v2329_v18, %v2279_v21  ;;  %v2330_v32 = vrot.slane %v2322_v24, 6 }
0x21a1   :  { %v2324_v34 = vpop.f32.mrf.mxu0 }
0x21a2   :  { %v4241_v35 = vmul.f32 -1.442695, %v2333_v31  ;;  %v2334_v27 = vadd.f32 %v2330_v32, %v2280_v33 }
0x21a3   :  { %v2325_v36 = vpop.f32.mrf.mxu0 }
0x21a4   :  { %4671 = vpow2.f32 %v4241_v35  ;;  %v2336_v37 = vadd.f32 %v2334_v27, %v2334_v27 }
0x21a6   :  { %v2338_v11 = vsel %vm45_vm1, %v2336_v37, %v2334_v27 }
0x21a7   :  { %v4242_v28 = vmul.f32 -1.442695, %v2338_v11 }
0x21a9   :  { %4673 = vpow2.f32 %v4242_v28 }
0x21b1   :  { %v4672_v9 = vpop.eup %4671 }
0x21b2   :  { %v2345_v49 = vadd.f32 1.0, %v4672_v9 }
0x21b4   :  { %4675 = vrcp.f32 %v2345_v49  ;;  %v2487_v49 = vld [vmem:[#allocation2 + $0x30] sm:$0xc0] }
0x21b6   :  { %v4674_v41 = vpop.eup %4673 }
0x21b7   :  { %v2346_v51 = vadd.f32 1.0, %v4674_v41 }
0x21b9   :  { %4677 = vrcp.f32 %v2346_v51 }
0x21c1   :  { %v4676_v54 = vpop.eup %4675 }
0x21c2   :  { %v2360_v57 = vmul.f32 %v4676_v54, %v2358_v53 }
0x21c6   :  { %v4678_v58 = vpop.eup %4677 }
0x21c7   :  { %v2352_v59 = vadd.f32 %v4678_v58, %v4678_v58 }
0x21c9   :  { %v4244_v60 = vadd.f32 -1.0, %v2352_v59 }
0x21cb   :  { %v2356_v44 = vsel %vm45_vm1, %v4244_v60, %v4678_v58 }
0x21cc   :  { %v2361_v61 = vmul.f32 %v4676_v54, %v2356_v44  ;;  %v2488_v54 = vld [vmem:[#allocation2] sm:$0xc0] }
0x21ce   :  { %2363 = vrot.lane.b32.xlu1 %v2361_v61, %s4854_s2 }
0x2240   :  { %v2364_v45 = vpop.permute.xlu1 %2363 }
0x2241   :  { %v2366_v3 = vadd.f32 %v2364_v45, %v2360_v57 }
0x2243   :  { %4679 = vtanh.f32 %v2366_v3  ;;  %v2462_v23 = vrot.slane %v2366_v3, 6 }
0x2250   :  { %v4680_v0 = vpop.eup %4679 }
0x2251   :  { %v2368_v46 = vmul.f32 %v4680_v0, %v2356_v44 }
0x2253   :  { %v5648_v47 = vpack.c.bf16 %v2368_v46, %v2368_v46 }
0x2255   :  { %v2384_v48 = vrot.slane %v5648_v47, 1 }
0x2257   :  { %2385 = vrot.lane.b32.xlu0 %v2384_v48, %s4854_s2 }
0x22c9   :  { %v2386_v30 = vpop.permute.xlu0 %2385 }
0x22ca   :  { %4246 = vmatmul.mubr.msk.bf16.vlgmr.msra.gmra.mxu1 %vm114_vm0, %v2386_v30 }
0x22cb   :  { %2609 = vmatpush1.bf16.msra.mxu1 %v5499_v39  ;;  %2632 = vmatprep.mubr.bf16.mxu1 %v4853_v1 }
0x22cc   :  { %2610 = vmatprep.subr.bf16.mxu1 %v5506_v63 }
0x22cf   :  { %2611 = vmatpush1.bf16.msra.mxu1 %v5514_v42 }
0x22d0   :  { %2612 = vmatprep.subr.bf16.mxu1 %v5521_v15 }
0x22d3   :  { %2613 = vmatpush1.bf16.msra.mxu1 %v5528_v17 }
0x22d4   :  { %2614 = vmatprep.subr.bf16.mxu1 %v5535_v52 }
0x22d7   :  { %2615 = vmatpush1.bf16.msra.mxu1 %v5542_v19 }
0x22d8   :  { %2809 = vmatprep.subr.bf16.mxu1 %v5476_v43 }
0x238a   :  { %v2424_v2 = vpop.f32.mrf.mxu1 }
0x238b   :  { %v2433_v7 = vrot.slane %v2424_v2, 4 }
0x238c   :  { %v2426_v62 = vpop.f32.mrf.mxu1 }
0x238d   :  { %v2437_v4 = vadd.f32 %v2433_v7, %v2382_v26  ;;  %v2434_v50 = vrot.slane %v2426_v62, 4 }
0x238e   :  { %v2428_v29 = vpop.f32.mrf.mxu1 }
0x238f   :  { %v4247_v13 = vmul.f32 -1.442695, %v2437_v4  ;;  %v2438_v8 = vadd.f32 %v2434_v50, %v2383_v6 }
0x2390   :  { %v2429_v16 = vpop.f32.mrf.mxu1 }
0x2391   :  { %4681 = vpow2.f32 %v4247_v13  ;;  %v2440_v12 = vadd.f32 %v2438_v8, %v2438_v8 }
0x2393   :  { %v2442_v14 = vsel %vm45_vm1, %v2440_v12, %v2438_v8 }
0x2394   :  { %v4248_v5 = vmul.f32 -1.442695, %v2442_v14 }
0x2396   :  { %4683 = vpow2.f32 %v4248_v5 }
0x239e   :  { %v4682_v38 = vpop.eup %4681 }
0x239f   :  { %v2449_v55 = vadd.f32 1.0, %v4682_v38  ;;  %v2592_v38 = vld [vmem:[#allocation2 + $0x18] sm:$0x3] }
0x23a1   :  { %4685 = vrcp.f32 %v2449_v55 }
0x23a3   :  { %v4684_v20 = vpop.eup %4683 }
0x23a4   :  { %v2450_v25 = vadd.f32 1.0, %v4684_v20 }
0x23a6   :  { %4687 = vrcp.f32 %v2450_v25  ;;  %v2593_v25 = vld [vmem:[#allocation2 + $0x10] sm:$0x3] }
0x23ae   :  { %v4686_v22 = vpop.eup %4685 }
0x23af   :  { %v2464_v56 = vmul.f32 %v4686_v22, %v2462_v23 }
0x23b3   :  { %v4688_v18 = vpop.eup %4687 }
0x23b4   :  { %v2456_v21 = vadd.f32 %v4688_v18, %v4688_v18 }
0x23b6   :  { %v4250_v24 = vadd.f32 -1.0, %v2456_v21 }
0x23b8   :  { %v2460_v31 = vsel %vm45_vm1, %v4250_v24, %v4688_v18 }
0x23b9   :  { %v2465_v32 = vmul.f32 %v4686_v22, %v2460_v31 }
0x23bb   :  { %2467 = vrot.lane.b32.xlu1 %v2465_v32, %s4854_s2 }
0x242d   :  { %v2468_v33 = vpop.permute.xlu1 %2467 }
0x242e   :  { %v2470_v34 = vadd.f32 %v2468_v33, %v2464_v56 }
0x2430   :  { %4689 = vtanh.f32 %v2470_v34  ;;  %v2567_v30 = vrot.slane %v2470_v34, 6 }
0x243d   :  { %v4690_v35 = vpop.eup %4689 }
0x243e   :  { %v2472_v27 = vmul.f32 %v4690_v35, %v2460_v31 }
0x2440   :  { %v5667_v36 = vpack.c.bf16 %v2472_v27, %v2472_v27 }
0x2442   :  { %v2489_v37 = vrot.slane %v5667_v36, 2 }
0x2444   :  { %2490 = vrot.lane.b32.xlu0 %v2489_v37, %s4854_s2 }
0x24b6   :  { %v2491_v11 = vpop.permute.xlu0 %2490 }
0x24b7   :  { %4253 = vmatmul.mubr.msk.bf16.vlgmr.msra.gmra.mxu0 %vm114_vm0, %v2491_v11 }
0x24b8   :  { %2706 = vmatpush1.bf16.msra.mxu0 %v5499_v39  ;;  %2729 = vmatprep.mubr.bf16.mxu0 %v4853_v1 }
0x24b9   :  { %2707 = vmatprep.subr.bf16.mxu0 %v5506_v63 }
0x24bc   :  { %2708 = vmatpush1.bf16.msra.mxu0 %v5514_v42 }
0x24bd   :  { %2709 = vmatprep.subr.bf16.mxu0 %v5521_v15 }
0x24c0   :  { %2710 = vmatpush1.bf16.msra.mxu0 %v5528_v17 }
0x24c1   :  { %2711 = vmatprep.subr.bf16.mxu0 %v5535_v52 }
0x24c4   :  { %2712 = vmatpush1.bf16.msra.mxu0 %v5542_v19 }
0x24c5   :  { %2914 = vmatprep.subr.bf16.mxu0 %v5476_v43 }
0x2577   :  { %v2529_v28 = vpop.f32.mrf.mxu0 }
0x2578   :  { %v2538_v9 = vrot.slane %v2529_v28, 2 }
0x2579   :  { %v2531_v41 = vpop.f32.mrf.mxu0 }
0x257a   :  { %v2542_v51 = vadd.f32 %v2538_v9, %v2487_v49  ;;  %v2539_v53 = vrot.slane %v2531_v41, 2 }
0x257b   :  { %v2533_v57 = vpop.f32.mrf.mxu0 }
0x257c   :  { %v4254_v58 = vmul.f32 -1.442695, %v2542_v51  ;;  %v2543_v59 = vadd.f32 %v2539_v53, %v2488_v54 }
0x257d   :  { %v2534_v60 = vpop.f32.mrf.mxu0 }
0x257e   :  { %4691 = vpow2.f32 %v4254_v58  ;;  %v2545_v44 = vadd.f32 %v2543_v59, %v2543_v59 }
0x2580   :  { %v2547_v61 = vsel %vm45_vm1, %v2545_v44, %v2543_v59 }
0x2581   :  { %v4255_v45 = vmul.f32 -1.442695, %v2547_v61 }
0x2583   :  { %4693 = vpow2.f32 %v4255_v45 }
0x258b   :  { %v4692_v3 = vpop.eup %4691 }
0x258c   :  { %v2554_v0 = vadd.f32 1.0, %v4692_v3  ;;  %v2690_v3 = vld [vmem:[#allocation2 + $0x18] sm:$0xc] }
0x258e   :  { %4695 = vrcp.f32 %v2554_v0 }
0x2590   :  { %v4694_v46 = vpop.eup %4693 }
0x2591   :  { %v2555_v48 = vadd.f32 1.0, %v4694_v46 }
0x2593   :  { %4697 = vrcp.f32 %v2555_v48 }
0x259b   :  { %v4696_v2 = vpop.eup %4695 }
0x259c   :  { %v2569_v7 = vmul.f32 %v4696_v2, %v2567_v30  ;;  %v2691_v30 = vld [vmem:[#allocation2 + $0x10] sm:$0xc] }
0x25a0   :  { %v4698_v26 = vpop.eup %4697 }
0x25a1   :  { %v2561_v62 = vadd.f32 %v4698_v26, %v4698_v26 }
0x25a3   :  { %v4257_v4 = vadd.f32 -1.0, %v2561_v62 }
0x25a5   :  { %v2565_v50 = vsel %vm45_vm1, %v4257_v4, %v4698_v26 }
0x25a6   :  { %v2570_v6 = vmul.f32 %v4696_v2, %v2565_v50 }
0x25a8   :  { %2572 = vrot.lane.b32.xlu1 %v2570_v6, %s4854_s2 }
0x261a   :  { %v2573_v29 = vpop.permute.xlu1 %2572 }
0x261b   :  { %v2575_v13 = vadd.f32 %v2573_v29, %v2569_v7 }
0x261d   :  { %4699 = vtanh.f32 %v2575_v13  ;;  %v2666_v37 = vrot.slane %v2575_v13, 6 }
0x262a   :  { %v4700_v8 = vpop.eup %4699 }
0x262b   :  { %v2577_v16 = vmul.f32 %v4700_v8, %v2565_v50 }
0x262d   :  { %v5686_v12 = vpack.c.bf16 %v2577_v16, %v2577_v16 }
0x262f   :  { %v2594_v14 = vrot.slane %v5686_v12, 3 }
0x2631   :  { %2595 = vrot.lane.b32.xlu0 %v2594_v14, %s4854_s2 }
0x26a3   :  { %v2596_v5 = vpop.permute.xlu0 %2595 }
0x26a4   :  { %4260 = vmatmul.mubr.msk.bf16.vlgmr.msra.gmra.mxu1 %vm114_vm0, %v2596_v5 }
0x26a5   :  { %2810 = vmatpush1.bf16.msra.mxu1 %v5499_v39  ;;  %2833 = vmatprep.mubr.bf16.mxu1 %v4853_v1 }
0x26a6   :  { %2811 = vmatprep.subr.bf16.mxu1 %v5506_v63 }
0x26a9   :  { %2812 = vmatpush1.bf16.msra.mxu1 %v5514_v42 }
0x26aa   :  { %2813 = vmatprep.subr.bf16.mxu1 %v5521_v15 }
0x26ad   :  { %2814 = vmatpush1.bf16.msra.mxu1 %v5528_v17 }
0x26ae   :  { %2815 = vmatprep.subr.bf16.mxu1 %v5535_v52 }
0x26b1   :  { %2816 = vmatpush1.bf16.msra.mxu1 %v5542_v19 }
0x26b2   :  { %3019 = vmatprep.subr.bf16.mxu1 %v5476_v43 }
0x2764   :  { %v2634_v55 = vpop.f32.mrf.mxu1 }
0x2765   :  { %v2641_v20 = vadd.f32 %v2634_v55, %v2592_v38 }
0x2766   :  { %v2636_v23 = vpop.f32.mrf.mxu1 }
0x2767   :  { %v4261_v22 = vmul.f32 -1.442695, %v2641_v20  ;;  %v2642_v56 = vadd.f32 %v2636_v23, %v2593_v25 }
0x2768   :  { %v2638_v18 = vpop.f32.mrf.mxu1 }
0x2769   :  { %4701 = vpow2.f32 %v4261_v22  ;;  %v2644_v21 = vadd.f32 %v2642_v56, %v2642_v56 }
0x276a   :  { %v2639_v24 = vpop.f32.mrf.mxu1 }
0x276b   :  { %v2646_v31 = vsel %vm45_vm1, %v2644_v21, %v2642_v56 }
0x276c   :  { %v4262_v32 = vmul.f32 -1.442695, %v2646_v31 }
0x276e   :  { %4703 = vpow2.f32 %v4262_v32 }
0x2776   :  { %v4702_v33 = vpop.eup %4701 }
0x2777   :  { %v2653_v34 = vadd.f32 1.0, %v4702_v33 }
0x2779   :  { %4705 = vrcp.f32 %v2653_v34 }
0x277b   :  { %v4704_v35 = vpop.eup %4703 }
0x277c   :  { %v2654_v27 = vadd.f32 1.0, %v4704_v35 }
0x277e   :  { %4707 = vrcp.f32 %v2654_v27  ;;  %v2793_v27 = vld [vmem:[#allocation2 + $0x18] sm:$0x30] }
0x2786   :  { %v4706_v11 = vpop.eup %4705 }
0x2787   :  { %v2668_v28 = vmul.f32 %v4706_v11, %v2666_v37 }
0x278b   :  { %v4708_v9 = vpop.eup %4707 }
0x278c   :  { %v2660_v49 = vadd.f32 %v4708_v9, %v4708_v9 }
0x278e   :  { %v4264_v41 = vadd.f32 -1.0, %v2660_v49 }
0x2790   :  { %v2664_v51 = vsel %vm45_vm1, %v4264_v41, %v4708_v9  ;;  %v2794_v9 = vld [vmem:[#allocation2 + $0x10] sm:$0x30] }
0x2791   :  { %v2669_v53 = vmul.f32 %v4706_v11, %v2664_v51 }
0x2793   :  { %2671 = vrot.lane.b32.xlu1 %v2669_v53, %s4854_s2 }
0x2805   :  { %v2672_v54 = vpop.permute.xlu1 %2671 }
0x2806   :  { %v2674_v57 = vadd.f32 %v2672_v54, %v2668_v28 }
0x2808   :  { %4709 = vtanh.f32 %v2674_v57  ;;  %v2769_v14 = vrot.slane %v2674_v57, 6 }
0x2815   :  { %v4710_v58 = vpop.eup %4709 }
0x2816   :  { %v2676_v59 = vmul.f32 %v4710_v58, %v2664_v51 }
0x2818   :  { %v5705_v60 = vpack.c.bf16 %v2676_v59, %v2676_v59 }
0x281a   :  { %2692 = vrot.lane.b32.xlu0 %v5705_v60, %s4854_s2 }
0x288c   :  { %v2693_v44 = vpop.permute.xlu0 %2692 }
0x288d   :  { %4266 = vmatmul.mubr.msk.bf16.vlgmr.msra.gmra.mxu0 %vm114_vm0, %v2693_v44 }
0x288e   :  { %2915 = vmatpush1.bf16.msra.mxu0 %v5499_v39  ;;  %2938 = vmatprep.mubr.bf16.mxu0 %v4853_v1 }
0x288f   :  { %2916 = vmatprep.subr.bf16.mxu0 %v5506_v63 }
0x2892   :  { %2917 = vmatpush1.bf16.msra.mxu0 %v5514_v42 }
0x2893   :  { %2918 = vmatprep.subr.bf16.mxu0 %v5521_v15 }
0x2896   :  { %2919 = vmatpush1.bf16.msra.mxu0 %v5528_v17 }
0x2897   :  { %2920 = vmatprep.subr.bf16.mxu0 %v5535_v52 }
0x289a   :  { %2921 = vmatpush1.bf16.msra.mxu0 %v5542_v19 }
0x289b   :  { %3116 = vmatprep.subr.bf16.mxu0 %v5476_v43 }
0x294d   :  { %v2731_v61 = vpop.f32.mrf.mxu0 }
0x294e   :  { %v2740_v45 = vrot.slane %v2731_v61, 6 }
0x294f   :  { %v2733_v0 = vpop.f32.mrf.mxu0 }
0x2950   :  { %v2744_v46 = vadd.f32 %v2740_v45, %v2690_v3  ;;  %v2741_v48 = vrot.slane %v2733_v0, 6 }
0x2951   :  { %v2735_v2 = vpop.f32.mrf.mxu0 }
0x2952   :  { %v4267_v7 = vmul.f32 -1.442695, %v2744_v46  ;;  %v2745_v26 = vadd.f32 %v2741_v48, %v2691_v30 }
0x2953   :  { %v2736_v62 = vpop.f32.mrf.mxu0 }
0x2954   :  { %4711 = vpow2.f32 %v4267_v7  ;;  %v2747_v4 = vadd.f32 %v2745_v26, %v2745_v26 }
0x2956   :  { %v2749_v50 = vsel %vm45_vm1, %v2747_v4, %v2745_v26 }
0x2957   :  { %v4268_v6 = vmul.f32 -1.442695, %v2749_v50 }
0x2959   :  { %4713 = vpow2.f32 %v4268_v6 }
0x2961   :  { %v4712_v29 = vpop.eup %4711 }
0x2962   :  { %v2756_v13 = vadd.f32 1.0, %v4712_v29 }
0x2964   :  { %4715 = vrcp.f32 %v2756_v13 }
0x2966   :  { %v4714_v8 = vpop.eup %4713 }
0x2967   :  { %v2757_v16 = vadd.f32 1.0, %v4714_v8 }
0x2969   :  { %4717 = vrcp.f32 %v2757_v16 }
0x2971   :  { %v4716_v5 = vpop.eup %4715 }
0x2972   :  { %v2771_v38 = vmul.f32 %v4716_v5, %v2769_v14 }
0x2976   :  { %v4718_v55 = vpop.eup %4717 }
0x2977   :  { %v2763_v20 = vadd.f32 %v4718_v55, %v4718_v55 }
0x2979   :  { %v4270_v25 = vadd.f32 -1.0, %v2763_v20 }
0x297b   :  { %v2767_v23 = vsel %vm45_vm1, %v4270_v25, %v4718_v55  ;;  %v2899_v25 = vld [vmem:[#allocation2 + $0x10] sm:$0xc0] }
0x297c   :  { %v2772_v22 = vmul.f32 %v4716_v5, %v2767_v23  ;;  %v2898_v5 = vld [vmem:[#allocation2 + $0x18] sm:$0xc0] }
0x297e   :  { %2774 = vrot.lane.b32.xlu1 %v2772_v22, %s4854_s2 }
0x29f0   :  { %v2775_v56 = vpop.permute.xlu1 %2774 }
0x29f1   :  { %v2777_v18 = vadd.f32 %v2775_v56, %v2771_v38 }
0x29f3   :  { %4719 = vtanh.f32 %v2777_v18  ;;  %v2873_v3 = vrot.slane %v2777_v18, 6 }
0x2a00   :  { %v4720_v21 = vpop.eup %4719 }
0x2a01   :  { %v2779_v24 = vmul.f32 %v4720_v21, %v2767_v23 }
0x2a03   :  { %v5724_v31 = vpack.c.bf16 %v2779_v24, %v2779_v24 }
0x2a05   :  { %v2795_v32 = vrot.slane %v5724_v31, 1 }
0x2a07   :  { %2796 = vrot.lane.b32.xlu0 %v2795_v32, %s4854_s2 }
0x2a79   :  { %v2797_v33 = vpop.permute.xlu0 %2796 }
0x2a7a   :  { %4272 = vmatmul.mubr.msk.bf16.vlgmr.msra.gmra.mxu1 %vm114_vm0, %v2797_v33 }
0x2a7b   :  { %3020 = vmatpush1.bf16.msra.mxu1 %v5499_v39  ;;  %3043 = vmatprep.mubr.bf16.mxu1 %v4853_v1 }
0x2a7c   :  { %3021 = vmatprep.subr.bf16.mxu1 %v5506_v63 }
0x2a7f   :  { %3022 = vmatpush1.bf16.msra.mxu1 %v5514_v42 }
0x2a80   :  { %3023 = vmatprep.subr.bf16.mxu1 %v5521_v15 }
0x2a83   :  { %3024 = vmatpush1.bf16.msra.mxu1 %v5528_v17 }
0x2a84   :  { %3025 = vmatprep.subr.bf16.mxu1 %v5535_v52 }
0x2a87   :  { %3026 = vmatpush1.bf16.msra.mxu1 %v5542_v19 }
0x2a88   :  { %3220 = vmatprep.subr.bf16.mxu1 %v5476_v43 }
0x2b3a   :  { %v2835_v34 = vpop.f32.mrf.mxu1 }
0x2b3b   :  { %v2844_v35 = vrot.slane %v2835_v34, 4 }
0x2b3c   :  { %v2837_v37 = vpop.f32.mrf.mxu1 }
0x2b3d   :  { %v2848_v11 = vadd.f32 %v2844_v35, %v2793_v27  ;;  %v2845_v28 = vrot.slane %v2837_v37, 4 }
0x2b3e   :  { %v2839_v49 = vpop.f32.mrf.mxu1 }
0x2b3f   :  { %v4273_v41 = vmul.f32 -1.442695, %v2848_v11  ;;  %v2849_v51 = vadd.f32 %v2845_v28, %v2794_v9 }
0x2b40   :  { %v2840_v53 = vpop.f32.mrf.mxu1 }
0x2b41   :  { %4721 = vpow2.f32 %v4273_v41  ;;  %v2851_v54 = vadd.f32 %v2849_v51, %v2849_v51 }
0x2b43   :  { %v2853_v57 = vsel %vm45_vm1, %v2851_v54, %v2849_v51 }
0x2b44   :  { %v4274_v58 = vmul.f32 -1.442695, %v2853_v57 }
0x2b46   :  { %4723 = vpow2.f32 %v4274_v58 }
0x2b4e   :  { %v4722_v59 = vpop.eup %4721 }
0x2b4f   :  { %v2860_v44 = vadd.f32 1.0, %v4722_v59 }
0x2b51   :  { %4725 = vrcp.f32 %v2860_v44 }
0x2b53   :  { %v4724_v61 = vpop.eup %4723 }
0x2b54   :  { %v2861_v45 = vadd.f32 1.0, %v4724_v61 }
0x2b56   :  { %4727 = vrcp.f32 %v2861_v45  ;;  %v5778_v45 = vld [vmem:[%s6076_s7 + $0x34] ss:$8 sps:$4 sm:$0xff]  }
0x2b5e   :  { %v4726_v0 = vpop.eup %4725 }
0x2b5f   :  { %v2875_v46 = vmul.f32 %v4726_v0, %v2873_v3 }
0x2b63   :  { %v4728_v48 = vpop.eup %4727 }
0x2b64   :  { %v2867_v30 = vadd.f32 %v4728_v48, %v4728_v48 }
0x2b66   :  { %v4276_v2 = vadd.f32 -1.0, %v2867_v30 }
0x2b68   :  { %v2871_v7 = vsel %vm45_vm1, %v4276_v2, %v4728_v48 }
0x2b69   :  { %v2876_v26 = vmul.f32 %v4726_v0, %v2871_v7  ;;  %v3004_v0 = vld [vmem:[#allocation2 + $0x20] sm:$0x3] }
0x2b6b   :  { %2878 = vrot.lane.b32.xlu1 %v2876_v26, %s4854_s2 }
0x2bdd   :  { %v2879_v62 = vpop.permute.xlu1 %2878 }
0x2bde   :  { %v2881_v4 = vadd.f32 %v2879_v62, %v2875_v46 }
0x2be0   :  { %4729 = vtanh.f32 %v2881_v4  ;;  %v2978_v27 = vrot.slane %v2881_v4, 6 }
0x2bed   :  { %v4730_v50 = vpop.eup %4729 }
0x2bee   :  { %v2883_v6 = vmul.f32 %v4730_v50, %v2871_v7 }
0x2bf0   :  { %v5743_v29 = vpack.c.bf16 %v2883_v6, %v2883_v6 }
0x2bf2   :  { %v2900_v13 = vrot.slane %v5743_v29, 2 }
0x2bf4   :  { %2901 = vrot.lane.b32.xlu0 %v2900_v13, %s4854_s2 }
0x2c66   :  { %v2902_v8 = vpop.permute.xlu0 %2901 }
0x2c67   :  { %4279 = vmatmul.mubr.msk.bf16.vlgmr.msra.gmra.mxu0 %vm114_vm0, %v2902_v8 }
0x2c68   :  { %3117 = vmatpush1.bf16.msra.mxu0 %v5499_v39  ;;  %3140 = vmatprep.mubr.bf16.mxu0 %v4853_v1 }
0x2c69   :  { %3118 = vmatprep.subr.bf16.mxu0 %v5506_v63 }
0x2c6c   :  { %3119 = vmatpush1.bf16.msra.mxu0 %v5514_v42 }
0x2c6d   :  { %3120 = vmatprep.subr.bf16.mxu0 %v5521_v15 }
0x2c70   :  { %3121 = vmatpush1.bf16.msra.mxu0 %v5528_v17 }
0x2c71   :  { %3122 = vmatprep.subr.bf16.mxu0 %v5535_v52 }
0x2c74   :  { %3123 = vmatpush1.bf16.msra.mxu0 %v5542_v19 }
0x2c75   :  { %3325 = vmatprep.subr.bf16.mxu0 %v5476_v43 }
0x2d27   :  { %v2940_v16 = vpop.f32.mrf.mxu0 }
0x2d28   :  { %v2949_v14 = vrot.slane %v2940_v16, 2 }
0x2d29   :  { %v2942_v38 = vpop.f32.mrf.mxu0 }
0x2d2a   :  { %v2953_v55 = vadd.f32 %v2949_v14, %v2898_v5  ;;  %v2950_v20 = vrot.slane %v2942_v38, 2 }
0x2d2b   :  { %v2944_v23 = vpop.f32.mrf.mxu0 }
0x2d2c   :  { %v4280_v22 = vmul.f32 -1.442695, %v2953_v55  ;;  %v2954_v56 = vadd.f32 %v2950_v20, %v2899_v25 }
0x2d2d   :  { %v2945_v18 = vpop.f32.mrf.mxu0 }
0x2d2e   :  { %4731 = vpow2.f32 %v4280_v22  ;;  %v2956_v21 = vadd.f32 %v2954_v56, %v2954_v56  ;;  %v5801_v18 = vld [vmem:[%s6076_s7 + $0x24] ss:$8 sps:$4 sm:$0xff]  }
0x2d30   :  { %v2958_v24 = vsel %vm45_vm1, %v2956_v21, %v2954_v56  ;;  %v5794_v56 = vld [vmem:[%s6076_s7 + $0x30] ss:$8 sps:$4 sm:$0xff]   ;;  %v5807_v21 = vld [vmem:[%s6076_s7 + $0x20] ss:$8 sps:$4 sm:$0xff]  }
0x2d31   :  { %v4281_v32 = vmul.f32 -1.442695, %v2958_v24  ;;  %v5813_v24 = vld [vmem:[%s6076_s7 + $0x14] ss:$8 sps:$4 sm:$0xff]  }
0x2d33   :  { %4733 = vpow2.f32 %v4281_v32  ;;  %v5819_v32 = vld [vmem:[%s6076_s7 + $0x10] ss:$8 sps:$4 sm:$0xff]  }
0x2d3b   :  { %v4732_v33 = vpop.eup %4731 }
0x2d3c   :  { %v2965_v43 = vadd.f32 1.0, %v4732_v33  ;;  %v5825_v33 = vld [vmem:[%s6076_s7 + $0x4] ss:$8 sps:$4 sm:$0xff]  }
0x2d3e   :  { %4735 = vrcp.f32 %v2965_v43  ;;  %v5831_v43 = vld [vmem:[%s6076_s7] ss:$8 sps:$4 sm:$0xff]  }
0x2d40   :  { %v4734_v34 = vpop.eup %4733 }
0x2d41   :  { %v2966_v35 = vadd.f32 1.0, %v4734_v34 }
0x2d43   :  { %4737 = vrcp.f32 %v2966_v35 }
0x2d4b   :  { %v4736_v37 = vpop.eup %4735 }
0x2d4c   :  { %v2980_v11 = vmul.f32 %v4736_v37, %v2978_v27  ;;  %v3101_v27 = vld [vmem:[#allocation2 + $0x8] sm:$0xc] }
0x2d50   :  { %v4738_v28 = vpop.eup %4737 }
0x2d51   :  { %v2972_v9 = vadd.f32 %v4738_v28, %v4738_v28 }
0x2d53   :  { %v4283_v49 = vadd.f32 -1.0, %v2972_v9  ;;  %v3102_v9 = vld [vmem:[#allocation2 + $0x20] sm:$0xc] }
0x2d55   :  { %v2976_v41 = vsel %vm45_vm1, %v4283_v49, %v4738_v28 }
0x2d56   :  { %v2981_v51 = vmul.f32 %v4736_v37, %v2976_v41 }
0x2d58   :  { %2983 = vrot.lane.b32.xlu1 %v2981_v51, %s4854_s2 }
0x2dca   :  { %v2984_v53 = vpop.permute.xlu1 %2983 }
0x2dcb   :  { %v2986_v54 = vadd.f32 %v2984_v53, %v2980_v11 }
0x2dcd   :  { %4739 = vtanh.f32 %v2986_v54  ;;  %v3077_v4 = vrot.slane %v2986_v54, 6 }
0x2dda   :  { %v4740_v57 = vpop.eup %4739 }
0x2ddb   :  { %v2988_v58 = vmul.f32 %v4740_v57, %v2976_v41 }
0x2ddd   :  { %v5762_v59 = vpack.c.bf16 %v2988_v58, %v2988_v58 }
0x2ddf   :  { %v3005_v44 = vrot.slane %v5762_v59, 3 }
0x2de1   :  { %3006 = vrot.lane.b32.xlu0 %v3005_v44, %s4854_s2 }
0x2e53   :  { %v3007_v61 = vpop.permute.xlu0 %3006 }
0x2e54   :  { %4286 = vmatmul.mubr.msk.bf16.vlgmr.msra.gmra.mxu1 %vm114_vm0, %v3007_v61 }
0x2e55   :  { %3221 = vmatpush1.bf16.msra.mxu1 %v5499_v39  ;;  %3244 = vmatprep.mubr.bf16.mxu1 %v4853_v1  ;;  %v3003_v39 = vld [vmem:[#allocation2 + $0x8] sm:$0x3] }
0x2e56   :  { %3222 = vmatprep.subr.bf16.mxu1 %v5506_v63 }
0x2e59   :  { %3223 = vmatpush1.bf16.msra.mxu1 %v5514_v42 }
0x2e5a   :  { %3224 = vmatprep.subr.bf16.mxu1 %v5521_v15 }
0x2e5d   :  { %3225 = vmatpush1.bf16.msra.mxu1 %v5528_v17 }
0x2e5e   :  { %3226 = vmatprep.subr.bf16.mxu1 %v5535_v52 }
0x2e61   :  { %3227 = vmatpush1.bf16.msra.mxu1 %v5542_v19 }
0x2e62   :  { %3430 = vmatprep.subr.bf16.mxu1 %v5778_v45 }
0x2f14   :  { %v3045_v3 = vpop.f32.mrf.mxu1 }
0x2f15   :  { %v3052_v63 = vadd.f32 %v3045_v3, %v3003_v39 }
0x2f16   :  { %v3047_v42 = vpop.f32.mrf.mxu1 }
0x2f17   :  { %v4287_v46 = vmul.f32 -1.442695, %v3052_v63  ;;  %v3053_v15 = vadd.f32 %v3047_v42, %v3004_v0 }
0x2f18   :  { %v3049_v48 = vpop.f32.mrf.mxu1 }
0x2f19   :  { %4741 = vpow2.f32 %v4287_v46  ;;  %v3055_v17 = vadd.f32 %v3053_v15, %v3053_v15 }
0x2f1a   :  { %v3050_v52 = vpop.f32.mrf.mxu1 }
0x2f1b   :  { %v3057_v19 = vsel %vm45_vm1, %v3055_v17, %v3053_v15 }
0x2f1c   :  { %v4288_v30 = vmul.f32 -1.442695, %v3057_v19 }
0x2f1e   :  { %4743 = vpow2.f32 %v4288_v30 }
0x2f26   :  { %v4742_v2 = vpop.eup %4741 }
0x2f27   :  { %v3064_v7 = vadd.f32 1.0, %v4742_v2 }
0x2f29   :  { %4745 = vrcp.f32 %v3064_v7 }
0x2f2b   :  { %v4744_v26 = vpop.eup %4743 }
0x2f2c   :  { %v3065_v62 = vadd.f32 1.0, %v4744_v26 }
0x2f2e   :  { %4747 = vrcp.f32 %v3065_v62 }
0x2f36   :  { %v4746_v50 = vpop.eup %4745 }
0x2f37   :  { %v3079_v6 = vmul.f32 %v4746_v50, %v3077_v4 }
0x2f3b   :  { %v4748_v13 = vpop.eup %4747 }
0x2f3c   :  { %v3071_v8 = vadd.f32 %v4748_v13, %v4748_v13 }
0x2f3e   :  { %v4290_v16 = vadd.f32 -1.0, %v3071_v8 }
0x2f40   :  { %v3075_v14 = vsel %vm45_vm1, %v4290_v16, %v4748_v13  ;;  %v3204_v13 = vld [vmem:[#allocation2 + $0x8] sm:$0x30] }
0x2f41   :  { %v3080_v5 = vmul.f32 %v4746_v50, %v3075_v14 }
0x2f43   :  { %3082 = vrot.lane.b32.xlu1 %v3080_v5, %s4854_s2  ;;  %v3205_v5 = vld [vmem:[#allocation2 + $0x20] sm:$0x30] }
0x2fb5   :  { %v3083_v38 = vpop.permute.xlu1 %3082 }
0x2fb6   :  { %v3085_v55 = vadd.f32 %v3083_v38, %v3079_v6 }
0x2fb8   :  { %4749 = vtanh.f32 %v3085_v55  ;;  %v3180_v63 = vrot.slane %v3085_v55, 6 }
0x2fc5   :  { %v4750_v20 = vpop.eup %4749 }
0x2fc6   :  { %v3087_v25 = vmul.f32 %v4750_v20, %v3075_v14 }
0x2fc8   :  { %v5786_v23 = vpack.c.bf16 %v3087_v25, %v3087_v25 }
0x2fca   :  { %3103 = vrot.lane.b32.xlu0 %v5786_v23, %s4854_s2 }
0x303c   :  { %v3104_v22 = vpop.permute.xlu0 %3103 }
0x303d   :  { %4292 = vmatmul.mubr.msk.bf16.vlgmr.msra.gmra.mxu0 %vm114_vm0, %v3104_v22 }
0x303e   :  { %3326 = vmatpush1.bf16.msra.mxu0 %v5794_v56  ;;  %3349 = vmatprep.mubr.bf16.mxu0 %v4853_v1 }
0x303f   :  { %3327 = vmatprep.subr.bf16.mxu0 %v5801_v18 }
0x3042   :  { %3328 = vmatpush1.bf16.msra.mxu0 %v5807_v21 }
0x3043   :  { %3329 = vmatprep.subr.bf16.mxu0 %v5813_v24 }
0x3046   :  { %3330 = vmatpush1.bf16.msra.mxu0 %v5819_v32 }
0x3047   :  { %3331 = vmatprep.subr.bf16.mxu0 %v5825_v33 }
0x304a   :  { %3332 = vmatpush1.bf16.msra.mxu0 %v5831_v43 }
0x304b   :  { %3527 = vmatprep.subr.bf16.mxu0 %v5778_v45 }
0x30fd   :  { %v3142_v34 = vpop.f32.mrf.mxu0 }
0x30fe   :  { %v3151_v35 = vrot.slane %v3142_v34, 6 }
0x30ff   :  { %v3144_v37 = vpop.f32.mrf.mxu0 }
0x3100   :  { %v3155_v11 = vadd.f32 %v3151_v35, %v3101_v27  ;;  %v3152_v28 = vrot.slane %v3144_v37, 6 }
0x3101   :  { %v3146_v49 = vpop.f32.mrf.mxu0 }
0x3102   :  { %v4293_v41 = vmul.f32 -1.442695, %v3155_v11  ;;  %v3156_v51 = vadd.f32 %v3152_v28, %v3102_v9 }
0x3103   :  { %v3147_v53 = vpop.f32.mrf.mxu0 }
0x3104   :  { %4751 = vpow2.f32 %v4293_v41  ;;  %v3158_v54 = vadd.f32 %v3156_v51, %v3156_v51 }
0x3106   :  { %v3160_v57 = vsel %vm45_vm1, %v3158_v54, %v3156_v51 }
0x3107   :  { %v4294_v58 = vmul.f32 -1.442695, %v3160_v57 }
0x3109   :  { %4753 = vpow2.f32 %v4294_v58 }
0x3111   :  { %v4752_v44 = vpop.eup %4751 }
0x3112   :  { %v3167_v61 = vadd.f32 1.0, %v4752_v44 }
0x3114   :  { %4755 = vrcp.f32 %v3167_v61 }
0x3116   :  { %v4754_v39 = vpop.eup %4753 }
0x3117   :  { %v3168_v3 = vadd.f32 1.0, %v4754_v39 }
0x3119   :  { %4757 = vrcp.f32 %v3168_v3 }
0x3121   :  { %v4756_v0 = vpop.eup %4755 }
0x3122   :  { %v3182_v42 = vmul.f32 %v4756_v0, %v3180_v63 }
0x3126   :  { %v4758_v46 = vpop.eup %4757 }
0x3127   :  { %v3174_v15 = vadd.f32 %v4758_v46, %v4758_v46 }
0x3129   :  { %v4296_v48 = vadd.f32 -1.0, %v3174_v15 }
0x312b   :  { %v3178_v17 = vsel %vm45_vm1, %v4296_v48, %v4758_v46  ;;  %v3309_v48 = vld [vmem:[#allocation2 + $0x8] sm:$0xc0] }
0x312c   :  { %v3183_v52 = vmul.f32 %v4756_v0, %v3178_v17 }
0x312e   :  { %3185 = vrot.lane.b32.xlu1 %v3183_v52, %s4854_s2 }
0x31a0   :  { %v3186_v19 = vpop.permute.xlu1 %3185 }
0x31a1   :  { %v3188_v30 = vadd.f32 %v3186_v19, %v3182_v42 }
0x31a3   :  { %4759 = vtanh.f32 %v3188_v30  ;;  %v3284_v9 = vrot.slane %v3188_v30, 6  ;;  %v3310_v30 = vld [vmem:[#allocation2 + $0x20] sm:$0xc0] }
0x31b0   :  { %v4760_v2 = vpop.eup %4759 }
0x31b1   :  { %v3190_v7 = vmul.f32 %v4760_v2, %v3178_v17 }
0x31b3   :  { %v5840_v26 = vpack.c.bf16 %v3190_v7, %v3190_v7 }
0x31b5   :  { %v3206_v62 = vrot.slane %v5840_v26, 1 }
0x31b7   :  { %3207 = vrot.lane.b32.xlu0 %v3206_v62, %s4854_s2 }
0x3229   :  { %v3208_v4 = vpop.permute.xlu0 %3207 }
0x322a   :  { %4298 = vmatmul.mubr.msk.bf16.vlgmr.msra.gmra.mxu1 %vm114_vm0, %v3208_v4 }
0x322b   :  { %3431 = vmatpush1.bf16.msra.mxu1 %v5794_v56  ;;  %3454 = vmatprep.mubr.bf16.mxu1 %v4853_v1 }
0x322c   :  { %3432 = vmatprep.subr.bf16.mxu1 %v5801_v18 }
0x322f   :  { %3433 = vmatpush1.bf16.msra.mxu1 %v5807_v21 }
0x3230   :  { %3434 = vmatprep.subr.bf16.mxu1 %v5813_v24 }
0x3233   :  { %3435 = vmatpush1.bf16.msra.mxu1 %v5819_v32 }
0x3234   :  { %3436 = vmatprep.subr.bf16.mxu1 %v5825_v33 }
0x3237   :  { %3437 = vmatpush1.bf16.msra.mxu1 %v5831_v43 }
0x3238   :  { %3631 = vmatprep.subr.bf16.mxu1 %v5778_v45 }
0x32ea   :  { %v3246_v50 = vpop.f32.mrf.mxu1 }
0x32eb   :  { %v3255_v6 = vrot.slane %v3246_v50, 4 }
0x32ec   :  { %v3248_v8 = vpop.f32.mrf.mxu1 }
0x32ed   :  { %v3259_v16 = vadd.f32 %v3255_v6, %v3204_v13  ;;  %v3256_v14 = vrot.slane %v3248_v8, 4 }
0x32ee   :  { %v3250_v38 = vpop.f32.mrf.mxu1 }
0x32ef   :  { %v4299_v55 = vmul.f32 -1.442695, %v3259_v16  ;;  %v3260_v20 = vadd.f32 %v3256_v14, %v3205_v5 }
0x32f0   :  { %v3251_v25 = vpop.f32.mrf.mxu1 }
0x32f1   :  { %4761 = vpow2.f32 %v4299_v55  ;;  %v3262_v22 = vadd.f32 %v3260_v20, %v3260_v20 }
0x32f3   :  { %v3264_v34 = vsel %vm45_vm1, %v3262_v22, %v3260_v20 }
0x32f4   :  { %v4300_v35 = vmul.f32 -1.442695, %v3264_v34 }
0x32f6   :  { %4763 = vpow2.f32 %v4300_v35 }
0x32fe   :  { %v4762_v27 = vpop.eup %4761 }
0x32ff   :  { %v3271_v37 = vadd.f32 1.0, %v4762_v27 }
0x3301   :  { %4765 = vrcp.f32 %v3271_v37 }
0x3303   :  { %v4764_v11 = vpop.eup %4763 }
0x3304   :  { %v3272_v28 = vadd.f32 1.0, %v4764_v11 }
0x3306   :  { %4767 = vrcp.f32 %v3272_v28 }
0x330e   :  { %v4766_v49 = vpop.eup %4765 }
0x330f   :  { %v3286_v41 = vmul.f32 %v4766_v49, %v3284_v9 }
0x3313   :  { %v4768_v51 = vpop.eup %4767 }
0x3314   :  { %v3278_v53 = vadd.f32 %v4768_v51, %v4768_v51 }
0x3316   :  { %v4302_v54 = vadd.f32 -1.0, %v3278_v53 }
0x3318   :  { %v3282_v57 = vsel %vm45_vm1, %v4302_v54, %v4768_v51  ;;  %v3414_v51 = vld [vmem:[#allocation2 + $0x28] sm:$0x3] }
0x3319   :  { %v3287_v58 = vmul.f32 %v4766_v49, %v3282_v57 }
0x331b   :  { %3289 = vrot.lane.b32.xlu1 %v3287_v58, %s4854_s2 }
0x338d   :  { %v3290_v44 = vpop.permute.xlu1 %3289 }
0x338e   :  { %v3292_v61 = vadd.f32 %v3290_v44, %v3286_v41 }
0x3390   :  { %4769 = vtanh.f32 %v3292_v61  ;;  %v3389_v5 = vrot.slane %v3292_v61, 6 }
0x339d   :  { %v4770_v39 = vpop.eup %4769 }
0x339e   :  { %v3294_v3 = vmul.f32 %v4770_v39, %v3282_v57  ;;  %v3415_v57 = vld [vmem:[#allocation2 + $0x38] sm:$0x3] }
0x33a0   :  { %v5859_v63 = vpack.c.bf16 %v3294_v3, %v3294_v3 }
0x33a2   :  { %v3311_v0 = vrot.slane %v5859_v63, 2 }
0x33a4   :  { %3312 = vrot.lane.b32.xlu0 %v3311_v0, %s4854_s2 }
0x3416   :  { %v3313_v42 = vpop.permute.xlu0 %3312 }
0x3417   :  { %4305 = vmatmul.mubr.msk.bf16.vlgmr.msra.gmra.mxu0 %vm114_vm0, %v3313_v42 }
0x3418   :  { %3528 = vmatpush1.bf16.msra.mxu0 %v5794_v56  ;;  %3551 = vmatprep.mubr.bf16.mxu0 %v4853_v1 }
0x3419   :  { %3529 = vmatprep.subr.bf16.mxu0 %v5801_v18 }
0x341c   :  { %3530 = vmatpush1.bf16.msra.mxu0 %v5807_v21 }
0x341d   :  { %3531 = vmatprep.subr.bf16.mxu0 %v5813_v24 }
0x3420   :  { %3532 = vmatpush1.bf16.msra.mxu0 %v5819_v32 }
0x3421   :  { %3533 = vmatprep.subr.bf16.mxu0 %v5825_v33 }
0x3424   :  { %3534 = vmatpush1.bf16.msra.mxu0 %v5831_v43 }
0x3425   :  { %3736 = vmatprep.subr.bf16.mxu0 %v5778_v45 }
0x34d7   :  { %v3351_v46 = vpop.f32.mrf.mxu0 }
0x34d8   :  { %v3360_v15 = vrot.slane %v3351_v46, 2 }
0x34d9   :  { %v3353_v17 = vpop.f32.mrf.mxu0 }
0x34da   :  { %v3364_v52 = vadd.f32 %v3360_v15, %v3309_v48  ;;  %v3361_v19 = vrot.slane %v3353_v17, 2 }
0x34db   :  { %v3355_v2 = vpop.f32.mrf.mxu0 }
0x34dc   :  { %v4306_v7 = vmul.f32 -1.442695, %v3364_v52  ;;  %v3365_v62 = vadd.f32 %v3361_v19, %v3310_v30 }
0x34dd   :  { %v3356_v4 = vpop.f32.mrf.mxu0 }
0x34de   :  { %4771 = vpow2.f32 %v4306_v7  ;;  %v3367_v50 = vadd.f32 %v3365_v62, %v3365_v62 }
0x34e0   :  { %v3369_v6 = vsel %vm45_vm1, %v3367_v50, %v3365_v62 }
0x34e1   :  { %v4307_v13 = vmul.f32 -1.442695, %v3369_v6 }
0x34e3   :  { %4773 = vpow2.f32 %v4307_v13 }
0x34eb   :  { %v4772_v8 = vpop.eup %4771 }
0x34ec   :  { %v3376_v45 = vadd.f32 1.0, %v4772_v8 }
0x34ee   :  { %4775 = vrcp.f32 %v3376_v45 }
0x34f0   :  { %v4774_v16 = vpop.eup %4773 }
0x34f1   :  { %v3377_v14 = vadd.f32 1.0, %v4774_v16 }
0x34f3   :  { %4777 = vrcp.f32 %v3377_v14 }
0x34fb   :  { %v4776_v38 = vpop.eup %4775 }
0x34fc   :  { %v3391_v55 = vmul.f32 %v4776_v38, %v3389_v5 }
0x3500   :  { %v4778_v20 = vpop.eup %4777 }
0x3501   :  { %v3383_v25 = vadd.f32 %v4778_v20, %v4778_v20 }
0x3503   :  { %v4309_v22 = vadd.f32 -1.0, %v3383_v25 }
0x3505   :  { %v3387_v34 = vsel %vm45_vm1, %v4309_v22, %v4778_v20  ;;  %v3512_v20 = vld [vmem:[#allocation2 + $0x28] sm:$0xc] }
0x3506   :  { %v3392_v35 = vmul.f32 %v4776_v38, %v3387_v34 }
0x3508   :  { %3394 = vrot.lane.b32.xlu1 %v3392_v35, %s4854_s2 }
0x357a   :  { %v3395_v27 = vpop.permute.xlu1 %3394 }
0x357b   :  { %v3397_v37 = vadd.f32 %v3395_v27, %v3391_v55 }
0x357d   :  { %4779 = vtanh.f32 %v3397_v37  ;;  %v3488_v19 = vrot.slane %v3397_v37, 6 }
0x358a   :  { %v4780_v11 = vpop.eup %4779 }
0x358b   :  { %v3399_v28 = vmul.f32 %v4780_v11, %v3387_v34  ;;  %v3513_v34 = vld [vmem:[#allocation2 + $0x38] sm:$0xc] }
0x358d   :  { %v5878_v9 = vpack.c.bf16 %v3399_v28, %v3399_v28 }
0x358f   :  { %v3416_v49 = vrot.slane %v5878_v9, 3  ;;  %v4311_v40 = vrot.slane %v5878_v9, 11 }
0x3591   :  { %3417 = vrot.lane.b32.xlu0 %v3416_v49, %s4854_s2 }
0x3603   :  { %v3418_v41 = vpop.permute.xlu0 %3417 }
0x3604   :  { %4312 = vmatmul.mubr.msk.bf16.vlgmr.msra.gmra.mxu1 %vm114_vm0, %v3418_v41 }
0x3605   :  { %3632 = vmatpush1.bf16.msra.mxu1 %v5794_v56  ;;  %3655 = vmatprep.mubr.bf16.mxu1 %v4853_v1 }
0x3606   :  { %3633 = vmatprep.subr.bf16.mxu1 %v5801_v18 }
0x3609   :  { %3634 = vmatpush1.bf16.msra.mxu1 %v5807_v21 }
0x360a   :  { %3635 = vmatprep.subr.bf16.mxu1 %v5813_v24 }
0x360d   :  { %3636 = vmatpush1.bf16.msra.mxu1 %v5819_v32 }
0x360e   :  { %3637 = vmatprep.subr.bf16.mxu1 %v5825_v33 }
0x3611   :  { %3638 = vmatpush1.bf16.msra.mxu1 %v5831_v43 }
0x36c4   :  { %v3456_v53 = vpop.f32.mrf.mxu1 }
0x36c5   :  { %v3463_v54 = vadd.f32 %v3456_v53, %v3414_v51 }
0x36c6   :  { %v3458_v58 = vpop.f32.mrf.mxu1 }
0x36c7   :  { %v4313_v44 = vmul.f32 -1.442695, %v3463_v54  ;;  %v3464_v61 = vadd.f32 %v3458_v58, %v3415_v57 }
0x36c8   :  { %v3460_v39 = vpop.f32.mrf.mxu1 }
0x36c9   :  { %4781 = vpow2.f32 %v4313_v44  ;;  %v3466_v3 = vadd.f32 %v3464_v61, %v3464_v61 }
0x36ca   :  { %v3461_v0 = vpop.f32.mrf.mxu1 }
0x36cb   :  { %v3468_v42 = vsel %vm45_vm1, %v3466_v3, %v3464_v61 }
0x36cc   :  { %v4314_v46 = vmul.f32 -1.442695, %v3468_v42 }
0x36ce   :  { %4783 = vpow2.f32 %v4314_v46 }
0x36d6   :  { %v4782_v15 = vpop.eup %4781 }
0x36d7   :  { %v3475_v48 = vadd.f32 1.0, %v4782_v15 }
0x36d9   :  { %4785 = vrcp.f32 %v3475_v48 }
0x36db   :  { %v4784_v17 = vpop.eup %4783 }
0x36dc   :  { %v3476_v52 = vadd.f32 1.0, %v4784_v17  ;;  %v3615_v17 = vld [vmem:[#allocation2 + $0x28] sm:$0x30] }
0x36de   :  { %4787 = vrcp.f32 %v3476_v52 }
0x36e6   :  { %v4786_v30 = vpop.eup %4785 }
0x36e7   :  { %v3490_v2 = vmul.f32 %v4786_v30, %v3488_v19 }
0x36eb   :  { %v4788_v7 = vpop.eup %4787 }
0x36ec   :  { %v3482_v62 = vadd.f32 %v4788_v7, %v4788_v7 }
0x36ee   :  { %v4316_v4 = vadd.f32 -1.0, %v3482_v62 }
0x36f0   :  { %v3486_v50 = vsel %vm45_vm1, %v4316_v4, %v4788_v7 }
0x36f1   :  { %v3491_v6 = vmul.f32 %v4786_v30, %v3486_v50 }
0x36f3   :  { %3493 = vrot.lane.b32.xlu1 %v3491_v6, %s4854_s2 }
0x3765   :  { %v3494_v13 = vpop.permute.xlu1 %3493 }
0x3766   :  { %v3496_v8 = vadd.f32 %v3494_v13, %v3490_v2  ;;  %v3616_v2 = vld [vmem:[#allocation2 + $0x38] sm:$0x30] }
0x3768   :  { %4789 = vtanh.f32 %v3496_v8  ;;  %v3591_v28 = vrot.slane %v3496_v8, 6 }
0x3775   :  { %v4790_v45 = vpop.eup %4789 }
0x3776   :  { %v3498_v16 = vmul.f32 %v4790_v45, %v3486_v50 }
0x3778   :  { %v5896_v14 = vpack.c.bf16 %v3498_v16, %v3498_v16 }
0x377a   :  { %3514 = vrot.lane.b32.xlu0 %v5896_v14, %s4854_s2 }
0x37ec   :  { %v3515_v5 = vpop.permute.xlu0 %3514 }
0x37ed   :  { %4318 = vmatmul.mubr.msk.bf16.vlgmr.msra.gmra.mxu0 %vm114_vm0, %v3515_v5 }
0x37ee   :  { %3737 = vmatpush1.bf16.msra.mxu0 %v5794_v56  ;;  %3760 = vmatprep.mubr.bf16.mxu0 %v4853_v1 }
0x37ef   :  { %3738 = vmatprep.subr.bf16.mxu0 %v5801_v18 }
0x37f2   :  { %3739 = vmatpush1.bf16.msra.mxu0 %v5807_v21 }
0x37f3   :  { %3740 = vmatprep.subr.bf16.mxu0 %v5813_v24 }
0x37f6   :  { %3741 = vmatpush1.bf16.msra.mxu0 %v5819_v32 }
0x37f7   :  { %3742 = vmatprep.subr.bf16.mxu0 %v5825_v33 }
0x37fa   :  { %3743 = vmatpush1.bf16.msra.mxu0 %v5831_v43 }
0x38ad   :  { %v3553_v38 = vpop.f32.mrf.mxu0 }
0x38ae   :  { %v3562_v55 = vrot.slane %v3553_v38, 6 }
0x38af   :  { %v3555_v25 = vpop.f32.mrf.mxu0 }
0x38b0   :  { %v3566_v22 = vadd.f32 %v3562_v55, %v3512_v20  ;;  %v3563_v56 = vrot.slane %v3555_v25, 6 }
0x38b1   :  { %v3557_v1 = vpop.f32.mrf.mxu0 }
0x38b2   :  { %v4319_v35 = vmul.f32 -1.442695, %v3566_v22  ;;  %v3567_v18 = vadd.f32 %v3563_v56, %v3513_v34 }
0x38b3   :  { %v3558_v27 = vpop.f32.mrf.mxu0 }
0x38b4   :  { %4791 = vpow2.f32 %v4319_v35  ;;  %v3569_v21 = vadd.f32 %v3567_v18, %v3567_v18 }
0x38b6   :  { %v3571_v24 = vsel %vm45_vm1, %v3569_v21, %v3567_v18 }
0x38b7   :  { %v4320_v32 = vmul.f32 -1.442695, %v3571_v24 }
0x38b9   :  { %4793 = vpow2.f32 %v4320_v32 }
0x38c1   :  { %v4792_v33 = vpop.eup %4791 }
0x38c2   :  { %v3578_v43 = vadd.f32 1.0, %v4792_v33 }
0x38c4   :  { %4795 = vrcp.f32 %v3578_v43  ;;  %v3096_v43 = vrot.slane %v5786_v23, 5 }
0x38c6   :  { %v4794_v37 = vpop.eup %4793 }
0x38c7   :  { %v3579_v11 = vadd.f32 1.0, %v4794_v37  ;;  %v4304_v37 = vrot.slane %v5859_v63, 9 }
0x38c9   :  { %4797 = vrcp.f32 %v3579_v11  ;;  %v3507_v11 = vrot.slane %v5896_v14, 5 }
0x38d1   :  { %v4796_v49 = vpop.eup %4795 }
0x38d2   :  { %v3593_v41 = vmul.f32 %v4796_v49, %v3591_v28 }
0x38d6   :  { %v4798_v51 = vpop.eup %4797 }
0x38d7   :  { %v3585_v53 = vadd.f32 %v4798_v51, %v4798_v51 }
0x38d9   :  { %v4322_v54 = vadd.f32 -1.0, %v3585_v53  ;;  %v4278_v53 = vrot.slane %v5743_v29, 9 }
0x38db   :  { %v3589_v57 = vsel %vm45_vm1, %v4322_v54, %v4798_v51  ;;  %v2685_v51 = vrot.slane %v5705_v60, 5 }
0x38dc   :  { %v3594_v58 = vmul.f32 %v4796_v49, %v3589_v57  ;;  %v2274_v49 = vrot.slane %v5618_v10, 5 }
0x38de   :  { %3596 = vrot.lane.b32.xlu1 %v3594_v58, %s4854_s2 }
0x3950   :  { %v3597_v44 = vpop.permute.xlu1 %3596 }
0x3951   :  { %v3599_v61 = vadd.f32 %v3597_v44, %v3593_v41  ;;  %v4252_v41 = vrot.slane %v5667_v36, 9 }
0x3953   :  { %4799 = vtanh.f32 %v3599_v61  ;;  %v3695_v55 = vrot.slane %v3599_v61, 6 }
0x3960   :  { %v4800_v39 = vpop.eup %4799 }
0x3961   :  { %v3601_v3 = vmul.f32 %v4800_v39, %v3589_v57 }
0x3963   :  { %v5914_v0 = vpack.c.bf16 %v3601_v3, %v3601_v3 }
0x3965   :  { %v3617_v42 = vrot.slane %v5914_v0, 1 }
0x3967   :  { %3618 = vrot.lane.b32.xlu0 %v3617_v42, %s4854_s2 }
0x39d9   :  { %v3619_v46 = vpop.permute.xlu0 %3618 }
0x39da   :  { %4324 = vmatmul.mubr.msk.bf16.vlgmr.msra.gmra.mxu1 %vm114_vm0, %v3619_v46 }
0x3a9a   :  { %v3657_v15 = vpop.f32.mrf.mxu1 }
0x3a9b   :  { %v3666_v48 = vrot.slane %v3657_v15, 4 }
0x3a9c   :  { %v3659_v52 = vpop.f32.mrf.mxu1 }
0x3a9d   :  { %v3670_v19 = vadd.f32 %v3666_v48, %v3615_v17  ;;  %v3667_v30 = vrot.slane %v3659_v52, 4  ;;  %v3720_v52 = vld [vmem:[#allocation2 + $0x28] sm:$0xc0] }
0x3a9e   :  { %v3661_v7 = vpop.f32.mrf.mxu1 }
0x3a9f   :  { %v4325_v62 = vmul.f32 -1.442695, %v3670_v19  ;;  %v3671_v4 = vadd.f32 %v3667_v30, %v3616_v2  ;;  %v3721_v7 = vld [vmem:[#allocation2 + $0x38] sm:$0xc0] }
0x3aa0   :  { %v3662_v50 = vpop.f32.mrf.mxu1 }
0x3aa1   :  { %4801 = vpow2.f32 %v4325_v62  ;;  %v3673_v6 = vadd.f32 %v3671_v4, %v3671_v4 }
0x3aa3   :  { %v3675_v13 = vsel %vm45_vm1, %v3673_v6, %v3671_v4 }
0x3aa4   :  { %v4326_v8 = vmul.f32 -1.442695, %v3675_v13 }
0x3aa6   :  { %4803 = vpow2.f32 %v4326_v8 }
0x3aae   :  { %v4802_v45 = vpop.eup %4801 }
0x3aaf   :  { %v3682_v16 = vadd.f32 1.0, %v4802_v45 }
0x3ab1   :  { %4805 = vrcp.f32 %v3682_v16 }
0x3ab3   :  { %v4804_v5 = vpop.eup %4803 }
0x3ab4   :  { %v3683_v38 = vadd.f32 1.0, %v4804_v5 }
0x3ab6   :  { %4807 = vrcp.f32 %v3683_v38 }
0x3abe   :  { %v4806_v20 = vpop.eup %4805 }
0x3abf   :  { %v3697_v25 = vmul.f32 %v4806_v20, %v3695_v55 }
0x3ac3   :  { %v4808_v22 = vpop.eup %4807 }
0x3ac4   :  { %v3689_v56 = vadd.f32 %v4808_v22, %v4808_v22 }
0x3ac6   :  { %v4328_v34 = vadd.f32 -1.0, %v3689_v56 }
0x3ac8   :  { %v3693_v1 = vsel %vm45_vm1, %v4328_v34, %v4808_v22 }
0x3ac9   :  { %v3698_v35 = vmul.f32 %v4806_v20, %v3693_v1 }
0x3acb   :  { %3700 = vrot.lane.b32.xlu1 %v3698_v35, %s4854_s2 }
0x3b3d   :  { %v3701_v18 = vpop.permute.xlu1 %3700 }
0x3b3e   :  { %v5924_v27 = vadd.f32 %v3701_v18, %v3697_v25 }
0x3b40   :  { %4809 = vtanh.f32 %v5924_v27  ;;  %v3800_v20 = vrot.slane %v5924_v27, 6  ;;  %v3199_v27 = vrot.slane %v5840_v26, 7 }
0x3b4d   :  { %v4810_v21 = vpop.eup %4809 }
0x3b4e   :  { %v3705_v24 = vmul.f32 %v4810_v21, %v3693_v1  ;;  %v3610_v21 = vrot.slane %v5914_v0, 7 }
0x3b50   :  { %v3706_v32 = vpack.c.bf16 %v3705_v24, %v3705_v24  ;;  %v2377_v24 = vrot.slane %v5648_v47, 7 }
0x3b52   :  { %v3722_v33 = vrot.slane %v3706_v32, 2  ;;  %v4330_v28 = vrot.slane %v3706_v32, 9 }
0x3b54   :  { %3723 = vrot.lane.b32.xlu0 %v3722_v33, %s4854_s2  ;;  %v2788_v33 = vrot.slane %v5724_v31, 7 }
0x3b58   :  { %2270 = vrot.lane.b32.xlu0 %v5618_v10, %s4854_s2 }
0x3b5c   :  { %2477 = vrot.lane.b32.xlu0 %v5667_v36, %s4854_s2 }
0x3b60   :  { %2681 = vrot.lane.b32.xlu0 %v5705_v60, %s4854_s2 }
0x3b64   :  { %2888 = vrot.lane.b32.xlu0 %v5743_v29, %s4854_s2 }
0x3b68   :  { %3097 = vrot.lane.b32.xlu0 %v3096_v43, %s4854_s2  ;;  %v4285_v43 = vrot.slane %v5762_v59, 11 }
0x3b6c   :  { %3305 = vrot.lane.b32.xlu0 %v4304_v37, %s4854_s2  ;;  %v4490_v37 = vld [vmem:[%s6078_s9 + $0x18] sm:$0xff]  }
0x3b6d   :  { %4399 = vmatprep.subr.bf16.mxu1 %v4490_v37 }
0x3b6e   :  { %4400 = vmatpush3.bf16.msra.mxu1 %v4490_v37 }
0x3b70   :  { %3508 = vrot.lane.b32.xlu0 %v3507_v11, %s4854_s2 }
0x3b74   :  { %3716 = vrot.lane.b32.xlu0 %v4330_v28, %s4854_s2 }
0x3b78   :  { %2275 = vrot.lane.b32.xlu0 %v2274_v49, %s4854_s2 }
0x3b7c   :  { %2483 = vrot.lane.b32.xlu0 %v4252_v41, %s4854_s2  ;;  %v4496_v41 = vld [vmem:[%s6078_s9] sm:$0xff]  }
0x3b80   :  { %2686 = vrot.lane.b32.xlu0 %v2685_v51, %s4854_s2 }
0x3b84   :  { %2894 = vrot.lane.b32.xlu0 %v4278_v53, %s4854_s2 }
0x3b88   :  { %3092 = vrot.lane.b32.xlu0 %v5786_v23, %s4854_s2 }
0x3b8c   :  { %3299 = vrot.lane.b32.xlu0 %v5859_v63, %s4854_s2 }
0x3b90   :  { %3503 = vrot.lane.b32.xlu0 %v5896_v14, %s4854_s2 }
0x3b94   :  { %3710 = vrot.lane.b32.xlu0 %v3706_v32, %s4854_s2  ;;  %v4259_v32 = vrot.slane %v5686_v12, 11 }
0x3bc6   :  { %v3724_v10 = vpop.permute.xlu0 %3723 }
0x3bc7   :  { %4331 = vmatmul.mubr.msk.bf16.vlgmr.msra.gmra.mxu0 %vm114_vm0, %v3724_v10 }
0x3bca   :  { %v2271_v36 = vpop.permute.xlu0 %2270 }
0x3bcb   :  { %2273 = vst.msk [vmem:[#allocation3] sm:$0x1] %vm316_vm4, %v2271_v36  ;;  %v4498_v36 = vld [vmem:[%s6079_s8] sm:$0xff]  }
0x3bce   :  { %v2478_v60 = vpop.permute.xlu0 %2477 }
0x3bcf   :  { %2480 = vst.msk [vmem:[#allocation3] sm:$0x4] %vm427_vm5, %v2478_v60 }
0x3bd2   :  { %v2682_v29 = vpop.permute.xlu0 %2681 }
0x3bd3   :  { %2684 = vst.msk [vmem:[#allocation3 + $0x4] sm:$0x1] %vm316_vm4, %v2682_v29 }
0x3bd6   :  { %v2889_v23 = vpop.permute.xlu0 %2888 }
0x3bd7   :  { %2891 = vst.msk [vmem:[#allocation3 + $0x4] sm:$0x4] %vm427_vm5, %v2889_v23 }
0x3bda   :  { %v3098_v63 = vpop.permute.xlu0 %3097 }
0x3bdb   :  { %3100 = vst.msk [vmem:[#allocation4 + $0x4] sm:$0x8] %vm322_vm2, %v3098_v63 }
0x3bde   :  { %v3306_v14 = vpop.permute.xlu0 %3305 }
0x3bdf   :  { %3308 = vst.msk [vmem:[#allocation4 + $0x4] sm:$0x2] %vm421_vm3, %v3306_v14 }
0x3be2   :  { %v3509_v54 = vpop.permute.xlu0 %3508 }
0x3be3   :  { %3511 = vst.msk [vmem:[#allocation4] sm:$0x8] %vm322_vm2, %v3509_v54 }
0x3be6   :  { %v3717_v57 = vpop.permute.xlu0 %3716 }
0x3be7   :  { %3719 = vst.msk [vmem:[#allocation4] sm:$0x2] %vm421_vm3, %v3717_v57 }
0x3bea   :  { %v2276_v58 = vpop.permute.xlu0 %2275 }
0x3beb   :  { %2278 = vst.msk [vmem:[#allocation4 + $0xc] sm:$0x8] %vm322_vm2, %v2276_v58 }
0x3bee   :  { %v2484_v44 = vpop.permute.xlu0 %2483 }
0x3bef   :  { %2486 = vst.msk [vmem:[#allocation4 + $0xc] sm:$0x2] %vm421_vm3, %v2484_v44 }
0x3bf2   :  { %v2687_v61 = vpop.permute.xlu0 %2686 }
0x3bf3   :  { %2689 = vst.msk [vmem:[#allocation4 + $0x8] sm:$0x8] %vm322_vm2, %v2687_v61 }
0x3bf6   :  { %v2895_v39 = vpop.permute.xlu0 %2894 }
0x3bf7   :  { %2897 = vst.msk [vmem:[#allocation4 + $0x8] sm:$0x2] %vm421_vm3, %v2895_v39 }
0x3bfa   :  { %v3093_v3 = vpop.permute.xlu0 %3092 }
0x3bfb   :  { %3095 = vst.msk [vmem:[#allocation3 + $0x8] sm:$0x1] %vm316_vm4, %v3093_v3 }
0x3bfe   :  { %v3300_v42 = vpop.permute.xlu0 %3299 }
0x3bff   :  { %3302 = vst.msk [vmem:[#allocation3 + $0x8] sm:$0x4] %vm427_vm5, %v3300_v42 }
0x3c02   :  { %v3504_v46 = vpop.permute.xlu0 %3503 }
0x3c03   :  { %3506 = vst.msk [vmem:[#allocation3 + $0xc] sm:$0x1] %vm316_vm4, %v3504_v46 }
0x3c06   :  { %v3711_v15 = vpop.permute.xlu0 %3710 }
0x3c07   :  { %3713 = vst.msk [vmem:[#allocation3 + $0xc] sm:$0x4] %vm427_vm5, %v3711_v15 }
0x3c87   :  { %v3762_v48 = vpop.f32.mrf.mxu0 }
0x3c88   :  { %v3771_v17 = vrot.slane %v3762_v48, 2 }
0x3c89   :  { %v3764_v19 = vpop.f32.mrf.mxu0 }
0x3c8a   :  { %v3775_v30 = vadd.f32 %v3771_v17, %v3720_v52  ;;  %v3772_v2 = vrot.slane %v3764_v19, 2 }
0x3c8b   :  { %v3766_v62 = vpop.f32.mrf.mxu0 }
0x3c8c   :  { %v4332_v4 = vmul.f32 -1.442695, %v3775_v30  ;;  %v3776_v50 = vadd.f32 %v3772_v2, %v3721_v7 }
0x3c8d   :  { %v3767_v6 = vpop.f32.mrf.mxu0 }
0x3c8e   :  { %4811 = vpow2.f32 %v4332_v4  ;;  %v3778_v13 = vadd.f32 %v3776_v50, %v3776_v50 }
0x3c90   :  { %v3780_v8 = vsel %vm45_vm1, %v3778_v13, %v3776_v50  ;;  %v4354_v50 = vld [vmem:[%s6080_s10] ss:$0 sm:$0xff] }
0x3c91   :  { %v4333_v45 = vmul.f32 -1.442695, %v3780_v8 }
0x3c93   :  { %4813 = vpow2.f32 %v4333_v45 }
0x3c9b   :  { %v4812_v16 = vpop.eup %4811 }
0x3c9c   :  { %v3787_v5 = vadd.f32 1.0, %v4812_v16 }
0x3c9e   :  { %4815 = vrcp.f32 %v3787_v5 }
0x3ca0   :  { %v4814_v38 = vpop.eup %4813 }
0x3ca1   :  { %v3788_v55 = vadd.f32 1.0, %v4814_v38 }
0x3ca3   :  { %4817 = vrcp.f32 %v3788_v55 }
0x3cab   :  { %v4816_v25 = vpop.eup %4815 }
0x3cac   :  { %v3802_v22 = vmul.f32 %v4816_v25, %v3800_v20 }
0x3cb0   :  { %v4818_v56 = vpop.eup %4817 }
0x3cb1   :  { %v3794_v34 = vadd.f32 %v4818_v56, %v4818_v56 }
0x3cb3   :  { %v4335_v1 = vadd.f32 -1.0, %v3794_v34 }
0x3cb5   :  { %v3798_v35 = vsel %vm45_vm1, %v4335_v1, %v4818_v56 }
0x3cb6   :  { %v3803_v18 = vmul.f32 %v4816_v25, %v3798_v35 }
0x3cb8   :  { %3805 = vrot.lane.b32.xlu1 %v3803_v18, %s4854_s2 }
0x3cbc   :  { %2373 = vrot.lane.b32.xlu1 %v5648_v47, %s4854_s2  ;;  %v4491_v47 = vld [vmem:[%s6079_s8 + $0x18] sm:$0xff]  }
0x3cbd   :  { %4411 = vmatprep.subr.bf16.mxu0 %v4491_v47 }
0x3cbe   :  { %4412 = vmatpush3.bf16.msra.mxu0 %v4491_v47 }
0x3cc0   :  { %2582 = vrot.lane.b32.xlu1 %v5686_v12, %s4854_s2  ;;  %v4492_v12 = vld [vmem:[%s6078_s9 + $0x10] sm:$0xff]  }
0x3cc1   :  { %4401 = vmatprep.subr.bf16.mxu1 %v4492_v12 }
0x3cc2   :  { %4402 = vmatpush3.bf16.msra.mxu1 %v4492_v12 }
0x3cc4   :  { %2784 = vrot.lane.b32.xlu1 %v5724_v31, %s4854_s2 }
0x3cc8   :  { %2993 = vrot.lane.b32.xlu1 %v5762_v59, %s4854_s2 }
0x3ccc   :  { %3200 = vrot.lane.b32.xlu1 %v3199_v27, %s4854_s2 }
0x3cd0   :  { %3410 = vrot.lane.b32.xlu1 %v4311_v40, %s4854_s2 }
0x3cd4   :  { %3611 = vrot.lane.b32.xlu1 %v3610_v21, %s4854_s2 }
0x3cd8   :  { %2378 = vrot.lane.b32.xlu1 %v2377_v24, %s4854_s2 }
0x3cdc   :  { %2588 = vrot.lane.b32.xlu1 %v4259_v32, %s4854_s2 }
0x3ce0   :  { %2789 = vrot.lane.b32.xlu1 %v2788_v33, %s4854_s2 }
0x3ce4   :  { %2999 = vrot.lane.b32.xlu1 %v4285_v43, %s4854_s2 }
0x3ce8   :  { %3195 = vrot.lane.b32.xlu1 %v5840_v26, %s4854_s2  ;;  %v4493_v26 = vld [vmem:[%s6079_s8 + $0x10] sm:$0xff]  }
0x3ce9   :  { %4413 = vmatprep.subr.bf16.mxu0 %v4493_v26 }
0x3cea   :  { %4414 = vmatpush3.bf16.msra.mxu0 %v4493_v26 }
0x3cec   :  { %3404 = vrot.lane.b32.xlu1 %v5878_v9, %s4854_s2  ;;  %v4494_v9 = vld [vmem:[%s6078_s9 + $0x8] sm:$0xff]  }
0x3ced   :  { %4403 = vmatprep.subr.bf16.mxu1 %v4494_v9 }
0x3cee   :  { %4404 = vmatpush3.bf16.msra.mxu1 %v4494_v9 }
0x3cef   :  { %4405 = vmatprep.subr.bf16.mxu1 %v4496_v41 }
0x3cf0   :  { %3606 = vrot.lane.b32.xlu1 %v5914_v0, %s4854_s2  ;;  %v4495_v0 = vld [vmem:[%s6079_s8 + $0x8] sm:$0xff]  }
0x3cf1   :  { %4415 = vmatprep.subr.bf16.mxu0 %v4495_v0 }
0x3cf2   :  { %4416 = vmatpush3.bf16.msra.mxu0 %v4495_v0  ;;  %4406 = vmatpush3.bf16.msra.mxu1 %v4496_v41 }
0x3cf3   :  { %4417 = vmatprep.subr.bf16.mxu0 %v4498_v36 }
0x3cf6   :  { %4418 = vmatpush3.bf16.msra.mxu0 %v4498_v36 }
0x3d2a   :  { %v3806_v31 = vpop.permute.xlu1 %3805 }
0x3d2b   :  { %v3808_v59 = vadd.f32 %v3806_v31, %v3802_v22 }
0x3d2d   :  { %4819 = vtanh.f32 %v3808_v59 }
0x3d2e   :  { %v2374_v11 = vpop.permute.xlu1 %2373 }
0x3d2f   :  { %2376 = vst.msk [vmem:[#allocation3] sm:$0x2] %vm421_vm3, %v2374_v11 }
0x3d32   :  { %v2583_v28 = vpop.permute.xlu1 %2582 }
0x3d33   :  { %2585 = vst.msk [vmem:[#allocation3] sm:$0x8] %vm322_vm2, %v2583_v28 }
0x3d36   :  { %v2785_v49 = vpop.permute.xlu1 %2784 }
0x3d37   :  { %2787 = vst.msk [vmem:[#allocation3 + $0x4] sm:$0x2] %vm421_vm3, %v2785_v49 }
0x3d3a   :  { %v4820_v51 = vpop.eup %4819  ;;  %v2994_v53 = vpop.permute.xlu1 %2993 }
0x3d3b   :  { %2996 = vst.msk [vmem:[#allocation3 + $0x4] sm:$0x8] %vm322_vm2, %v2994_v53  ;;  %v3810_v10 = vmul.f32 %v4820_v51, %v3798_v35 }
0x3d3d   :  { %v4386_v60 = vpack.c.bf16 %v3810_v10, %v3810_v10 }
0x3d3e   :  { %v3201_v29 = vpop.permute.xlu1 %3200 }
0x3d3f   :  { %3203 = vst.msk [vmem:[#allocation4 + $0x4] sm:$0x4] %vm427_vm5, %v3201_v29  ;;  %v4337_v23 = vrot.slane %v4386_v60, 11 }
0x3d41   :  { %3821 = vrot.lane.b32.xlu1 %v4337_v23, %s4854_s2 }
0x3d42   :  { %v3411_v63 = vpop.permute.xlu1 %3410  ;;  %v4489_v14 = vld [vmem:[#allocation3] sm:$0xff]  }
0x3d43   :  { %3413 = vst.msk [vmem:[#allocation4 + $0x4] sm:$0x1] %vm316_vm4, %v3411_v63  ;;  %4419 = vmatprep.mubr.msk.bf16.mxu0 %vm114_vm0, %v4489_v14 }
0x3d45   :  { %3815 = vrot.lane.b32.xlu1 %v4386_v60, %s4854_s2 }
0x3d46   :  { %v3612_v54 = vpop.permute.xlu1 %3611 }
0x3d47   :  { %3614 = vst.msk [vmem:[#allocation4] sm:$0x4] %vm427_vm5, %v3612_v54 }
0x3d4a   :  { %v2379_v57 = vpop.permute.xlu1 %2378 }
0x3d4b   :  { %2381 = vst.msk [vmem:[#allocation4 + $0xc] sm:$0x4] %vm427_vm5, %v2379_v57 }
0x3d4e   :  { %v2589_v58 = vpop.permute.xlu1 %2588 }
0x3d4f   :  { %2591 = vst.msk [vmem:[#allocation4 + $0xc] sm:$0x1] %vm316_vm4, %v2589_v58 }
0x3d52   :  { %v2790_v44 = vpop.permute.xlu1 %2789 }
0x3d53   :  { %2792 = vst.msk [vmem:[#allocation4 + $0x8] sm:$0x4] %vm427_vm5, %v2790_v44 }
0x3d56   :  { %v3000_v61 = vpop.permute.xlu1 %2999 }
0x3d57   :  { %3002 = vst.msk [vmem:[#allocation4 + $0x8] sm:$0x1] %vm316_vm4, %v3000_v61 }
0x3d5a   :  { %v3196_v39 = vpop.permute.xlu1 %3195 }
0x3d5b   :  { %3198 = vst.msk [vmem:[#allocation3 + $0x8] sm:$0x2] %vm421_vm3, %v3196_v39 }
0x3d5e   :  { %v3405_v3 = vpop.permute.xlu1 %3404  ;;  %v4499_v17 = vld [vmem:[#allocation4 + $0x8] sm:$0xff]  }
0x3d5f   :  { %3407 = vst.msk [vmem:[#allocation3 + $0x8] sm:$0x8] %vm322_vm2, %v3405_v3 }
0x3d62   :  { %v3607_v42 = vpop.permute.xlu1 %3606 }
0x3d63   :  { %3609 = vst.msk [vmem:[#allocation3 + $0xc] sm:$0x2] %vm421_vm3, %v3607_v42 }
0x3db3   :  { %v3822_v46 = vpop.permute.xlu1 %3821 }
0x3db4   :  { %3824 = vst.msk [vmem:[#allocation4] sm:$0x1] %vm316_vm4, %v3822_v46 }
0x3db7   :  { %v3816_v15 = vpop.permute.xlu1 %3815 }
0x3db8   :  { %3818 = vst.msk [vmem:[#allocation3 + $0xc] sm:$0x8] %vm322_vm2, %v3816_v15 }
0x3dbb   :  { %v4497_v48 = vld [vmem:[#allocation4] sm:$0xff]  }
0x3dbc   :  { %4407 = vmatprep.mubr.msk.bf16.mxu1 %vm114_vm0, %v4497_v48 }
0x3dbd   :  { %4408 = vmatmul.mubr.msk.bf16.vlgmr.msra.gmra.mxu1 %vm114_vm0, %v4499_v17 }
0x3dbf   :  { %v4500_v52 = vld [vmem:[#allocation3 + $0x8] sm:$0xff]  }
0x3dc0   :  { %4420 = vmatmul.mubr.msk.bf16.vlgmr.msra.gmra.mxu0 %vm114_vm0, %v4500_v52 }
0x3e7d   :  { %v4409_v19 = vpop.f32.mrf.mxu1 }
0x3e7f   :  { %v3923_v30 = vpop.f32.mrf.mxu1 }
0x3e80   :  { %v4421_v2 = vpop.f32.mrf.mxu0 }
0x3e81   :  { %v4410_v7 = vpop.f32.mrf.mxu1  ;;  %v4021_v13 = vadd.f32 %v4421_v2, %v4409_v19 }
0x3e82   :  { %v4012_v62 = vpop.f32.mrf.mxu0 }
0x3e83   :  { %v4013_v4 = vadd.f32 %v4012_v62, %v3923_v30  ;;  %v3926_v45 = vpop.f32.mrf.mxu1  ;;  %v4036_v38 = vadd.f32 %v4354_v50, %v4021_v13 }
0x3e84   :  { %v4422_v6 = vpop.f32.mrf.mxu0 }
0x3e85   :  { %v4034_v8 = vadd.f32 %v4354_v50, %v4013_v4  ;;  %v4024_v55 = vadd.f32 %v4422_v6, %v4410_v7 }
0x3e86   :  { %v4015_v16 = vpop.f32.mrf.mxu0 }
0x3e87   :  { %v4016_v5 = vadd.f32 %v4015_v16, %v3926_v45  ;;  %4038 = vmax.xlane.f32.xlu0 %v4034_v8  ;;  %v4037_v25 = vadd.f32 %v4354_v50, %v4024_v55 }
0x3e89   :  { %v4035_v20 = vadd.f32 %v4354_v50, %v4016_v5 }
0x3e8b   :  { %4042 = vmax.xlane.f32.xlu0 %v4036_v38  ;;  %4040 = vmax.xlane.f32.xlu1 %v4035_v20 }
0x3e8f   :  { %4044 = vmax.xlane.f32.xlu0 %v4037_v25 }
0x3f10   :  { %v4039_v22 = vpop.xlane.xlu0 %4038 }
0x3f11   :  { %v4046_v56 = vsub.f32 %v4034_v8, %v4039_v22 }
0x3f13   :  { %v4050_v34 = vmul.f32 1.442695, %v4046_v56 }
0x3f14   :  { %v4043_v1 = vpop.xlane.xlu0 %4042  ;;  %v4041_v35 = vpop.xlane.xlu1 %4040 }
0x3f15   :  { %4821 = vpow2.f32 %v4050_v34  ;;  %v4048_v18 = vsub.f32 %v4036_v38, %v4043_v1  ;;  %v4047_v27 = vsub.f32 %v4035_v20, %v4041_v35 }
0x3f17   :  { %v4054_v40 = vmul.f32 1.442695, %v4048_v18  ;;  %v4052_v21 = vmul.f32 1.442695, %v4047_v27 }
0x3f18   :  { %v4045_v24 = vpop.xlane.xlu0 %4044 }
0x3f19   :  { %4823 = vpow2.f32 %v4054_v40  ;;  %v4049_v32 = vsub.f32 %v4037_v25, %v4045_v24 }
0x3f1a   :  { %4825 = vpow2.f32 %v4052_v21 }
0x3f1b   :  { %v4056_v33 = vmul.f32 1.442695, %v4049_v32 }
0x3f1d   :  { %4827 = vpow2.f32 %v4056_v33 }
0x3f22   :  { %v4822_v43 = vpop.eup %4821 }
0x3f23   :  { %4058 = vadd.xlane.f32.xlu1 %v4822_v43 }
0x3f26   :  { %v4824_v37 = vpop.eup %4823 }
0x3f27   :  { %v4826_v47 = vpop.eup %4825  ;;  %4062 = vadd.xlane.f32.xlu1 %v4824_v37 }
0x3f28   :  { %4060 = vadd.xlane.f32.xlu0 %v4826_v47 }
0x3f2a   :  { %v4828_v12 = vpop.eup %4827 }
0x3f2c   :  { %4064 = vadd.xlane.f32.xlu0 %v4828_v12 }
0x3fac   :  { %v4059_v31 = vpop.xlane.xlu1 %4058 }
0x3fad   :  { %4829 = vrcp.f32 %v4059_v31 }
0x3fb0   :  { %v4063_v59 = vpop.xlane.xlu1 %4062 }
0x3fb1   :  { %v4061_v11 = vpop.xlane.xlu0 %4060  ;;  %4831 = vrcp.f32 %v4063_v59 }
0x3fb2   :  { %4833 = vrcp.f32 %v4061_v11 }
0x3fb5   :  { %v4065_v28 = vpop.xlane.xlu0 %4064 }
0x3fb6   :  { %4835 = vrcp.f32 %v4065_v28 }
0x3fba   :  { %v4830_v26 = vpop.eup %4829 }
0x3fbb   :  { %v4067_v9 = vmul.f32 %v4830_v26, %v4822_v43 }
0x3fbd   :  { %4074 = vst [vmem:[%s6081_s11] sm:$0xff] %v4067_v9 }
0x3fbe   :  { %v4832_v49 = vpop.eup %4831 }
0x3fbf   :  { %v4834_v0 = vpop.eup %4833  ;;  %v4071_v41 = vmul.f32 %v4832_v49, %v4824_v37 }
0x3fc0   :  { %v4069_v51 = vmul.f32 %v4834_v0, %v4826_v47 }
0x3fc1   :  { %4076 = vst [vmem:[%s6081_s11 + $0x10] sm:$0xff] %v4071_v41 }
0x3fc2   :  { %4075 = vst [vmem:[%s6081_s11 + $0x8] sm:$0xff] %v4069_v51 }
0x3fc3   :  { %v4836_v53 = vpop.eup %4835 }
0x3fc4   :  { %v4073_v10 = vmul.f32 %v4836_v53, %v4828_v12 }
0x3fc6   :  { %4077 = vst [vmem:[%s6081_s11 + $0x18] sm:$0xff] %v4073_v10 }

</bundles_post_ra>
